<compile_context>
chip_gen: v5e
topology: v5e:2x2
jax: 0.10.0
libtpu: 0.0.40
codegen_flags: <defaults>
</compile_context>

<pallas_src>
import math

import jax
import jax.numpy as jnp
from jax.experimental import pallas as pl
from jax.experimental.pallas import tpu as pltpu

# Make the pure-JAX reference use exact f32 matmuls so the 1e-4 comparison
# measures the kernel, not XLA's default bf16 matmul passes.
jax.config.update("jax_default_matmul_precision", "highest")

D_EMBED = 32
NUM_HEADS = 8
D_K = D_EMBED // NUM_HEADS
D_PAD = 128                    # residual stream padded to one full lane width
D_HIDDEN = 4 * D_EMBED         # 128 -- FFN hidden dim is already lane dense
LN_EPS = 1e-5                  # nn.LayerNorm default eps


# --------------------------------------------------------------------------- #
# Kernel
# --------------------------------------------------------------------------- #
def encoder_kernel(x_ref, wqkvx_ref, wo_ref,
                   ln1_g_ref, ln1_b_ref,
                   fc1_w_ref, fc1_b_ref, fc2_w_ref, fc2_b_ref,
                   ln2_g_ref, ln2_b_ref,
                   rep_ref, head_mask_ref, sbias_ref, sel_ref, lane_mask_ref,
                   o_ref):
    f32 = jnp.float32
    D = x_ref.shape[-1]          # 32 real features
    Dp = D_PAD

    x2d = x_ref[...]                                                 # (rows, D)

    # ---- fused {Q*1/sqrt(dk) | K | V | I_pad} projection: one MXU matmul ----
    # Each output part sits in its own 128-lane tile -> slices are free views.
    qkvx = jnp.dot(x2d, wqkvx_ref[...], preferred_element_type=f32)  # (rows, 4*Dp)
    q = qkvx[:, 0 * Dp:1 * Dp]
    k = qkvx[:, 1 * Dp:2 * Dp]
    v = qkvx[:, 2 * Dp:3 * Dp]
    xp = qkvx[:, 3 * Dp:4 * Dp]          # x zero-padded to 128 lanes (residual)

    # ---- attention: all Bt batch elements and all H heads at once -----------
    # Stacked rows are (batch, head, query); `rep` replicates q rows on the MXU,
    # `head_mask` keeps only that head's d_k feature columns.
    head_mask = head_mask_ref[...]                                   # (Bt*H*N, Dp)
    q_tall = jnp.dot(rep_ref[...], q,
                     preferred_element_type=f32) * head_mask         # (Bt*H*N, Dp)
    # scores: contract the feature axis directly (no explicit k transpose)
    s = jax.lax.dot_general(q_tall, k, (((1,), (1,)), ((), ())),
                            preferred_element_type=f32)              # (Bt*H*N, Bt*N)
    s = s + sbias_ref[...]               # -1e30 on cross-batch keys (block-diag)

    # ONE softmax over the whole stacked score block
    m = jnp.max(s, axis=-1, keepdims=True)
    e = jnp.exp(s - m)
    denom = jnp.sum(e, axis=-1, keepdims=True)
    r = pl.reciprocal(denom, approx=True)       # EUP slot (essentially free)
    r = r * (2.0 - denom * r)                   # one Newton step -> f32 accuracy
    p = e * r                                                        # (Bt*H*N, Bt*N)

    ot = jnp.dot(p, v, preferred_element_type=f32) * head_mask       # (Bt*H*N, Dp)
    # collapse the head axis (concat over heads) with a tiny constant matmul
    attn = jnp.dot(sel_ref[...], ot, preferred_element_type=f32)     # (rows, Dp)
    attn = jnp.dot(attn, wo_ref[...], preferred_element_type=f32)    # (rows, Dp)

    # ---- AddNorm1 / FFN / AddNorm2, row-wise on the whole (rows, 128) slab ---
    lane_mask = lane_mask_ref[...]       # (1, Dp): 1 on the D real lanes
    inv_d = 1.0 / D

    def layernorm(t, gamma, beta):
        # padded lanes of `t` are exactly 0, so the plain sum over 128 lanes / D
        # equals the mean over the D real features.
        mean = jnp.sum(t, axis=-1, keepdims=True) * inv_d
        c = (t - mean) * lane_mask
        var = jnp.sum(c * c, axis=-1, keepdims=True) * inv_d
        return c * jax.lax.rsqrt(var + LN_EPS) * gamma + beta

    h1 = layernorm(attn + xp, ln1_g_ref[...], ln1_b_ref[...])        # (rows, Dp)

    f = jnp.dot(h1, fc1_w_ref[...], preferred_element_type=f32) + fc1_b_ref[...]
    f = jnp.maximum(f, 0.0)
    f = jnp.dot(f, fc2_w_ref[...], preferred_element_type=f32) + fc2_b_ref[...]

    h2 = layernorm(f + h1, ln2_g_ref[...], ln2_b_ref[...])           # (rows, Dp)

    # unpadded store: only the D real lanes go back to HBM
    o_ref[...] = h2[:, :D]


# --------------------------------------------------------------------------- #
# One-time parameter / constant-mask preparation (outside the jitted forward)
# --------------------------------------------------------------------------- #
def choose_batch_per_step(batch, seq_len):
    """Pack up to ~128 rows per grid step, but keep >= 2 grid steps when
    B >= 2 so both v7x TensorCores get work (v5e/v6e only pay one extra
    ~0.35us pipeline step for the second block)."""
    max_bt = max(1, 128 // seq_len)
    if batch >= 2:
        return max(1, min(max_bt, (batch + 1) // 2))
    return 1


def prepare_encoder(params, *, seq_len, batch_per_step):
    wq, wk, wv, wo, g1, b1, w1, c1, w2, c2, g2, b2 = params
    f32 = jnp.float32
    D = wq.shape[0]
    H = NUM_HEADS
    DK = D // H
    Dp = D_PAD
    DH = w1.shape[1]
    N = seq_len
    Bt = batch_per_step
    rows = Bt * N                 # rows of the per-step activation slab
    HN = Bt * H * N               # stacked (batch, head, query) rows

    # Fused projection [Q*1/sqrt(dk) | K | V | I_pad]; the scale fold is exact
    # for power-of-two sqrt(dk) and well within 1e-4 otherwise.
    wqkvx = jnp.zeros((D, 4 * Dp), f32)
    wqkvx = wqkvx.at[:, 0 * Dp:0 * Dp + D].set(wq * (1.0 / math.sqrt(DK)))
    wqkvx = wqkvx.at[:, 1 * Dp:1 * Dp + D].set(wk)
    wqkvx = wqkvx.at[:, 2 * Dp:2 * Dp + D].set(wv)
    wqkvx = wqkvx.at[:, 3 * Dp:3 * Dp + D].set(jnp.eye(D, dtype=f32))

    wo_p = jnp.zeros((Dp, Dp), f32).at[:D, :D].set(wo)
    w1_p = jnp.zeros((Dp, DH), f32).at[:D, :].set(w1)
    c1_p = c1.reshape(1, DH).astype(f32)
    w2_p = jnp.zeros((DH, Dp), f32).at[:, :D].set(w2)
    c2_p = jnp.zeros((1, Dp), f32).at[:, :D].set(c2.reshape(1, D))
    g1_p = jnp.zeros((1, Dp), f32).at[:, :D].set(g1.reshape(1, D))
    b1_p = jnp.zeros((1, Dp), f32).at[:, :D].set(b1.reshape(1, D))
    g2_p = jnp.zeros((1, Dp), f32).at[:, :D].set(g2.reshape(1, D))
    b2_p = jnp.zeros((1, Dp), f32).at[:, :D].set(b2.reshape(1, D))

    # Constant masks for the stacked attention block (hoisted out of the kernel).
    r = jnp.arange(HN)
    row_b = r // (H * N)          # batch element of each stacked row
    row_h = (r // N) % H          # head of each stacked row
    row_n = r % N                 # query position of each stacked row
    j = jnp.arange(rows)          # rows of the (Bt*N, .) slab
    col_b = j // N
    col_n = j % N
    lane = jnp.arange(Dp)

    # q_tall = rep @ q : replicate each (batch, query) row once per head
    rep = (j[None, :] == (row_b * N + row_n)[:, None]).astype(f32)        # (HN, rows)
    # keep only the owning head's d_k feature columns
    head_mask = ((lane[None, :] < D) &
                 ((lane[None, :] // DK) == row_h[:, None])).astype(f32)   # (HN, Dp)
    # additive score bias: 0 within the same batch element, -1e30 across
    score_bias = jnp.where(row_b[:, None] == col_b[None, :],
                           0.0, -1e30).astype(f32)                        # (HN, rows)
    # head recombination (concat over heads) back to (rows, D)
    sel = ((row_b[None, :] == col_b[:, None]) &
           (row_n[None, :] == col_n[:, None])).astype(f32)                # (rows, HN)
    lane_mask = (lane[None, :] < D).astype(f32)                           # (1, Dp)

    return (wqkvx, wo_p, g1_p, b1_p, w1_p, c1_p, w2_p, c2_p, g2_p, b2_p,
            rep, head_mask, score_bias, sel, lane_mask)


# --------------------------------------------------------------------------- #
# Forward
# --------------------------------------------------------------------------- #
@jax.jit
def encoder_forward(x, prepared):
    (wqkvx, wo_p, g1_p, b1_p, w1_p, c1_p, w2_p, c2_p, g2_p, b2_p,
     rep, head_mask, score_bias, sel, lane_mask) = prepared

    B, N, D = x.shape
    rows_step = sel.shape[0]          # Bt * N rows per grid step
    Bt = rows_step // N
    num_blocks = (B + Bt - 1) // Bt
    total_rows = num_blocks * rows_step

    x2 = x.reshape(B * N, D)          # free (contiguous) reshape
    if total_rows != B * N:           # pad the batch to a multiple of Bt
        x2 = jnp.concatenate(
            [x2, jnp.zeros((total_rows - B * N, D), x2.dtype)], axis=0)

    consts = [wqkvx, wo_p, g1_p, b1_p, w1_p, c1_p, w2_p, c2_p, g2_p, b2_p,
              rep, head_mask, score_bias, sel, lane_mask]

    def const_spec(a):
        # constant index map -> fetched once, re-used across all grid steps
        return pl.BlockSpec(a.shape, lambda i: (0,) * a.ndim)

    out2 = pl.pallas_call(
        encoder_kernel,
        out_shape=jax.ShapeDtypeStruct((total_rows, D), jnp.float32),
        grid_spec=pltpu.PrefetchScalarGridSpec(
            num_scalar_prefetch=0,
            grid=(num_blocks,),
            in_specs=[pl.BlockSpec((rows_step, D), lambda i: (i, 0))]
                     + [const_spec(a) for a in consts],
            out_specs=pl.BlockSpec((rows_step, D), lambda i: (i, 0)),
        ),
        # Working set is a few hundred KiB -> defaults are plenty.  When
        # scaling N / Bt (esp. on 64 MiB-VMEM v7x), set vmem_limit_bytes and
        # single-buffer the constant weight specs.
        compiler_params=pltpu.CompilerParams(
            dimension_semantics=("parallel",)),
    )(x2, *consts)

    return out2[:B * N].reshape(B, N, D)


# --------------------------------------------------------------------------- #
# Pure-JAX reference (mirrors the PyTorch forward exactly) + param init
# --------------------------------------------------------------------------- #
def encoder_reference(x, params):
    wq, wk, wv, wo, g1, b1, w1, c1, w2, c2, g2, b2 = params
    B, N, D = x.shape
    q = (x @ wq).reshape(B, N, NUM_HEADS, D_K).transpose(0, 2, 1, 3)
    k = (x @ wk).reshape(B, N, NUM_HEADS, D_K).transpose(0, 2, 1, 3)
    v = (x @ wv).reshape(B, N, NUM_HEADS, D_K).transpose(0, 2, 1, 3)
    s = jnp.einsum('bhqd,bhkd->bhqk', q, k) / math.sqrt(D_K)
    p = jax.nn.softmax(s, axis=-1)
    o = jnp.einsum('bhqk,bhkd->bhqd', p, v).transpose(0, 2, 1, 3).reshape(B, N, D)
    o = o @ wo

    def ln(t, g, b):
        m = t.mean(-1, keepdims=True)
        var = ((t - m) ** 2).mean(-1, keepdims=True)
        return (t - m) / jnp.sqrt(var + LN_EPS) * g + b

    h1 = ln(o + x, g1, b1)
    f = jnp.maximum(h1 @ w1 + c1, 0.0) @ w2 + c2
    return ln(f + h1, g2, b2)


def init_params(key):
    D = D_EMBED
    ks = jax.random.split(key, 8)
    scale = 1.0 / math.sqrt(D)
    wq = jax.random.normal(ks[0], (D, D), jnp.float32) * scale
    wk = jax.random.normal(ks[1], (D, D), jnp.float32) * scale
    wv = jax.random.normal(ks[2], (D, D), jnp.float32) * scale
    wo = jax.random.normal(ks[3], (D, D), jnp.float32) * scale
    ln1_g = jnp.ones((1, D), jnp.float32)
    ln1_b = jnp.zeros((1, D), jnp.float32)
    fc1_w = jax.random.normal(ks[4], (D, 4 * D), jnp.float32) * scale
    fc1_b = jax.random.normal(ks[5], (1, 4 * D), jnp.float32) * 0.01
    fc2_w = jax.random.normal(ks[6], (4 * D, D), jnp.float32) * (1.0 / math.sqrt(4 * D))
    fc2_b = jax.random.normal(ks[7], (1, D), jnp.float32) * 0.01
    ln2_g = jnp.ones((1, D), jnp.float32)
    ln2_b = jnp.zeros((1, D), jnp.float32)
    return [wq, wk, wv, wo, ln1_g, ln1_b,
            fc1_w, fc1_b, fc2_w, fc2_b, ln2_g, ln2_b]


if __name__ == "__main__":
    key = jax.random.PRNGKey(0)
    kx, kp = jax.random.split(key)
    B, N = 4, 8
    x = jax.random.normal(kx, (B, N, D_EMBED), jnp.float32)
    params = init_params(kp)

    # one-time prep (padded/fused weights + constant attention masks)
    bt = choose_batch_per_step(B, N)          # -> 2 batches / 16 rows per step
    prepared = prepare_encoder(params, seq_len=N, batch_per_step=bt)

    out = jax.block_until_ready(encoder_forward(x, prepared))

    ref = encoder_reference(x, params)
    assert out.shape == (B, N, D_EMBED)
    max_err = float(jnp.max(jnp.abs(out - ref)))
    assert jnp.allclose(out, ref, atol=1e-4, rtol=1e-4), max_err
    print("KERNEL_OK")
</pallas_src>

<mosaic_0001>
module attributes {stable_mosaic.version = 11 : i64} {
  func.func @encoder_kernel(%arg0: i32, %arg1: memref<16x32xf32, #tpu.memory_space<vmem>>, %arg2: memref<32x512xf32, #tpu.memory_space<vmem>>, %arg3: memref<128x128xf32, #tpu.memory_space<vmem>>, %arg4: memref<1x128xf32, #tpu.memory_space<vmem>>, %arg5: memref<1x128xf32, #tpu.memory_space<vmem>>, %arg6: memref<128x128xf32, #tpu.memory_space<vmem>>, %arg7: memref<1x128xf32, #tpu.memory_space<vmem>>, %arg8: memref<128x128xf32, #tpu.memory_space<vmem>>, %arg9: memref<1x128xf32, #tpu.memory_space<vmem>>, %arg10: memref<1x128xf32, #tpu.memory_space<vmem>>, %arg11: memref<1x128xf32, #tpu.memory_space<vmem>>, %arg12: memref<128x16xf32, #tpu.memory_space<vmem>>, %arg13: memref<128x128xf32, #tpu.memory_space<vmem>>, %arg14: memref<128x16xf32, #tpu.memory_space<vmem>>, %arg15: memref<16x128xf32, #tpu.memory_space<vmem>>, %arg16: memref<1x128xf32, #tpu.memory_space<vmem>>, %arg17: memref<16x32xf32, #tpu.memory_space<vmem>>) attributes {dimension_semantics = [#tpu.dimension_semantics<parallel>], iteration_bounds = array<i64: 2>, scalar_prefetch = 0 : i64, scratch_operands = 0 : i64, tpu.core_type = #tpu.core_type<tc>, window_params = [{transform_indices = @transform_0, window_bounds = array<i64: 16, 32>}, {pipeline_mode = #tpu.pipeline_mode<synchronous>, transform_indices = @transform_1, window_bounds = array<i64: 32, 512>}, {pipeline_mode = #tpu.pipeline_mode<synchronous>, transform_indices = @transform_2, window_bounds = array<i64: 128, 128>}, {pipeline_mode = #tpu.pipeline_mode<synchronous>, transform_indices = @transform_3, window_bounds = array<i64: 1, 128>}, {pipeline_mode = #tpu.pipeline_mode<synchronous>, transform_indices = @transform_4, window_bounds = array<i64: 1, 128>}, {pipeline_mode = #tpu.pipeline_mode<synchronous>, transform_indices = @transform_5, window_bounds = array<i64: 128, 128>}, {pipeline_mode = #tpu.pipeline_mode<synchronous>, transform_indices = @transform_6, window_bounds = array<i64: 1, 128>}, {pipeline_mode = #tpu.pipeline_mode<synchronous>, transform_indices = @transform_7, window_bounds = array<i64: 128, 128>}, {pipeline_mode = #tpu.pipeline_mode<synchronous>, transform_indices = @transform_8, window_bounds = array<i64: 1, 128>}, {pipeline_mode = #tpu.pipeline_mode<synchronous>, transform_indices = @transform_9, window_bounds = array<i64: 1, 128>}, {pipeline_mode = #tpu.pipeline_mode<synchronous>, transform_indices = @transform_10, window_bounds = array<i64: 1, 128>}, {pipeline_mode = #tpu.pipeline_mode<synchronous>, transform_indices = @transform_11, window_bounds = array<i64: 128, 16>}, {pipeline_mode = #tpu.pipeline_mode<synchronous>, transform_indices = @transform_12, window_bounds = array<i64: 128, 128>}, {pipeline_mode = #tpu.pipeline_mode<synchronous>, transform_indices = @transform_13, window_bounds = array<i64: 128, 16>}, {pipeline_mode = #tpu.pipeline_mode<synchronous>, transform_indices = @transform_14, window_bounds = array<i64: 16, 128>}, {pipeline_mode = #tpu.pipeline_mode<synchronous>, transform_indices = @transform_15, window_bounds = array<i64: 1, 128>}, {transform_indices = @transform_16, window_bounds = array<i64: 16, 32>}]} {
    %c0 = arith.constant 0 : index
    %c0_0 = arith.constant 0 : index
    %0 = vector.load %arg1[%c0, %c0_0] : memref<16x32xf32, #tpu.memory_space<vmem>>, vector<16x32xf32>
    %c0_1 = arith.constant 0 : index
    %c0_2 = arith.constant 0 : index
    %1 = vector.load %arg2[%c0_1, %c0_2] : memref<32x512xf32, #tpu.memory_space<vmem>>, vector<32x512xf32>
    %cst = arith.constant dense<0.000000e+00> : vector<16x512xf32>
    %2 = tpu.matmul %0, %1, %cst {dimension_numbers = #tpu.dot_dimension_numbers<[1], [0], [0], [1], [0, 0, 1, 1], [], []>, precision = #tpu.contract_precision<fp32>} : vector<16x32xf32>, vector<32x512xf32>, vector<16x512xf32> -> vector<16x512xf32>
    %3 = vector.extract_strided_slice %2 {offsets = [0, 0], sizes = [16, 128], strides = [1, 1]} : vector<16x512xf32> to vector<16x128xf32>
    %4 = vector.extract_strided_slice %2 {offsets = [0, 128], sizes = [16, 128], strides = [1, 1]} : vector<16x512xf32> to vector<16x128xf32>
    %5 = vector.extract_strided_slice %2 {offsets = [0, 256], sizes = [16, 128], strides = [1, 1]} : vector<16x512xf32> to vector<16x128xf32>
    %6 = vector.extract_strided_slice %2 {offsets = [0, 384], sizes = [16, 128], strides = [1, 1]} : vector<16x512xf32> to vector<16x128xf32>
    %c0_3 = arith.constant 0 : index
    %c0_4 = arith.constant 0 : index
    %7 = vector.load %arg13[%c0_3, %c0_4] : memref<128x128xf32, #tpu.memory_space<vmem>>, vector<128x128xf32>
    %c0_5 = arith.constant 0 : index
    %c0_6 = arith.constant 0 : index
    %8 = vector.load %arg12[%c0_5, %c0_6] : memref<128x16xf32, #tpu.memory_space<vmem>>, vector<128x16xf32>
    %cst_7 = arith.constant dense<0.000000e+00> : vector<128x128xf32>
    %9 = tpu.matmul %8, %3, %cst_7 {dimension_numbers = #tpu.dot_dimension_numbers<[1], [0], [0], [1], [0, 0, 1, 1], [], []>, precision = #tpu.contract_precision<fp32>} : vector<128x16xf32>, vector<16x128xf32>, vector<128x128xf32> -> vector<128x128xf32>
    %10 = arith.mulf %9, %7 : vector<128x128xf32>
    %cst_8 = arith.constant dense<0.000000e+00> : vector<128x16xf32>
    %11 = tpu.matmul %10, %4, %cst_8 {dimension_numbers = #tpu.dot_dimension_numbers<[1], [1], [0], [0], [0, 0, 1, 0], [], []>, precision = #tpu.contract_precision<fp32>} : vector<128x128xf32>, vector<16x128xf32>, vector<128x16xf32> -> vector<128x16xf32>
    %c0_9 = arith.constant 0 : index
    %c0_10 = arith.constant 0 : index
    %12 = vector.load %arg14[%c0_9, %c0_10] : memref<128x16xf32, #tpu.memory_space<vmem>>, vector<128x16xf32>
    %13 = arith.addf %11, %12 : vector<128x16xf32>
    %cst_11 = arith.constant dense<0xFF800000> : vector<128xf32>
    %14 = vector.multi_reduction <maximumf>, %13, %cst_11 [1] : vector<128x16xf32> to vector<128xf32>
    %15 = vector.shape_cast %14 : vector<128xf32> to vector<128x1xf32>
    %16 = vector.broadcast %15 : vector<128x1xf32> to vector<128x16xf32>
    %17 = arith.subf %13, %16 : vector<128x16xf32>
    %18 = math.exp %17 : vector<128x16xf32>
    %cst_12 = arith.constant dense<0.000000e+00> : vector<128xf32>
    %19 = vector.multi_reduction <add>, %18, %cst_12 [1] : vector<128x16xf32> to vector<128xf32>
    %20 = vector.shape_cast %19 : vector<128xf32> to vector<128x1xf32>
    %21 = tpu.reciprocal %20 {approx = true} : vector<128x1xf32> -> vector<128x1xf32>
    %22 = arith.mulf %20, %21 : vector<128x1xf32>
    %cst_13 = arith.constant 2.000000e+00 : f32
    %23 = vector.broadcast %cst_13 : f32 to vector<128x1xf32>
    %24 = arith.subf %23, %22 : vector<128x1xf32>
    %25 = arith.mulf %21, %24 : vector<128x1xf32>
    %26 = vector.broadcast %25 : vector<128x1xf32> to vector<128x16xf32>
    %27 = arith.mulf %18, %26 : vector<128x16xf32>
    %cst_14 = arith.constant dense<0.000000e+00> : vector<128x128xf32>
    %28 = tpu.matmul %27, %5, %cst_14 {dimension_numbers = #tpu.dot_dimension_numbers<[1], [0], [0], [1], [0, 0, 1, 1], [], []>, precision = #tpu.contract_precision<fp32>} : vector<128x16xf32>, vector<16x128xf32>, vector<128x128xf32> -> vector<128x128xf32>
    %29 = arith.mulf %28, %7 : vector<128x128xf32>
    %c0_15 = arith.constant 0 : index
    %c0_16 = arith.constant 0 : index
    %30 = vector.load %arg15[%c0_15, %c0_16] : memref<16x128xf32, #tpu.memory_space<vmem>>, vector<16x128xf32>
    %cst_17 = arith.constant dense<0.000000e+00> : vector<16x128xf32>
    %31 = tpu.matmul %30, %29, %cst_17 {dimension_numbers = #tpu.dot_dimension_numbers<[1], [0], [0], [1], [0, 0, 1, 1], [], []>, precision = #tpu.contract_precision<fp32>} : vector<16x128xf32>, vector<128x128xf32>, vector<16x128xf32> -> vector<16x128xf32>
    %c0_18 = arith.constant 0 : index
    %c0_19 = arith.constant 0 : index
    %32 = vector.load %arg3[%c0_18, %c0_19] : memref<128x128xf32, #tpu.memory_space<vmem>>, vector<128x128xf32>
    %cst_20 = arith.constant dense<0.000000e+00> : vector<16x128xf32>
    %33 = tpu.matmul %31, %32, %cst_20 {dimension_numbers = #tpu.dot_dimension_numbers<[1], [0], [0], [1], [0, 0, 1, 1], [], []>, precision = #tpu.contract_precision<fp32>} : vector<16x128xf32>, vector<128x128xf32>, vector<16x128xf32> -> vector<16x128xf32>
    %c0_21 = arith.constant 0 : index
    %c0_22 = arith.constant 0 : index
    %34 = vector.load %arg16[%c0_21, %c0_22] : memref<1x128xf32, #tpu.memory_space<vmem>>, vector<1x128xf32>
    %35 = arith.addf %33, %6 : vector<16x128xf32>
    %c0_23 = arith.constant 0 : index
    %c0_24 = arith.constant 0 : index
    %36 = vector.load %arg4[%c0_23, %c0_24] : memref<1x128xf32, #tpu.memory_space<vmem>>, vector<1x128xf32>
    %c0_25 = arith.constant 0 : index
    %c0_26 = arith.constant 0 : index
    %37 = vector.load %arg5[%c0_25, %c0_26] : memref<1x128xf32, #tpu.memory_space<vmem>>, vector<1x128xf32>
    %cst_27 = arith.constant dense<0.000000e+00> : vector<16xf32>
    %38 = vector.multi_reduction <add>, %35, %cst_27 [1] : vector<16x128xf32> to vector<16xf32>
    %39 = vector.shape_cast %38 : vector<16xf32> to vector<16x1xf32>
    %cst_28 = arith.constant 3.125000e-02 : f32
    %40 = vector.broadcast %cst_28 : f32 to vector<16x1xf32>
    %41 = arith.mulf %39, %40 : vector<16x1xf32>
    %42 = vector.broadcast %41 : vector<16x1xf32> to vector<16x128xf32>
    %43 = arith.subf %35, %42 : vector<16x128xf32>
    %44 = vector.broadcast %34 : vector<1x128xf32> to vector<16x128xf32>
    %45 = arith.mulf %43, %44 : vector<16x128xf32>
    %46 = arith.mulf %45, %45 : vector<16x128xf32>
    %cst_29 = arith.constant dense<0.000000e+00> : vector<16xf32>
    %47 = vector.multi_reduction <add>, %46, %cst_29 [1] : vector<16x128xf32> to vector<16xf32>
    %48 = vector.shape_cast %47 : vector<16xf32> to vector<16x1xf32>
    %cst_30 = arith.constant 3.125000e-02 : f32
    %49 = vector.broadcast %cst_30 : f32 to vector<16x1xf32>
    %50 = arith.mulf %48, %49 : vector<16x1xf32>
    %cst_31 = arith.constant 9.99999974E-6 : f32
    %51 = vector.broadcast %cst_31 : f32 to vector<16x1xf32>
    %52 = arith.addf %50, %51 : vector<16x1xf32>
    %53 = math.rsqrt %52 : vector<16x1xf32>
    %54 = vector.broadcast %53 : vector<16x1xf32> to vector<16x128xf32>
    %55 = arith.mulf %45, %54 : vector<16x128xf32>
    %56 = vector.broadcast %36 : vector<1x128xf32> to vector<16x128xf32>
    %57 = arith.mulf %55, %56 : vector<16x128xf32>
    %58 = vector.broadcast %37 : vector<1x128xf32> to vector<16x128xf32>
    %59 = arith.addf %57, %58 : vector<16x128xf32>
    %c0_32 = arith.constant 0 : index
    %c0_33 = arith.constant 0 : index
    %60 = vector.load %arg6[%c0_32, %c0_33] : memref<128x128xf32, #tpu.memory_space<vmem>>, vector<128x128xf32>
    %cst_34 = arith.constant dense<0.000000e+00> : vector<16x128xf32>
    %61 = tpu.matmul %59, %60, %cst_34 {dimension_numbers = #tpu.dot_dimension_numbers<[1], [0], [0], [1], [0, 0, 1, 1], [], []>, precision = #tpu.contract_precision<fp32>} : vector<16x128xf32>, vector<128x128xf32>, vector<16x128xf32> -> vector<16x128xf32>
    %c0_35 = arith.constant 0 : index
    %c0_36 = arith.constant 0 : index
    %62 = vector.load %arg7[%c0_35, %c0_36] : memref<1x128xf32, #tpu.memory_space<vmem>>, vector<1x128xf32>
    %63 = vector.broadcast %62 : vector<1x128xf32> to vector<16x128xf32>
    %64 = arith.addf %61, %63 : vector<16x128xf32>
    %cst_37 = arith.constant 0.000000e+00 : f32
    %65 = vector.broadcast %cst_37 : f32 to vector<16x128xf32>
    %66 = arith.maximumf %64, %65 : vector<16x128xf32>
    %c0_38 = arith.constant 0 : index
    %c0_39 = arith.constant 0 : index
    %67 = vector.load %arg8[%c0_38, %c0_39] : memref<128x128xf32, #tpu.memory_space<vmem>>, vector<128x128xf32>
    %cst_40 = arith.constant dense<0.000000e+00> : vector<16x128xf32>
    %68 = tpu.matmul %66, %67, %cst_40 {dimension_numbers = #tpu.dot_dimension_numbers<[1], [0], [0], [1], [0, 0, 1, 1], [], []>, precision = #tpu.contract_precision<fp32>} : vector<16x128xf32>, vector<128x128xf32>, vector<16x128xf32> -> vector<16x128xf32>
    %c0_41 = arith.constant 0 : index
    %c0_42 = arith.constant 0 : index
    %69 = vector.load %arg9[%c0_41, %c0_42] : memref<1x128xf32, #tpu.memory_space<vmem>>, vector<1x128xf32>
    %70 = vector.broadcast %69 : vector<1x128xf32> to vector<16x128xf32>
    %71 = arith.addf %68, %70 : vector<16x128xf32>
    %72 = arith.addf %71, %59 : vector<16x128xf32>
    %c0_43 = arith.constant 0 : index
    %c0_44 = arith.constant 0 : index
    %73 = vector.load %arg10[%c0_43, %c0_44] : memref<1x128xf32, #tpu.memory_space<vmem>>, vector<1x128xf32>
    %c0_45 = arith.constant 0 : index
    %c0_46 = arith.constant 0 : index
    %74 = vector.load %arg11[%c0_45, %c0_46] : memref<1x128xf32, #tpu.memory_space<vmem>>, vector<1x128xf32>
    %cst_47 = arith.constant dense<0.000000e+00> : vector<16xf32>
    %75 = vector.multi_reduction <add>, %72, %cst_47 [1] : vector<16x128xf32> to vector<16xf32>
    %76 = vector.shape_cast %75 : vector<16xf32> to vector<16x1xf32>
    %cst_48 = arith.constant 3.125000e-02 : f32
    %77 = vector.broadcast %cst_48 : f32 to vector<16x1xf32>
    %78 = arith.mulf %76, %77 : vector<16x1xf32>
    %79 = vector.broadcast %78 : vector<16x1xf32> to vector<16x128xf32>
    %80 = arith.subf %72, %79 : vector<16x128xf32>
    %81 = vector.broadcast %34 : vector<1x128xf32> to vector<16x128xf32>
    %82 = arith.mulf %80, %81 : vector<16x128xf32>
    %83 = arith.mulf %82, %82 : vector<16x128xf32>
    %cst_49 = arith.constant dense<0.000000e+00> : vector<16xf32>
    %84 = vector.multi_reduction <add>, %83, %cst_49 [1] : vector<16x128xf32> to vector<16xf32>
    %85 = vector.shape_cast %84 : vector<16xf32> to vector<16x1xf32>
    %cst_50 = arith.constant 3.125000e-02 : f32
    %86 = vector.broadcast %cst_50 : f32 to vector<16x1xf32>
    %87 = arith.mulf %85, %86 : vector<16x1xf32>
    %cst_51 = arith.constant 9.99999974E-6 : f32
    %88 = vector.broadcast %cst_51 : f32 to vector<16x1xf32>
    %89 = arith.addf %87, %88 : vector<16x1xf32>
    %90 = math.rsqrt %89 : vector<16x1xf32>
    %91 = vector.broadcast %90 : vector<16x1xf32> to vector<16x128xf32>
    %92 = arith.mulf %82, %91 : vector<16x128xf32>
    %93 = vector.broadcast %73 : vector<1x128xf32> to vector<16x128xf32>
    %94 = arith.mulf %92, %93 : vector<16x128xf32>
    %95 = vector.broadcast %74 : vector<1x128xf32> to vector<16x128xf32>
    %96 = arith.addf %94, %95 : vector<16x128xf32>
    %97 = vector.extract_strided_slice %96 {offsets = [0, 0], sizes = [16, 32], strides = [1, 1]} : vector<16x128xf32> to vector<16x32xf32>
    %c0_52 = arith.constant 0 : index
    %c0_53 = arith.constant 0 : index
    %98 = vector.load %arg17[%c0_52, %c0_53] : memref<16x32xf32, #tpu.memory_space<vmem>>, vector<16x32xf32>
    tpu.vector_store %arg17[%c0_52, %c0_53], %97 {strides = array<i32>} : memref<16x32xf32, #tpu.memory_space<vmem>>, vector<16x32xf32>,
    return
  }
  func.func @transform_0(%arg0: i32) -> (i32, i32) {
    %c0_i32 = arith.constant 0 : i32
    %c0_i32_0 = arith.constant 0 : i32
    return %arg0, %c0_i32 : i32, i32
  }
  func.func @transform_1(%arg0: i32) -> (i32, i32) {
    %c0_i32 = arith.constant 0 : i32
    %c0_i32_0 = arith.constant 0 : i32
    %c0_i32_1 = arith.constant 0 : i32
    return %c0_i32, %c0_i32_0 : i32, i32
  }
  func.func @transform_2(%arg0: i32) -> (i32, i32) {
    %c0_i32 = arith.constant 0 : i32
    %c0_i32_0 = arith.constant 0 : i32
    %c0_i32_1 = arith.constant 0 : i32
    return %c0_i32, %c0_i32_0 : i32, i32
  }
  func.func @transform_3(%arg0: i32) -> (i32, i32) {
    %c0_i32 = arith.constant 0 : i32
    %c0_i32_0 = arith.constant 0 : i32
    %c0_i32_1 = arith.constant 0 : i32
    return %c0_i32, %c0_i32_0 : i32, i32
  }
  func.func @transform_4(%arg0: i32) -> (i32, i32) {
    %c0_i32 = arith.constant 0 : i32
    %c0_i32_0 = arith.constant 0 : i32
    %c0_i32_1 = arith.constant 0 : i32
    return %c0_i32, %c0_i32_0 : i32, i32
  }
  func.func @transform_5(%arg0: i32) -> (i32, i32) {
    %c0_i32 = arith.constant 0 : i32
    %c0_i32_0 = arith.constant 0 : i32
    %c0_i32_1 = arith.constant 0 : i32
    return %c0_i32, %c0_i32_0 : i32, i32
  }
  func.func @transform_6(%arg0: i32) -> (i32, i32) {
    %c0_i32 = arith.constant 0 : i32
    %c0_i32_0 = arith.constant 0 : i32
    %c0_i32_1 = arith.constant 0 : i32
    return %c0_i32, %c0_i32_0 : i32, i32
  }
  func.func @transform_7(%arg0: i32) -> (i32, i32) {
    %c0_i32 = arith.constant 0 : i32
    %c0_i32_0 = arith.constant 0 : i32
    %c0_i32_1 = arith.constant 0 : i32
    return %c0_i32, %c0_i32_0 : i32, i32
  }
  func.func @transform_8(%arg0: i32) -> (i32, i32) {
    %c0_i32 = arith.constant 0 : i32
    %c0_i32_0 = arith.constant 0 : i32
    %c0_i32_1 = arith.constant 0 : i32
    return %c0_i32, %c0_i32_0 : i32, i32
  }
  func.func @transform_9(%arg0: i32) -> (i32, i32) {
    %c0_i32 = arith.constant 0 : i32
    %c0_i32_0 = arith.constant 0 : i32
    %c0_i32_1 = arith.constant 0 : i32
    return %c0_i32, %c0_i32_0 : i32, i32
  }
  func.func @transform_10(%arg0: i32) -> (i32, i32) {
    %c0_i32 = arith.constant 0 : i32
    %c0_i32_0 = arith.constant 0 : i32
    %c0_i32_1 = arith.constant 0 : i32
    return %c0_i32, %c0_i32_0 : i32, i32
  }
  func.func @transform_11(%arg0: i32) -> (i32, i32) {
    %c0_i32 = arith.constant 0 : i32
    %c0_i32_0 = arith.constant 0 : i32
    %c0_i32_1 = arith.constant 0 : i32
    return %c0_i32, %c0_i32_0 : i32, i32
  }
  func.func @transform_12(%arg0: i32) -> (i32, i32) {
    %c0_i32 = arith.constant 0 : i32
    %c0_i32_0 = arith.constant 0 : i32
    %c0_i32_1 = arith.constant 0 : i32
    return %c0_i32, %c0_i32_0 : i32, i32
  }
  func.func @transform_13(%arg0: i32) -> (i32, i32) {
    %c0_i32 = arith.constant 0 : i32
    %c0_i32_0 = arith.constant 0 : i32
    %c0_i32_1 = arith.constant 0 : i32
    return %c0_i32, %c0_i32_0 : i32, i32
  }
  func.func @transform_14(%arg0: i32) -> (i32, i32) {
    %c0_i32 = arith.constant 0 : i32
    %c0_i32_0 = arith.constant 0 : i32
    %c0_i32_1 = arith.constant 0 : i32
    return %c0_i32, %c0_i32_0 : i32, i32
  }
  func.func @transform_15(%arg0: i32) -> (i32, i32) {
    %c0_i32 = arith.constant 0 : i32
    %c0_i32_0 = arith.constant 0 : i32
    %c0_i32_1 = arith.constant 0 : i32
    return %c0_i32, %c0_i32_0 : i32, i32
  }
  func.func @transform_16(%arg0: i32) -> (i32, i32) {
    %c0_i32 = arith.constant 0 : i32
    %c0_i32_0 = arith.constant 0 : i32
    return %arg0, %c0_i32 : i32, i32
  }
}

</mosaic_0001>

<bundles_post_ra>
// kernel: encoder_forward.1
= control target key start
LH: loop header
LB: loop body
LE: loop exit
PB: predicated region body
PF: predicated region fallthrough
CT: control target
= control target key end

     0   :  { %s8385_s0 = inlined_call_operand.hbm [shape: f32[32,32], index: 0, kind: input, shape index: {}]   ;;  %s8386_s1 = inlined_call_operand.vmem [shape: f32[32,512], index: 1, kind: input, shape index: {}]   ;;  %s8387_s2 = inlined_call_operand.vmem [shape: f32[128,128], index: 2, kind: input, shape index: {}]   ;;  %s8388_s3 = inlined_call_operand.vmem [shape: f32[1,128], index: 3, kind: input, shape index: {}]   ;;  %s8389_s4 = inlined_call_operand.vmem [shape: f32[1,128], index: 4, kind: input, shape index: {}]   ;;  %s8390_s5 = inlined_call_operand.hbm [shape: f32[128,128], index: 5, kind: input, shape index: {}]   ;;  %s8391_s6 = inlined_call_operand.vmem [shape: f32[1,128], index: 6, kind: input, shape index: {}]   ;;  %s8392_s7 = inlined_call_operand.hbm [shape: f32[128,128], index: 7, kind: input, shape index: {}]   ;;  %s8393_s8 = inlined_call_operand.vmem [shape: f32[1,128], index: 8, kind: input, shape index: {}]   ;;  %s8394_s9 = inlined_call_operand.vmem [shape: f32[1,128], index: 9, kind: input, shape index: {}]   ;;  %s8395_s10 = inlined_call_operand.vmem [shape: f32[1,128], index: 10, kind: input, shape index: {}]   ;;  %s8396_s11 = inlined_call_operand.vmem [shape: f32[128,16], index: 11, kind: input, shape index: {}]   ;;  %s8397_s12 = inlined_call_operand.hbm [shape: f32[128,128], index: 12, kind: input, shape index: {}]   ;;  %s8398_s13 = inlined_call_operand.vmem [shape: f32[128,16], index: 13, kind: input, shape index: {}]   ;;  %s8399_s14 = inlined_call_operand.vmem [shape: f32[16,128], index: 14, kind: input, shape index: {}]   ;;  %s8400_s15 = inlined_call_operand.vmem [shape: f32[1,128], index: 15, kind: input, shape index: {}]   ;;  %s8401_s16 = inlined_call_operand.hbm [shape: f32[32,32], index: 16, kind: output, shape index: {}]  }
   0x1   :  { %8419 = sst [smem:[#allocation26_spill]] %s8385_s0 }
   0x2   :  { %8420 = sst [smem:[#allocation27_spill]] %s8390_s5 }
   0x3   :  { %8421 = sst [smem:[#allocation28_spill]] %s8392_s7 }
   0x4   :  { %8422 = sst [smem:[#allocation29_spill]] %s8395_s10 }
   0x5   :  { %8423 = sst [smem:[#allocation30_spill]] %s8397_s12 }
   0x6   :  { %8424 = sst [smem:[#allocation31_spill]] %s8401_s16 }
   0x7   :  { %21 = vsyncpa [#allocation3], 0 }
   0x8   :  { %23 = vsyncpa [#allocation3 + $0x1], 0 }
   0x9   :  { %24 = vsyncpa [#allocation6], 0 }
   0xa   :  { %25 = vsyncpa [#allocation9], 0 }
   0xb   :  { %26 = vsyncpa [#allocation4], 0 }
   0xc   :  { %28 = vsyncpa [#allocation4 + $0x1], 0  ;;  %s6024_s21 = smov 0   ;;  %s6026_s22 = smov 0  }
   0xd   :  { %s6028_s23 = smov 0   ;;  %s6030_s24 = smov 0  }
   0xe LB: > { %8425 = sst [smem:[#allocation15_spill]] %s5918_s21  ;;  %s6045_s25 = sadd.s32 4294967295, %s5930_s24   ;;  %s5930_s24 = sphi %s6030_s24, %s8467_s24   ;;  %s5926_s23 = sphi %s6028_s23, %s8469_s23   ;;  %s5922_s22 = sphi %s6026_s22, %s8471_s22   ;;  %s5918_s21 = sphi %s6024_s21, %s8470_s21  }
   0xf   : > { %8426 = sst [smem:[#allocation16_spill]] %s5926_s23  ;;  %s5538_s26 = sadd.s32 4294967294, %s5930_s24  }
  0x10   : > { %p54_p0 = scmp.ne.s32.totalorder %s5922_s22, %s5918_s21  ;;  %p55_p1 = scmp.eq.s32.totalorder %s6045_s25, 0 }
  0x11   : > { %p393_p2 = scmp.eq.s32.totalorder %s6045_s25, 1  ;;  %p399_p3 = scmp.eq.s32.totalorder %s5538_s26, 1 }
  0x12   : > { %p6054_p4 = por %p55_p1, %p54_p0  ;;  %p5539_p5 = scmp.ge.s32.totalorder %s5930_s24, 1 }
  0x13   : > { %p6059_p6 = por %p399_p3, %p54_p0  ;;  %p406_p7 = scmp.lt.s32.totalorder %s5930_s24, 3 }
  0x14   : > { %s8430_s5 = sld [smem:[#allocation27_spill]]  ;;  %s5932_s18 = smov [#allocation5]  }
  0x15   : > { %s8428_s28 = scalar_select %p6059_p6, 1, 0 }
  0x16   : > { %p6067_p8 = pnand %p5539_p5, %p406_p7  ;;  %s431_s19 = sshll.u32 %s5932_s18, 4  ;;  %s432_s19 = int_to_ptr.vmem [resolvable:$true] %s431_s19 }
  0x17   : > { %8429 = sst [smem:[#allocation17_spill]] %s8428_s28  ;;  %s8407_s18 = smov 8  }
  0x18   : > { %p5576_p9 = pneg %p6067_p8  ;;  %s8433_s7 = sld [smem:[#allocation28_spill]] }
  0x19   : > { %s5935_s28 = smov [#allocation7]   ;;  %s8434_s12 = sld [smem:[#allocation30_spill]] }
  0x1a   : > { %s429_s0 = sshll.u32 %s8430_s5, 4  ;;  %p6075_p10 = pnand %p5576_p9, %p55_p1  ;;  %s430_s0 = int_to_ptr.hbm [resolvable:$true] %s429_s0 }
  0x1b   : > { %s8406_s5 = smov 128   ;;  %s448_s21 = sshll.u32 %s5935_s28, 4  ;;  %s449_s21 = int_to_ptr.vmem [resolvable:$true] %s448_s21 }
  0x1c   : > { %5579 = dma.hbm_to_vmem [thread:$0]  (!%p6075_p10), %s430_s0, 2048, %s432_s19, [#allocation6], %s8406_s5, %s8406_s5, %s8407_s18  }
  0x1d   : > { %s5936_s0 = smov [#allocation8]   ;;  %s41_s28 = sadd.s32 1, %s5926_s23 }
  0x1e   : > { %s446_s30 = sshll.u32 %s8433_s7, 4  ;;  %s474_s19 = sshll.u32 %s5936_s0, 4  ;;  %s447_s30 = int_to_ptr.hbm [resolvable:$true] %s446_s30  ;;  %s475_s19 = int_to_ptr.vmem [resolvable:$true] %s474_s19 }
  0x1f   : > { %s472_s29 = sshll.u32 %s8434_s12, 4  ;;  %s6097_s7 = sadd.s32 1, %s5930_s24   ;;  %s473_s29 = int_to_ptr.hbm [resolvable:$true] %s472_s29 }
  0x20   : > { %5582 = dma.hbm_to_vmem [thread:$0]  (!%p6075_p10), %s447_s30, 2048, %s449_s21, [#allocation6], %s8406_s5, %s8406_s5, %s8407_s18  }
  0x21   : > { %8435 = sst [smem:[#allocation18_spill]] %s6097_s7  ;;  %s38_s16 = ssub.s32 %s5930_s24, %s6097_s7 }
  0x22   : > { %5585 = dma.hbm_to_vmem [thread:$0]  (!%p6075_p10), %s473_s29, 2048, %s475_s19, [#allocation9], %s8406_s5, %s8406_s5, %s8407_s18  }
  0x23   : > { %p39_p12 = scmp.eq.s32.totalorder %s38_s16, 0  ;;  %p48_p13 = scmp.ne.s32.totalorder %s5926_s23, %s5922_s22 }
  0x24   : > { %p49_p0 = scmp.eq.s32.totalorder %s5930_s24, 0  ;;  %p5597_p5 = scmp.lt.s32.totalorder %s5930_s24, 2 }
  0x25   : > { %s6111_s26 = scalar_select %p39_p12, %s5926_s23, %s41_s28  }
  0x26   : > { %p6115_p3 = por %p393_p2, %p48_p13  ;;  %s497_s30 = sand.u32 1, %s5926_s23  }
  0x27   : > { %8436 = sst [smem:[#allocation19_spill]] %s6111_s26  ;;  %s5558_s20 = sshll.u32 %s5930_s24, 4 }
  0x28   : > { %p50_p7 = por %p49_p0, %p48_p13  ;;  %s5544_s0 = sshll.u32 %s497_s30, 4 }
  0x29   : > { %s8438_s29 = sld [smem:[#allocation26_spill]]  ;;  %s501_s16 = scalar_lea.vmem [#allocation2], %s5544_s0 }
  0x2a   : > { %s509_s18 = sshll.u32 %s501_s16, 4  ;;  %p6125_p9 = pnand %p5597_p5, %p50_p7  ;;  %s510_s18 = int_to_ptr.vmem [resolvable:$true] %s509_s18 }
  0x2b   : > { %s498_s26 = scalar_lea.sflag [#allocation3], %s497_s30 }
  0x2c   : > { %p5830_p10 = pneg %p6125_p9 }
  0x2f   : > { %s506_s19 = scalar_lea.hbm %s8438_s29, %s5558_s20  ;;  %s5833_s20 = scalar_lea.hbm %s8438_s29, 32 }
  0x30   : > { %s507_s5 = sshll.u32 %s506_s19, 4  ;;  %s508_s5 = int_to_ptr.hbm [resolvable:$true] %s507_s5 }
  0x31   : > { %s5826_s7 = sshra.s32 %s508_s5, 4  ;;  %s5827_s7 = int_to_ptr.hbm [resolvable:$true] %s5826_s7 }
  0x32   : > { %s5828_s23 = scalar_lea.hbm %s5827_s7, 16  ;;  %p5834_p0 = scmp.lt.s32.totalorder %s5827_s7, %s8438_s29 }
  0x33   : > { %p5829_p2 = scmp.ne.s32.totalorder %s5827_s7, %s5828_s23  ;;  %p5835_p5 = scmp.lt.s32.totalorder %s5833_s20, %s5828_s23 }
  0x35   : > { %p5831_p12 = pnand %p5830_p10, %p5829_p2  ;;  %p5836_p7 = por %p5835_p5, %p5834_p0 }
  0x37   : > { %p5832_p13 = pneg %p5831_p12 }
  0x39   : > { %p5837_p11 = pnand %p5836_p7, %p5832_p13 }
  0x3b   : > { %5840 = shalt.err (!%p5837_p11)
}
  0x3c   : > { %s8440_s30 = smov 8   ;;  %s8441_s16 = smov 128  }
  0x3d   : > { %5589 = dma.hbm_to_vmem [thread:$0]  (!%p6125_p9), %s508_s5, 256, %s510_s18, %s498_s26, %s8441_s16, %s8441_s16, %s8440_s30  }
  0x3e   : > { %521 = sbr.rel (%p6067_p8) target bundleno = 2784 (0xae0), region = 84 }
  0x43   : > { %s6145_s10 = sand.u32 1, %s5922_s22  }
  0x44   : > { %s5548_s7 = sshll.u32 %s6145_s10, 4  ;;  %s524_s23 = scalar_lea.sflag [#allocation3], %s6145_s10 }
  0x45   : > { %s527_s12 = scalar_lea.vmem [#allocation2], %s5548_s7 }
  0x46   : > { %5901 = dma.done.wait (%p6054_p4), %s524_s23, 256  }
  0x47   : > { %5903 = vsyncadd (%p6054_p4), %s524_s23, 4294967040 }
  0x48   : > { %5905 = dma.done.wait (%p55_p1), [#allocation6], 4096  }
  0x49   : > { %5907 = vsyncadd (%p55_p1), [#allocation6], 4294963200 }
  0x4a   : > { %5909 = dma.done.wait (%p55_p1), [#allocation9], 2048  }
  0x4b   : > { %5911 = vsyncadd (%p55_p1), [#allocation9], 4294965248  ;;  %vm612_vm0 = vcmask 261120   ;;  %v608_v0 = vld [vmem:[%s8386_s1 + $0x60] sm:$0xff]  ;;  %v595_v8 = vld [vmem:[%s527_s12 + $0x8] sm:$0xff]  ;;  %vm1515_vm1 = vcmask 130048  }
  0x4c   : > { %v604_v1 = vld [vmem:[%s8386_s1 + $0x40] sm:$0xff]  ;;  %v6172_v3 = vand.u32 4294901760, %v608_v0  ;;  %v617_v11 = vsel %vm612_vm0, %v595_v8, 0  ;;  %v609_v34 = vld [vmem:[%s8386_s1 + $0x68] sm:$0xff]  ;;  %v610_v62 = vld [vmem:[%s8386_s1 + $0x70] sm:$0xff]  ;;  %s8462_s27 = sld [smem:[#allocation29_spill]] }
  0x4d   : > { %v600_v2 = vld [vmem:[%s8386_s1 + $0x20] sm:$0xff]  ;;  %v6174_v4 = vand.u32 4294901760, %v604_v1  ;;  %v6195_v17 = vand.u32 4294901760, %v617_v11  ;;  %v605_v35 = vld [vmem:[%s8386_s1 + $0x48] sm:$0xff]  ;;  %v6231_v38 = vand.u32 4294901760, %v609_v34  ;;  %v606_v63 = vld [vmem:[%s8386_s1 + $0x50] sm:$0xff] }
  0x4e   : > { %v6176_v5 = vand.u32 4294901760, %v600_v2  ;;  %v596_v6 = vld [vmem:[%s8386_s1] sm:$0xff]  ;;  %632 = vmatpush.msra.mxu0 %v6172_v3  ;;  %v669_v12 = vsub.f32 %v608_v0, %v6172_v3  ;;  %749 = vmatpush.msra.mxu3 %v6172_v3  ;;  %v601_v36 = vld [vmem:[%s8386_s1 + $0x28] sm:$0xff]  ;;  %v6233_v39 = vand.u32 4294901760, %v605_v35  ;;  %v602_v0 = vld [vmem:[%s8386_s1 + $0x30] sm:$0xff]  ;;  %s5559_s26 = sshll.u32 %s6045_s25, 4 }
  0x4f   : > { %v594_v7 = vld [vmem:[%s527_s12] sm:$0xff]  ;;  %v6181_v9 = vand.u32 4294901760, %v596_v6  ;;  %v675_v13 = vsub.f32 %v604_v1, %v6174_v4  ;;  %v6204_v23 = vsub.f32 %v617_v11, %v6195_v17  ;;  %v6235_v40 = vand.u32 4294901760, %v601_v36  ;;  %v597_v41 = vld [vmem:[%s8386_s1 + $0x8] sm:$0xff]  ;;  %s8463_s0 = sld [smem:[#allocation31_spill]]  ;;  %s591_s30 = scalar_lea.vmem [#allocation10], %s5548_s7 }
  0x50   : > { %v614_v10 = vsel %vm612_vm0, %v594_v7, 0  ;;  %v681_v14 = vsub.f32 %v600_v2, %v6176_v5  ;;  %634 = vmatpush.msra.mxu0 %v6174_v4  ;;  %715 = vmatpush.msra.mxu2 %v669_v12  ;;  %v670_v18 = vand.u32 4294901760, %v669_v12  ;;  %v6244_v43 = vand.u32 4294901760, %v597_v41  ;;  %s5433_s16 = sshll.u32 %s591_s30, 4  ;;  %s5421_s23 = scalar_lea.sflag [#allocation4], %s6145_s10  ;;  %s5434_s16 = int_to_ptr.vmem [resolvable:$true] %s5433_s16 }
  0x51   : > { %v6190_v15 = vand.u32 4294901760, %v614_v10  ;;  %v6193_v16 = vsub.f32 %v596_v6, %v6181_v9  ;;  %v676_v20 = vand.u32 4294901760, %v675_v13  ;;  %751 = vmatpush.msra.mxu3 %v6174_v4  ;;  %v6212_v28 = vand.u32 4294901760, %v6204_v23 }
  0x52   : > { %v682_v21 = vand.u32 4294901760, %v681_v14  ;;  %636 = vmatpush.msra.mxu0 %v6176_v5  ;;  %718 = vmatpush.msra.mxu2 %v675_v13  ;;  %v671_v24 = vsub.f32 %v669_v12, %v670_v18  ;;  %v885_v45 = vsub.f32 %v609_v34, %v6231_v38  ;;  %v891_v46 = vsub.f32 %v605_v35, %v6233_v39 }
  0x53   : > { %v6199_v19 = vsub.f32 %v614_v10, %v6190_v15  ;;  %v688_v22 = vand.u32 4294901760, %v6193_v16  ;;  %v677_v26 = vsub.f32 %v675_v13, %v676_v20  ;;  %753 = vmatpush.msra.mxu3 %v6176_v5  ;;  %v650_v42 = vsub.f32 %v6204_v23, %v6212_v28 }
  0x54   : > { %v683_v27 = vsub.f32 %v681_v14, %v682_v21  ;;  %638 = vmatpush.msra.mxu0 %v6181_v9  ;;  %v672_v29 = vand.u32 4294901760, %v671_v24  ;;  %721 = vmatpush.msra.mxu2 %v681_v14  ;;  %v897_v47 = vsub.f32 %v601_v36, %v6235_v40  ;;  %v903_v48 = vsub.f32 %v597_v41, %v6244_v43 }
  0x55   : > { %v6208_v25 = vand.u32 4294901760, %v6199_v19  ;;  %v678_v31 = vand.u32 4294901760, %v677_v26  ;;  %v689_v32 = vsub.f32 %v6193_v16, %v688_v22  ;;  %755 = vmatpush.msra.mxu3 %v6181_v9  ;;  %v886_v49 = vand.u32 4294901760, %v885_v45  ;;  %s5432_s19 = scalar_lea.hbm %s8463_s0, %s5559_s26  ;;  %s5876_s18 = scalar_lea.hbm %s8463_s0, 32 }
  0x56   : > { %v684_v33 = vand.u32 4294901760, %v683_v27  ;;  %784 = vmatpush.msrb.mxu0 %v670_v18  ;;  %673 = vmatpush.msra.mxu1 %v672_v29  ;;  %v892_v50 = vand.u32 4294901760, %v891_v46  ;;  %v898_v51 = vand.u32 4294901760, %v897_v47  ;;  %v904_v52 = vand.u32 4294901760, %v903_v48  ;;  %v611_v27 = vld [vmem:[%s8386_s1 + $0x78] sm:$0xff]  ;;  %s5435_s25 = sshll.u32 %s5432_s19, 4  ;;  %s5436_s25 = int_to_ptr.hbm [resolvable:$true] %s5435_s25 }
  0x57   : > { %v642_v30 = vsub.f32 %v6199_v19, %v6208_v25  ;;  %724 = vmatpush.msra.mxu2 %v6193_v16  ;;  %759 = vmatmul.f32.vlgmr.msra.gmra.mxu3 %v6208_v25  ;;  %v690_v44 = vand.u32 4294901760, %v689_v32  ;;  %v6253_v53 = vand.u32 4294901760, %v650_v42  ;;  %v887_v54 = vsub.f32 %v885_v45, %v886_v49  ;;  %s5870_s12 = sshra.s32 %s5436_s25, 4  ;;  %s5871_s12 = int_to_ptr.hbm [resolvable:$true] %s5870_s12 }
  0x58   : > { %727 = vmatmul.f32.vlgmr.msra.gmra.mxu2 %v6199_v19  ;;  %679 = vmatpush.msra.mxu1 %v678_v31  ;;  %v893_v55 = vsub.f32 %v891_v46, %v892_v50  ;;  %v899_v56 = vsub.f32 %v897_v47, %v898_v51  ;;  %v905_v59 = vsub.f32 %v903_v48, %v904_v52  ;;  %v1063_v1 = vand.u32 4294901760, %v610_v62  ;;  %s5872_s5 = scalar_lea.hbm %s5871_s12, 16  ;;  %p5877_p11 = scmp.lt.s32.totalorder %s5871_s12, %s8463_s0 }
  0x59   : > { %v6228_v37 = vand.u32 4294901760, %v642_v30  ;;  %788 = vmatpush.msrb.mxu0 %v676_v20  ;;  %848 = vmatpush.msrb.mxu2 %v6231_v38  ;;  %v888_v57 = vand.u32 4294901760, %v887_v54  ;;  %v6276_v2 = vand.u32 4294901760, %v606_v63  ;;  %v1279_v29 = vand.u32 4294901760, %v611_v27  ;;  %v607_v30 = vld [vmem:[%s8386_s1 + $0x58] sm:$0xff]  ;;  %p5873_p1 = scmp.ne.s32.totalorder %s5871_s12, %s5872_s5  ;;  %p5878_p9 = scmp.lt.s32.totalorder %s5876_s18, %s5872_s5 }
  0x5a   : > { %685 = vmatpush.msra.mxu1 %v684_v33  ;;  %v894_v58 = vand.u32 4294901760, %v893_v55  ;;  %v900_v60 = vand.u32 4294901760, %v899_v56  ;;  %v906_v61 = vand.u32 4294901760, %v905_v59  ;;  %v1101_v6 = vsub.f32 %v610_v62, %v1063_v1  ;;  %v603_v33 = vld [vmem:[%s8386_s1 + $0x38] sm:$0xff] }
  0x5b   : > { %644 = vmatmul.f32.vlgmr.msra.gmra.mxu0 %v6228_v37  ;;  %850 = vmatpush.msrb.mxu2 %v6233_v39  ;;  %v1107_v7 = vsub.f32 %v606_v63, %v6276_v2  ;;  %v1317_v31 = vsub.f32 %v611_v27, %v1279_v29  ;;  %v1281_v32 = vand.u32 4294901760, %v607_v30  ;;  %v1283_v35 = vand.u32 4294901760, %v603_v33  ;;  %p5874_p4 = pnand %p5873_p1, %p6115_p3  ;;  %p5879_p2 = por %p5878_p9, %p5877_p11 }
  0x5c   : > { %792 = vmatpush.msrb.mxu0 %v682_v21  ;;  %691 = vmatpush.msra.mxu1 %v690_v44  ;;  %v1102_v10 = vand.u32 4294901760, %v1101_v6 }
  0x5d   : > { %693 = vmatmul.f32.vlgmr.msra.gmra.mxu1 %v6190_v15  ;;  %852 = vmatpush.msrb.mxu2 %v6235_v40  ;;  %v1108_v11 = vand.u32 4294901760, %v1107_v7  ;;  %v1318_v34 = vand.u32 4294901760, %v1317_v31  ;;  %v1323_v36 = vsub.f32 %v607_v30, %v1281_v32  ;;  %v1329_v42 = vsub.f32 %v603_v33, %v1283_v35  ;;  %p5875_p8 = pneg %p5874_p4 }
  0x5e   : > { %796 = vmatpush.msrb.mxu0 %v688_v22  ;;  %819 = vmatpush.msrb.mxu1 %v6172_v3  ;;  %v6278_v3 = vand.u32 4294901760, %v602_v0  ;;  %v1103_v13 = vsub.f32 %v1101_v6, %v1102_v10 }
  0x5f   : > { %765 = vmatmul.f32.gmra.mxu3 %v6212_v28  ;;  %854 = vmatpush.msrb.mxu2 %v6244_v43  ;;  %v1109_v14 = vsub.f32 %v1107_v7, %v1108_v11  ;;  %p5880_p10 = pnand %p5879_p2, %p5875_p8 }
  0x60   : > { %732 = vmatmul.f32.gmra.mxu2 %v6204_v23  ;;  %821 = vmatpush.msrb.mxu1 %v6174_v4  ;;  %v598_v4 = vld [vmem:[%s8386_s1 + $0x10] sm:$0xff]  ;;  %v1113_v8 = vsub.f32 %v602_v0, %v6278_v3  ;;  %v1104_v18 = vand.u32 4294901760, %v1103_v13 }
  0x61   : > { %889 = vmatpush.msrb.mxu3 %v888_v57  ;;  %1000 = vmatpush.msra.mxu2 %v886_v49  ;;  %v1110_v21 = vand.u32 4294901760, %v1109_v14 }
  0x62   : > { %823 = vmatpush.msrb.mxu1 %v6176_v5  ;;  %931 = vmatpush.msra.mxu0 %v885_v45  ;;  %v6284_v5 = vand.u32 4294901760, %v598_v4  ;;  %v1114_v12 = vand.u32 4294901760, %v1113_v8  ;;  %v1330_v45 = vand.u32 4294901760, %v1329_v42 }
  0x63   : > { %652 = vmatmul.f32.gmra.mxu0 %v6253_v53  ;;  %895 = vmatpush.msrb.mxu3 %v894_v58 }
  0x64   : > { %825 = vmatpush.msrb.mxu1 %v6181_v9  ;;  %1004 = vmatpush.msra.mxu2 %v892_v50  ;;  %v1119_v9 = vsub.f32 %v598_v4, %v6284_v5  ;;  %v1115_v20 = vsub.f32 %v1113_v8, %v1114_v12 }
  0x65   : > { %697 = vmatmul.f32.gmra.mxu1 %v6195_v17  ;;  %901 = vmatpush.msrb.mxu3 %v900_v60 }
  0x66   : > { %934 = vmatpush.msra.mxu0 %v891_v46  ;;  %965 = vmatpush.msra.mxu1 %v6231_v38  ;;  %v1120_v16 = vand.u32 4294901760, %v1119_v9  ;;  %v1116_v24 = vand.u32 4294901760, %v1115_v20 }
  0x67   : > { %907 = vmatpush.msrb.mxu3 %v906_v61  ;;  %1008 = vmatpush.msra.mxu2 %v898_v51  ;;  %v1500_v61 = vld [vmem:[%s8396_s11 + $0x8] sm:$0xff] }
  0x68   : > { %860 = vmatmul.f32.vlgmr.msrb.gmra.mxu2 %v6228_v37  ;;  %909 = vmatmul.f32.vlgmr.msrb.gmra.mxu3 %v6190_v15  ;;  %v1121_v22 = vsub.f32 %v1119_v9, %v1120_v16 }
  0x69   : > { %1035 = vmatpush.msra.mxu3 %v6231_v38  ;;  %937 = vmatpush.msra.mxu0 %v897_v47  ;;  %v599_v38 = vld [vmem:[%s8386_s1 + $0x18] sm:$0xff] }
  0x6a   : > { %967 = vmatpush.msra.mxu1 %v6233_v39  ;;  %1012 = vmatpush.msra.mxu2 %v904_v52  ;;  %v1122_v26 = vand.u32 4294901760, %v1121_v22  ;;  %v1285_v41 = vand.u32 4294901760, %v599_v38 }
  0x6b   : > { %798 = vmatmul.f32.vlgmr.msrb.gmra.mxu0 %v6190_v15  ;;  %1037 = vmatpush.msra.mxu3 %v6233_v39  ;;  %v1319_v39 = vsub.f32 %v1317_v31, %v1318_v34 }
  0x6c   : > { %940 = vmatpush.msra.mxu0 %v903_v48  ;;  %969 = vmatpush.msra.mxu1 %v6235_v40  ;;  %v1335_v46 = vsub.f32 %v599_v38, %v1285_v41  ;;  %v1331_v48 = vsub.f32 %v1329_v42, %v1330_v45 }
  0x6d   : > { %827 = vmatmul.f32.vlgmr.msrb.gmra.mxu1 %v6190_v15  ;;  %1039 = vmatpush.msra.mxu3 %v6235_v40  ;;  %v1324_v40 = vand.u32 4294901760, %v1323_v36 }
  0x6e   : > { %971 = vmatpush.msra.mxu1 %v6244_v43  ;;  %1064 = vmatpush.msrb.mxu0 %v1063_v1  ;;  %v1336_v49 = vand.u32 4294901760, %v1335_v46  ;;  %v1332_v50 = vand.u32 4294901760, %v1331_v48 }
  0x6f   : > { %1041 = vmatpush.msra.mxu3 %v6244_v43  ;;  %1147 = vmatpush.msrb.mxu2 %v1101_v6  ;;  %v1320_v43 = vand.u32 4294901760, %v1319_v39  ;;  %v1325_v44 = vsub.f32 %v1323_v36, %v1324_v40 }
  0x70   : > { %868 = vmatmul.f32.gmra.mxu2 %v6253_v53  ;;  %913 = vmatmul.f32.gmra.mxu3 %v6195_v17  ;;  %v1337_v51 = vsub.f32 %v1335_v46, %v1336_v49 }
  0x71   : > { %1066 = vmatpush.msrb.mxu0 %v6276_v2  ;;  %1105 = vmatpush.msrb.mxu1 %v1104_v18  ;;  %v1326_v47 = vand.u32 4294901760, %v1325_v44 }
  0x72   : > { %1181 = vmatpush.msrb.mxu3 %v1063_v1  ;;  %1150 = vmatpush.msrb.mxu2 %v1107_v7  ;;  %v1338_v52 = vand.u32 4294901760, %v1337_v51 }
  0x73   : > { %802 = vmatmul.f32.gmra.mxu0 %v6195_v17  ;;  %1111 = vmatpush.msrb.mxu1 %v1110_v21 }
  0x74   : > { %1068 = vmatpush.msrb.mxu0 %v6278_v3  ;;  %1183 = vmatpush.msrb.mxu3 %v6276_v2 }
  0x75   : > { %831 = vmatmul.f32.gmra.mxu1 %v6195_v17  ;;  %1153 = vmatpush.msrb.mxu2 %v1113_v8 }
  0x76   : > { %1070 = vmatpush.msrb.mxu0 %v6284_v5  ;;  %1117 = vmatpush.msrb.mxu1 %v1116_v24 }
  0x77   : > { %1185 = vmatpush.msrb.mxu3 %v6278_v3  ;;  %1156 = vmatpush.msrb.mxu2 %v1119_v9 }
  0x78   : > { %1014 = vmatmul.f32.vlgmr.msra.gmra.mxu2 %v6190_v15  ;;  %1043 = vmatmul.f32.vlgmr.msra.gmra.mxu3 %v6190_v15 }
  0x79   : > { %1123 = vmatpush.msrb.mxu1 %v1122_v26  ;;  %1187 = vmatpush.msrb.mxu3 %v6284_v5 }
  0x7a   : > { %1280 = vmatpush.msra.mxu2 %v1279_v29 }
  0x7b   : > { %943 = vmatmul.f32.vlgmr.msra.gmra.mxu0 %v6199_v19  ;;  %1321 = vmatpush.msra.mxu3 %v1320_v43 }
  0x7c   : > { %1216 = vmatpush.msra.mxu0 %v1102_v10  ;;  %1282 = vmatpush.msra.mxu2 %v1281_v32  ;;  %v1501_v10 = vld [vmem:[%s8396_s11 + $0x10] sm:$0xff] }
  0x7d   : > { %975 = vmatmul.f32.vlgmr.msra.gmra.mxu1 %v6208_v25  ;;  %1327 = vmatpush.msra.mxu3 %v1326_v47  ;;  %v1523_v20 = vsel %vm1515_vm1, %v1501_v10, 0  ;;  %v1503_v47 = vld [vmem:[%s8396_s11 + $0x20] sm:$0xff] }
  0x7e   : > { %1220 = vmatpush.msra.mxu0 %v1108_v11  ;;  %1251 = vmatpush.msra.mxu1 %v1063_v1 }
  0x7f   : > { %1284 = vmatpush.msra.mxu2 %v1283_v35  ;;  %1333 = vmatpush.msra.mxu3 %v1332_v50 }
  0x80   : > { %1224 = vmatpush.msra.mxu0 %v1114_v12  ;;  %1018 = vmatmul.f32.gmra.mxu2 %v6195_v17 }
  0x81   : > { %1047 = vmatmul.f32.gmra.mxu3 %v6195_v17  ;;  %1253 = vmatpush.msra.mxu1 %v6276_v2 }
  0x82   : > { %1228 = vmatpush.msra.mxu0 %v1120_v16  ;;  %1286 = vmatpush.msra.mxu2 %v1285_v41 }
  0x83   : > { %948 = vmatmul.f32.gmra.mxu0 %v6204_v23  ;;  %1255 = vmatpush.msra.mxu1 %v6278_v3  ;;  %v1520_v3 = vsel %vm1515_vm1, %v1500_v61, 0 }
  0x84   : > { %1339 = vmatpush.msra.mxu3 %v1338_v52  ;;  %v6367_v7 = vand.u32 4294901760, %v1520_v3 }
  0x85   : > { %981 = vmatmul.f32.gmra.mxu1 %v6212_v28 }
  0x86   : > { %1257 = vmatpush.msra.mxu1 %v6284_v5  ;;  %v1591_v14 = vsub.f32 %v1520_v3, %v6367_v7 }
  0x88   : > { %1159 = vmatmul.f32.vlgmr.msrb.gmra.mxu2 %v6199_v19  ;;  %v1592_v27 = vand.u32 4294901760, %v1591_v14 }
  0x89   : > { %1191 = vmatmul.f32.vlgmr.msrb.gmra.mxu3 %v6208_v25  ;;  %1432 = vmatpush.msrb.mxu2 %v1318_v34 }
  0x8a   : > { %1467 = vmatpush.msrb.mxu3 %v1279_v29  ;;  %v1593_v34 = vsub.f32 %v1591_v14, %v1592_v27 }
  0x8b   : > { %1076 = vmatmul.f32.vlgmr.msrb.gmra.mxu0 %v6228_v37  ;;  %1436 = vmatpush.msrb.mxu2 %v1324_v40 }
  0x8c   : > { %1363 = vmatpush.msrb.mxu0 %v1317_v31  ;;  %1469 = vmatpush.msrb.mxu3 %v1281_v32  ;;  %v1594_v43 = vand.u32 4294901760, %v1593_v34 }
  0x8d   : > { %1125 = vmatmul.f32.vlgmr.msrb.gmra.mxu1 %v6190_v15  ;;  %1440 = vmatpush.msrb.mxu2 %v1330_v45 }
  0x8e   : > { %1397 = vmatpush.msrb.mxu1 %v1279_v29  ;;  %1366 = vmatpush.msrb.mxu0 %v1323_v36  ;;  %v6374_v29 = vand.u32 4294901760, %v1523_v20 }
  0x8f   : > { %1444 = vmatpush.msrb.mxu2 %v1336_v49  ;;  %1471 = vmatpush.msrb.mxu3 %v1283_v35 }
  0x90   : > { %1164 = vmatmul.f32.gmra.mxu2 %v6204_v23  ;;  %1399 = vmatpush.msrb.mxu1 %v1281_v32  ;;  %v1502_v32 = vld [vmem:[%s8396_s11 + $0x18] sm:$0xff] }
  0x91   : > { %1197 = vmatmul.f32.gmra.mxu3 %v6212_v28  ;;  %1369 = vmatpush.msrb.mxu0 %v1329_v42  ;;  %v1526_v39 = vsel %vm1515_vm1, %v1502_v32, 0 }
  0x92   : > { %1401 = vmatpush.msrb.mxu1 %v1283_v35  ;;  %1473 = vmatpush.msrb.mxu3 %v1285_v41  ;;  %v1599_v35 = vsub.f32 %v1523_v20, %v6374_v29  ;;  %v6381_v45 = vand.u32 4294901760, %v1526_v39 }
  0x93   : > { %1084 = vmatmul.f32.gmra.mxu0 %v6253_v53 }
  0x94   : > { %1403 = vmatpush.msrb.mxu1 %v1285_v41  ;;  %1372 = vmatpush.msrb.mxu0 %v1335_v46  ;;  %v1600_v44 = vand.u32 4294901760, %v1599_v35  ;;  %v1607_v50 = vsub.f32 %v1526_v39, %v6381_v45 }
  0x95   : > { %1129 = vmatmul.f32.gmra.mxu1 %v6195_v17 }
  0x96   : > { %v1601_v49 = vsub.f32 %v1599_v35, %v1600_v44 }
  0x98   : > { %1292 = vmatmul.f32.vlgmr.msra.gmra.mxu2 %v6228_v37 }
  0x99   : > { %1341 = vmatmul.f32.vlgmr.msra.gmra.mxu3 %v6190_v15 }
  0x9b   : > { %1230 = vmatmul.f32.vlgmr.msra.gmra.mxu0 %v6190_v15 }
  0x9d   : > { %1259 = vmatmul.f32.vlgmr.msra.gmra.mxu1 %v6190_v15 }
  0xa0   : > { %1300 = vmatmul.f32.gmra.mxu2 %v6253_v53 }
  0xa1   : > { %1345 = vmatmul.f32.gmra.mxu3 %v6195_v17 }
  0xa3   : > { %1234 = vmatmul.f32.gmra.mxu0 %v6195_v17 }
  0xa5   : > { %1263 = vmatmul.f32.gmra.mxu1 %v6195_v17 }
  0xa8   : > { %1446 = vmatmul.f32.vlgmr.msrb.gmra.mxu2 %v6190_v15 }
  0xa9   : > { %1475 = vmatmul.f32.vlgmr.msrb.gmra.mxu3 %v6190_v15 }
  0xab   : > { %1375 = vmatmul.f32.vlgmr.msrb.gmra.mxu0 %v6199_v19 }
  0xad   : > { %1407 = vmatmul.f32.vlgmr.msrb.gmra.mxu1 %v6208_v25 }
  0xb0   : > { %1450 = vmatmul.f32.gmra.mxu2 %v6195_v17 }
  0xb1   : > { %1479 = vmatmul.f32.gmra.mxu3 %v6195_v17 }
  0xb3   : > { %1380 = vmatmul.f32.gmra.mxu0 %v6204_v23  ;;  %v1499_v23 = vld [vmem:[%s8396_s11] sm:$0xff] }
  0xb4   : > { %v1517_v57 = vsel %vm1515_vm1, %v1499_v23, 0  ;;  %v1608_v23 = vand.u32 4294901760, %v1607_v50 }
  0xb5   : > { %1413 = vmatmul.f32.gmra.mxu1 %v6212_v28  ;;  %v6360_v58 = vand.u32 4294901760, %v1517_v57 }
  0xb7   : > { %v1583_v0 = vsub.f32 %v1517_v57, %v6360_v58 }
  0xb9   : > { %v1584_v6 = vand.u32 4294901760, %v1583_v0 }
  0xbb   : > { %v1585_v13 = vsub.f32 %v1583_v0, %v1584_v6 }
  0xbd   : > { %v1586_v26 = vand.u32 4294901760, %v1585_v13 }
  0xd8   : > { %v645_v19 = vpop.f32.mrf.mxu0 }
  0xda   : > { %v694_v25 = vpop.f32.mrf.mxu1  ;;  %v760_v54 = vpop.f32.mrf.mxu3 }
  0xdb   : > { %v728_v53 = vpop.f32.mrf.mxu2  ;;  %v695_v28 = vadd.f32 %v694_v25, %v645_v19  ;;  %v1529_v19 = vsel %vm1515_vm1, %v1503_v47, 0 }
  0xdd   : > { %v729_v56 = vadd.f32 %v728_v53, %v695_v28  ;;  %v1602_v28 = vand.u32 4294901760, %v1601_v49 }
  0xdf   : > { %v761_v59 = vadd.f32 %v760_v54, %v729_v56  ;;  %v6389_v54 = vand.u32 4294901760, %v1529_v19  ;;  %v1504_v56 = vld [vmem:[%s8396_s11 + $0x28] sm:$0xff] }
  0xe0   : > { %v653_v37 = vpop.f32.mrf.mxu0 }
  0xe2   : > { %v698_v55 = vpop.f32.mrf.mxu1  ;;  %v766_v4 = vpop.f32.mrf.mxu3 }
  0xe3   : > { %v699_v60 = vadd.f32 %v698_v55, %v653_v37  ;;  %v733_v17 = vpop.f32.mrf.mxu2 }
  0xe5   : > { %v734_v1 = vadd.f32 %v733_v17, %v699_v60  ;;  %v1532_v60 = vsel %vm1515_vm1, %v1504_v56, 0 }
  0xe7   : > { %v767_v8 = vadd.f32 %v766_v4, %v734_v1 }
  0xe8   : > { %v799_v15 = vpop.f32.mrf.mxu0 }
  0xe9   : > { %v800_v62 = vadd.f32 %v799_v15, %v761_v59  ;;  %v1609_v15 = vsub.f32 %v1607_v50, %v1608_v23  ;;  %v1615_v59 = vsub.f32 %v1529_v19, %v6389_v54 }
  0xea   : > { %v828_v63 = vpop.f32.mrf.mxu1 }
  0xeb   : > { %v829_v2 = vadd.f32 %v828_v63, %v800_v62  ;;  %v861_v21 = vpop.f32.mrf.mxu2  ;;  %v910_v22 = vpop.f32.mrf.mxu3  ;;  %v1610_v3 = vand.u32 4294901760, %v1609_v15  ;;  %v1616_v4 = vand.u32 4294901760, %v1615_v59 }
  0xec   : > { %v911_v48 = vadd.f32 %v910_v22, %v861_v21 }
  0xed   : > { %v1580_v9 = vand.u32 4294901760, %v829_v2 }
  0xef   : > { %v1732_v16 = vsub.f32 %v829_v2, %v1580_v9 }
  0xf0   : > { %v803_v5 = vpop.f32.mrf.mxu0 }
  0xf1   : > { %v804_v11 = vadd.f32 %v803_v5, %v767_v8  ;;  %v1733_v31 = vand.u32 4294901760, %v1732_v16  ;;  %v1505_v8 = vld [vmem:[%s8396_s11 + $0x30] sm:$0xff] }
  0xf2   : > { %v832_v12 = vpop.f32.mrf.mxu1  ;;  %v1535_v13 = vsel %vm1515_vm1, %v1505_v8, 0 }
  0xf3   : > { %v833_v18 = vadd.f32 %v832_v12, %v804_v11  ;;  %v1734_v38 = vsub.f32 %v1732_v16, %v1733_v31  ;;  %v869_v40 = vpop.f32.mrf.mxu2  ;;  %v914_v41 = vpop.f32.mrf.mxu3  ;;  %v1617_v12 = vsub.f32 %v1615_v59, %v1616_v4  ;;  %v6405_v22 = vand.u32 4294901760, %v1535_v13 }
  0xf4   : > { %v915_v55 = vadd.f32 %v914_v41, %v869_v40  ;;  %v1507_v40 = vld [vmem:[%s8396_s11 + $0x40] sm:$0xff] }
  0xf5   : > { %v1578_v24 = vand.u32 4294901760, %v833_v18  ;;  %v1735_v46 = vand.u32 4294901760, %v1734_v38  ;;  %v1618_v21 = vand.u32 4294901760, %v1617_v12 }
  0xf7   : > { %v1726_v30 = vsub.f32 %v833_v18, %v1578_v24  ;;  %1579 = vmatpush.msra.mxu0 %v1578_v24  ;;  %1918 = vmatpush.msra.mxu3 %v1578_v24 }
  0xf8   : > { %v944_v51 = vpop.f32.mrf.mxu0 }
  0xf9   : > { %1581 = vmatpush.msra.mxu0 %v1580_v9  ;;  %1818 = vmatpush.msra.mxu2 %v1726_v30  ;;  %v1727_v33 = vand.u32 4294901760, %v1726_v30  ;;  %v945_v53 = vadd.f32 %v944_v51, %v911_v48 }
  0xfa   : > { %1920 = vmatpush.msra.mxu3 %v1580_v9  ;;  %1587 = vmatmul.f32.vlgmr.msra.gmra.mxu0 %v1586_v26  ;;  %v976_v52 = vpop.f32.mrf.mxu1  ;;  %v1506_v26 = vld [vmem:[%s8396_s11 + $0x38] sm:$0xff] }
  0xfb   : > { %1821 = vmatpush.msra.mxu2 %v1732_v16  ;;  %2035 = vmatpush.msrb.mxu0 %v1727_v33  ;;  %v1728_v36 = vsub.f32 %v1726_v30, %v1727_v33  ;;  %v1015_v25 = vpop.f32.mrf.mxu2  ;;  %v1044_v37 = vpop.f32.mrf.mxu3  ;;  %v977_v57 = vadd.f32 %v976_v52, %v945_v53  ;;  %v1538_v32 = vsel %vm1515_vm1, %v1506_v26, 0 }
  0xfc   : > { %1824 = vmatmul.f32.vlgmr.msra.gmra.mxu2 %v1583_v0  ;;  %1924 = vmatmul.f32.vlgmr.msra.gmra.mxu3 %v1584_v6  ;;  %v6397_v0 = vand.u32 4294901760, %v1532_v60 }
  0xfd   : > { %2039 = vmatpush.msrb.mxu0 %v1733_v31  ;;  %v1729_v42 = vand.u32 4294901760, %v1728_v36  ;;  %v1016_v1 = vadd.f32 %v1015_v25, %v977_v57  ;;  %v1631_v31 = vsub.f32 %v1535_v13, %v6405_v22  ;;  %v6413_v36 = vand.u32 4294901760, %v1538_v32 }
  0xff   : > { %1730 = vmatpush.msra.mxu1 %v1729_v42  ;;  %v1045_v10 = vadd.f32 %v1044_v37, %v1016_v1 }
 0x100   : > { %v949_v17 = vpop.f32.mrf.mxu0 }
 0x101   : > { %1736 = vmatpush.msra.mxu1 %v1735_v46  ;;  %v950_v62 = vadd.f32 %v949_v17, %v915_v55  ;;  %v2236_v18 = vand.u32 4294901760, %v1045_v10  ;;  %v1541_v46 = vsel %vm1515_vm1, %v1507_v40, 0 }
 0x102   : > { %1595 = vmatmul.f32.gmra.mxu0 %v1594_v43  ;;  %1738 = vmatmul.f32.vlgmr.msra.gmra.mxu1 %v6360_v58  ;;  %v982_v61 = vpop.f32.mrf.mxu1  ;;  %v1639_v43 = vsub.f32 %v1538_v32, %v6413_v36  ;;  %v6421_v49 = vand.u32 4294901760, %v1541_v46 }
 0x103   : > { %2120 = vmatpush.msrb.mxu1 %v1578_v24  ;;  %v1019_v63 = vpop.f32.mrf.mxu2  ;;  %v983_v2 = vadd.f32 %v982_v61, %v950_v62  ;;  %v2388_v30 = vsub.f32 %v1045_v10, %v2236_v18 }
 0x104   : > { %1829 = vmatmul.f32.gmra.mxu2 %v1591_v14  ;;  %1930 = vmatmul.f32.gmra.mxu3 %v1592_v27  ;;  %v1048_v5 = vpop.f32.mrf.mxu3  ;;  %v1640_v48 = vand.u32 4294901760, %v1639_v43  ;;  %v1647_v52 = vsub.f32 %v1541_v46, %v6421_v49 }
 0x105   : > { %2122 = vmatpush.msrb.mxu1 %v1580_v9  ;;  %v1020_v6 = vadd.f32 %v1019_v63, %v983_v2  ;;  %v1623_v9 = vsub.f32 %v1532_v60, %v6397_v0  ;;  %v2389_v39 = vand.u32 4294901760, %v2388_v30  ;;  %v1510_v60 = vld [vmem:[%s8396_s11 + $0x58] sm:$0xff] }
 0x106   : > { %v1641_v51 = vsub.f32 %v1639_v43, %v1640_v48  ;;  %v1648_v37 = vand.u32 4294901760, %v1647_v52  ;;  %v1550_v62 = vsel %vm1515_vm1, %v1510_v60, 0 }
 0x107   : > { %v1049_v11 = vadd.f32 %v1048_v5, %v1020_v6  ;;  %v1624_v16 = vand.u32 4294901760, %v1623_v9  ;;  %v2390_v41 = vsub.f32 %v2388_v30, %v2389_v39 }
 0x108   : > { %v1642_v25 = vand.u32 4294901760, %v1641_v51  ;;  %v1077_v63 = vpop.f32.mrf.mxu0 }
 0x109   : > { %v2234_v14 = vand.u32 4294901760, %v1049_v11  ;;  %v1625_v27 = vsub.f32 %v1623_v9, %v1624_v16 }
 0x10a   : > { %1603 = vmatmul.f32.gmra.mxu0 %v1602_v28  ;;  %1742 = vmatmul.f32.gmra.mxu1 %v6367_v7  ;;  %v1509_v28 = vld [vmem:[%s8396_s11 + $0x50] sm:$0xff] }
 0x10b   : > { %v2382_v20 = vsub.f32 %v1049_v11, %v2234_v14  ;;  %2235 = vmatpush.xpose.msrb.mxu2 %v2234_v14  ;;  %2574 = vmatpush.xpose.msra.mxu1 %v2234_v14  ;;  %v1626_v34 = vand.u32 4294901760, %v1625_v27  ;;  %v1547_v56 = vsel %vm1515_vm1, %v1509_v28, 0 }
 0x10c   : > { %1834 = vmatmul.f32.gmra.mxu2 %v1599_v35  ;;  %1936 = vmatmul.f32.gmra.mxu3 %v1600_v44  ;;  %v1632_v35 = vand.u32 4294901760, %v1631_v31  ;;  %v2391_v44 = vand.u32 4294901760, %v2390_v41  ;;  %v1192_v41 = vpop.f32.mrf.mxu3 }
 0x10d   : > { %2474 = vmatpush.xpose.msra.mxu0 %v2382_v20  ;;  %v2383_v24 = vand.u32 4294901760, %v2382_v20 }
 0x10e   : > { %v1633_v42 = vsub.f32 %v1631_v31, %v1632_v35 }
 0x10f   : > { %2237 = vmatpush.xpose.msrb.mxu2 %v2236_v18  ;;  %2576 = vmatpush.xpose.msra.mxu1 %v2236_v18  ;;  %v2384_v33 = vsub.f32 %v2382_v20, %v2383_v24 }
 0x110   : > { %v1634_v47 = vand.u32 4294901760, %v1633_v42  ;;  %v1085_v13 = vpop.f32.mrf.mxu0  ;;  %v1514_v42 = vld [vmem:[%s8396_s11 + $0x78] sm:$0xff] }
 0x111   : > { %2477 = vmatpush.xpose.msra.mxu0 %v2388_v30  ;;  %v2385_v38 = vand.u32 4294901760, %v2384_v33  ;;  %v1513_v30 = vld [vmem:[%s8396_s11 + $0x70] sm:$0xff] }
 0x112   : > { %1611 = vmatmul.f32.gmra.mxu0 %v1610_v3  ;;  %1746 = vmatmul.f32.gmra.mxu1 %v6374_v29  ;;  %v6445_v3 = vand.u32 4294901760, %v1550_v62 }
 0x113   : > { %2691 = vmatpush.xpose.msra.mxu2 %v2383_v24  ;;  %2386 = vmatpush.xpose.msrb.mxu3 %v2385_v38 }
 0x114   : > { %1839 = vmatmul.f32.gmra.mxu2 %v1607_v50  ;;  %1942 = vmatmul.f32.gmra.mxu3 %v1608_v23  ;;  %v1508_v50 = vld [vmem:[%s8396_s11 + $0x48] sm:$0xff]  ;;  %v1649_v23 = vsub.f32 %v1647_v52, %v1648_v37  ;;  %v1671_v6 = vsub.f32 %v1550_v62, %v6445_v3 }
 0x115   : > { %v1544_v19 = vsel %vm1515_vm1, %v1508_v50, 0 }
 0x116   : > { %v6429_v53 = vand.u32 4294901760, %v1544_v19  ;;  %v1650_v57 = vand.u32 4294901760, %v1649_v23  ;;  %v1672_v11 = vand.u32 4294901760, %v1671_v6  ;;  %v1198_v23 = vpop.f32.mrf.mxu3 }
 0x117   : > { %2695 = vmatpush.xpose.msra.mxu2 %v2389_v39  ;;  %2392 = vmatpush.xpose.msrb.mxu3 %v2391_v44 }
 0x118   : > { %v1655_v55 = vsub.f32 %v1544_v19, %v6429_v53 }
 0x11a   : > { %1619 = vmatmul.f32.gmra.mxu0 %v1618_v21  ;;  %1750 = vmatmul.f32.gmra.mxu1 %v6381_v45  ;;  %v1656_v15 = vand.u32 4294901760, %v1655_v55 }
 0x11b   : > { %2776 = vmatpush.xpose.msra.mxu3 %v2234_v14  ;;  %v1512_v14 = vld [vmem:[%s8396_s11 + $0x68] sm:$0xff] }
 0x11c   : > { %1844 = vmatmul.f32.gmra.mxu2 %v1615_v59  ;;  %1948 = vmatmul.f32.gmra.mxu3 %v1616_v4  ;;  %v6437_v59 = vand.u32 4294901760, %v1547_v56  ;;  %v1657_v17 = vsub.f32 %v1655_v55, %v1656_v15  ;;  %v1511_v4 = vld [vmem:[%s8396_s11 + $0x60] sm:$0xff]  ;;  %v1556_v20 = vsel %vm1515_vm1, %v1512_v14, 0 }
 0x11d   : > { %v1553_v8 = vsel %vm1515_vm1, %v1511_v4, 0  ;;  %v6461_v26 = vand.u32 4294901760, %v1556_v20 }
 0x11e   : > { %v1663_v61 = vsub.f32 %v1547_v56, %v6437_v59  ;;  %v1658_v1 = vand.u32 4294901760, %v1657_v17  ;;  %v6453_v12 = vand.u32 4294901760, %v1553_v8 }
 0x11f   : > { %2778 = vmatpush.xpose.msra.mxu3 %v2236_v18  ;;  %v1687_v33 = vsub.f32 %v1556_v20, %v6461_v26 }
 0x120   : > { %v1664_v2 = vand.u32 4294901760, %v1663_v61  ;;  %v1679_v18 = vsub.f32 %v1553_v8, %v6453_v12 }
 0x121   : > { %v1688_v39 = vand.u32 4294901760, %v1687_v33 }
 0x122   : > { %1627 = vmatmul.f32.gmra.mxu0 %v1626_v34  ;;  %1754 = vmatmul.f32.gmra.mxu1 %v6389_v54  ;;  %v1665_v5 = vsub.f32 %v1663_v61, %v1664_v2  ;;  %v1680_v24 = vand.u32 4294901760, %v1679_v18  ;;  %v1559_v34 = vsel %vm1515_vm1, %v1513_v30, 0 }
 0x123   : > { %v6469_v40 = vand.u32 4294901760, %v1559_v34  ;;  %v1689_v44 = vsub.f32 %v1687_v33, %v1688_v39 }
 0x124   : > { %1849 = vmatmul.f32.gmra.mxu2 %v1623_v9  ;;  %1954 = vmatmul.f32.gmra.mxu3 %v1624_v16  ;;  %v1126_v9 = vpop.f32.mrf.mxu1  ;;  %v1666_v10 = vand.u32 4294901760, %v1665_v5  ;;  %v1673_v16 = vsub.f32 %v1671_v6, %v1672_v11  ;;  %v1681_v32 = vsub.f32 %v1679_v18, %v1680_v24 }
 0x125   : > { %v1695_v46 = vsub.f32 %v1559_v34, %v6469_v40 }
 0x126   : > { %v1674_v21 = vand.u32 4294901760, %v1673_v16  ;;  %v1682_v38 = vand.u32 4294901760, %v1681_v32 }
 0x127   : > { %v1696_v19 = vand.u32 4294901760, %v1695_v46 }
 0x12a   : > { %1635 = vmatmul.f32.gmra.mxu0 %v1634_v47  ;;  %1758 = vmatmul.f32.gmra.mxu1 %v6397_v0 }
 0x12c   : > { %1854 = vmatmul.f32.gmra.mxu2 %v1631_v31  ;;  %1960 = vmatmul.f32.gmra.mxu3 %v1632_v35  ;;  %v1130_v27 = vpop.f32.mrf.mxu1  ;;  %v1231_v31 = vpop.f32.mrf.mxu0 }
 0x12d   : > { %v1160_v35 = vpop.f32.mrf.mxu2  ;;  %v1131_v50 = vadd.f32 %v1130_v27, %v1085_v13 }
 0x132   : > { %1643 = vmatmul.f32.gmra.mxu0 %v1642_v25  ;;  %1762 = vmatmul.f32.gmra.mxu1 %v6405_v22 }
 0x134   : > { %1859 = vmatmul.f32.gmra.mxu2 %v1639_v43  ;;  %1966 = vmatmul.f32.gmra.mxu3 %v1640_v48  ;;  %v1260_v43 = vpop.f32.mrf.mxu1  ;;  %v1235_v47 = vpop.f32.mrf.mxu0  ;;  %v1562_v48 = vsel %vm1515_vm1, %v1514_v42, 0 }
 0x135   : > { %v1165_v51 = vpop.f32.mrf.mxu2  ;;  %v6477_v25 = vand.u32 4294901760, %v1562_v48 }
 0x136   : > { %v1166_v28 = vadd.f32 %v1165_v51, %v1131_v50 }
 0x137   : > { %v1703_v56 = vsub.f32 %v1562_v48, %v6477_v25  ;;  %v6557_v48 = vpop.f32.mrf.mxu3 }
 0x138   : > { %v1199_v17 = vadd.f32 %v1198_v23, %v1166_v28 }
 0x139   : > { %v1704_v62 = vand.u32 4294901760, %v1703_v56 }
 0x13a   : > { %1651 = vmatmul.f32.gmra.mxu0 %v1650_v57  ;;  %1766 = vmatmul.f32.gmra.mxu1 %v6413_v36 }
 0x13c   : > { %1864 = vmatmul.f32.gmra.mxu2 %v1647_v52  ;;  %1972 = vmatmul.f32.gmra.mxu3 %v1648_v37  ;;  %v1690_v52 = vand.u32 4294901760, %v1689_v44  ;;  %v1127_v37 = vadd.f32 %v1126_v9, %v1077_v63  ;;  %v6481_v60 = vpop.f32.mrf.mxu0  ;;  %v1705_v63 = vsub.f32 %v1703_v56, %v1704_v62 }
 0x13e   : > { %v1161_v57 = vadd.f32 %v1160_v35, %v1127_v37  ;;  %v1706_v9 = vand.u32 4294901760, %v1705_v63 }
 0x142   : > { %1659 = vmatmul.f32.gmra.mxu0 %v1658_v1  ;;  %1770 = vmatmul.f32.gmra.mxu1 %v6421_v49  ;;  %v1193_v1 = vadd.f32 %v1192_v41, %v1161_v57 }
 0x144   : > { %1869 = vmatmul.f32.gmra.mxu2 %v1655_v55  ;;  %1978 = vmatmul.f32.gmra.mxu3 %v1656_v15  ;;  %v1697_v55 = vsub.f32 %v1695_v46, %v1696_v19  ;;  %v1264_v15 = vpop.f32.mrf.mxu1  ;;  %v1232_v4 = vadd.f32 %v1231_v31, %v1193_v1  ;;  %v6486_v8 = vpop.f32.mrf.mxu0 }
 0x145   : > { %8442 = vst [vmem:[#allocation20_spill] sm:$0xff] %v6486_v8 }
 0x14a   : > { %1667 = vmatmul.f32.gmra.mxu0 %v1666_v10  ;;  %1774 = vmatmul.f32.gmra.mxu1 %v6429_v53  ;;  %v1261_v10 = vadd.f32 %v1260_v43, %v1232_v4 }
 0x14c   : > { %1874 = vmatmul.f32.gmra.mxu2 %v1663_v61  ;;  %1984 = vmatmul.f32.gmra.mxu3 %v1664_v2  ;;  %v1698_v61 = vand.u32 4294901760, %v1697_v55  ;;  %v1236_v2 = vadd.f32 %v1235_v47, %v1199_v17  ;;  %v6484_v5 = vpop.f32.mrf.mxu1  ;;  %v6491_v13 = vand.u32 4294901760, %v1261_v10 }
 0x152   : > { %1675 = vmatmul.f32.gmra.mxu0 %v1674_v21  ;;  %1778 = vmatmul.f32.gmra.mxu1 %v6437_v59 }
 0x154   : > { %1879 = vmatmul.f32.gmra.mxu2 %v1671_v6  ;;  %1990 = vmatmul.f32.gmra.mxu3 %v1672_v11  ;;  %v1265_v6 = vadd.f32 %v1264_v15, %v1236_v2  ;;  %v6496_v16 = vpop.f32.mrf.mxu1 }
 0x155   : > { %8443 = vst [vmem:[#allocation21_spill] sm:$0xff] %v6496_v16 }
 0x156   : > { %v6488_v11 = vand.u32 4294901760, %v1265_v6 }
 0x158   : > { %v6494_v14 = vsub.f32 %v1265_v6, %v6488_v11 }
 0x15a   : > { %1683 = vmatmul.f32.gmra.mxu0 %v1682_v38  ;;  %1782 = vmatmul.f32.gmra.mxu1 %v6445_v3  ;;  %v8412_v21 = vand.u32 4294901760, %v6494_v14 }
 0x15c   : > { %1884 = vmatmul.f32.gmra.mxu2 %v1679_v18  ;;  %1996 = vmatmul.f32.gmra.mxu3 %v1680_v24  ;;  %v6499_v18 = vsub.f32 %v1261_v10, %v6491_v13  ;;  %v3280_v27 = vsub.f32 %v6494_v14, %v8412_v21 }
 0x15e   : > { %v8411_v24 = vand.u32 4294901760, %v6499_v18 }
 0x160   : > { %v3286_v32 = vsub.f32 %v6499_v18, %v8411_v24 }
 0x162   : > { %1691 = vmatmul.f32.gmra.mxu0 %v1690_v52  ;;  %1786 = vmatmul.f32.gmra.mxu1 %v6453_v12  ;;  %v3287_v34 = vand.u32 4294901760, %v3286_v32 }
 0x164   : > { %1889 = vmatmul.f32.gmra.mxu2 %v1687_v33  ;;  %2002 = vmatmul.f32.gmra.mxu3 %v1688_v39  ;;  %v3281_v33 = vand.u32 4294901760, %v3280_v27 }
 0x16a   : > { %1699 = vmatmul.f32.gmra.mxu0 %v1698_v61  ;;  %1790 = vmatmul.f32.gmra.mxu1 %v6461_v26 }
 0x16c   : > { %1894 = vmatmul.f32.gmra.mxu2 %v1695_v46  ;;  %2008 = vmatmul.f32.gmra.mxu3 %v1696_v19 }
 0x172   : > { %1707 = vmatmul.f32.gmra.mxu0 %v1706_v9  ;;  %1794 = vmatmul.f32.gmra.mxu1 %v6469_v40 }
 0x174   : > { %1899 = vmatmul.f32.gmra.mxu2 %v1703_v56  ;;  %2014 = vmatmul.f32.gmra.mxu3 %v1704_v62 }
 0x177   : > { %v6501_v20 = vpop.f32.mrf.mxu0 }
 0x17a   : > { %1798 = vmatmul.f32.gmra.mxu1 %v6477_v25  ;;  %2041 = vmatmul.f32.vlgmr.msrb.gmra.mxu0 %v6360_v58 }
 0x17b   : > { %3131 = vmatpush.msrb.mxu0 %v6488_v11 }
 0x17d   : > { %3133 = vmatpush.msrb.mxu0 %v6491_v13 }
 0x17f   : > { %v6512_v30 = vpop.f32.mrf.mxu0  ;;  %v6514_v31 = vpop.f32.mrf.mxu1 }
 0x182   : > { %2045 = vmatmul.f32.gmra.mxu0 %v6367_v7  ;;  %2124 = vmatmul.f32.vlgmr.msrb.gmra.mxu1 %v6360_v58 }
 0x183   : > { %3282 = vmatpush.msrb.mxu1 %v3281_v33 }
 0x185   : > { %3288 = vmatpush.msrb.mxu1 %v3287_v34 }
 0x187   : > { %v6521_v35 = vpop.f32.mrf.mxu0  ;;  %v6523_v38 = vpop.f32.mrf.mxu1 }
 0x188   : > { %v1744_v24 = vadd.f32 %v6523_v38, %v6512_v30 }
 0x18a   : > { %2049 = vmatmul.f32.gmra.mxu0 %v6374_v29  ;;  %2128 = vmatmul.f32.gmra.mxu1 %v6367_v7 }
 0x18f   : > { %v6527_v39 = vpop.f32.mrf.mxu0  ;;  %v6529_v41 = vpop.f32.mrf.mxu1 }
 0x192   : > { %2053 = vmatmul.f32.gmra.mxu0 %v6381_v45  ;;  %2132 = vmatmul.f32.gmra.mxu1 %v6374_v29  ;;  %v6551_v29 = vpop.f32.mrf.mxu2 }
 0x197   : > { %v6533_v58 = vpop.f32.mrf.mxu0  ;;  %v6535_v42 = vpop.f32.mrf.mxu1 }
 0x19a   : > { %2057 = vmatmul.f32.gmra.mxu0 %v6389_v54  ;;  %2136 = vmatmul.f32.gmra.mxu1 %v6381_v45  ;;  %v6565_v51 = vpop.f32.mrf.mxu2 }
 0x19f   : > { %v6539_v43 = vpop.f32.mrf.mxu0  ;;  %v6541_v44 = vpop.f32.mrf.mxu1 }
 0x1a2   : > { %2061 = vmatmul.f32.gmra.mxu0 %v6397_v0  ;;  %2140 = vmatmul.f32.gmra.mxu1 %v6389_v54  ;;  %v6575_v37 = vpop.f32.mrf.mxu2 }
 0x1a3   : > { %8444 = vst [vmem:[#allocation22_spill] sm:$0xff] %v6575_v37 }
 0x1a7   : > { %v6545_v7 = vpop.f32.mrf.mxu0  ;;  %v6547_v46 = vpop.f32.mrf.mxu1 }
 0x1aa   : > { %2065 = vmatmul.f32.gmra.mxu0 %v6405_v22  ;;  %2144 = vmatmul.f32.gmra.mxu1 %v6397_v0  ;;  %v6569_v0 = vpop.f32.mrf.mxu3 }
 0x1af   : > { %v6553_v47 = vpop.f32.mrf.mxu0  ;;  %v6555_v45 = vpop.f32.mrf.mxu1 }
 0x1b2   : > { %2069 = vmatmul.f32.gmra.mxu0 %v6413_v36  ;;  %2148 = vmatmul.f32.gmra.mxu1 %v6405_v22  ;;  %v6579_v22 = vpop.f32.mrf.mxu3 }
 0x1b3   : > { %8445 = vst [vmem:[#allocation23_spill] sm:$0xff] %v6579_v22 }
 0x1b7   : > { %v6561_v54 = vpop.f32.mrf.mxu0  ;;  %v6563_v50 = vpop.f32.mrf.mxu1 }
 0x1ba   : > { %2073 = vmatmul.f32.gmra.mxu0 %v6421_v49  ;;  %2152 = vmatmul.f32.gmra.mxu1 %v6413_v36  ;;  %v6587_v36 = vpop.f32.mrf.mxu2  ;;  %v6593_v57 = vpop.f32.mrf.mxu3 }
 0x1bb   : > { %8446 = vst [vmem:[#allocation24_spill] sm:$0xff] %v6587_v36 }
 0x1bc   : > { %8447 = vst [vmem:[#allocation25_spill] sm:$0xff] %v6593_v57 }
 0x1bf   : > { %v6571_v52 = vpop.f32.mrf.mxu0  ;;  %v6573_v19 = vpop.f32.mrf.mxu1 }
 0x1c2   : > { %2077 = vmatmul.f32.gmra.mxu0 %v6429_v53  ;;  %2156 = vmatmul.f32.gmra.mxu1 %v6421_v49  ;;  %v1825_v49 = vpop.f32.mrf.mxu2  ;;  %v1925_v61 = vpop.f32.mrf.mxu3 }
 0x1c7   : > { %v6581_v28 = vpop.f32.mrf.mxu0  ;;  %v6583_v23 = vpop.f32.mrf.mxu1 }
 0x1ca   : > { %2081 = vmatmul.f32.gmra.mxu0 %v6437_v59  ;;  %2160 = vmatmul.f32.gmra.mxu1 %v6429_v53  ;;  %v1830_v1 = vpop.f32.mrf.mxu2 }
 0x1cb   : > { %v1831_v22 = vadd.f32 %v1830_v1, %v1744_v24 }
 0x1cf   : > { %v6589_v55 = vpop.f32.mrf.mxu0  ;;  %v6591_v56 = vpop.f32.mrf.mxu1 }
 0x1d2   : > { %2085 = vmatmul.f32.gmra.mxu0 %v6445_v3  ;;  %2164 = vmatmul.f32.gmra.mxu1 %v6437_v59  ;;  %v1931_v59 = vpop.f32.mrf.mxu3  ;;  %v1835_v4 = vpop.f32.mrf.mxu2 }
 0x1d3   : > { %v1932_v8 = vadd.f32 %v1931_v59, %v1831_v22  ;;  %v1752_v59 = vadd.f32 %v6535_v42, %v6527_v39 }
 0x1d7   : > { %v6597_v15 = vpop.f32.mrf.mxu0  ;;  %v6599_v17 = vpop.f32.mrf.mxu1 }
 0x1da   : > { %2089 = vmatmul.f32.gmra.mxu0 %v6453_v12  ;;  %2168 = vmatmul.f32.gmra.mxu1 %v6445_v3  ;;  %v1937_v3 = vpop.f32.mrf.mxu3  ;;  %v1840_v10 = vpop.f32.mrf.mxu2 }
 0x1df   : > { %v6603_v53 = vpop.f32.mrf.mxu0  ;;  %v6605_v62 = vpop.f32.mrf.mxu1 }
 0x1e2   : > { %2093 = vmatmul.f32.gmra.mxu0 %v6461_v26  ;;  %2172 = vmatmul.f32.gmra.mxu1 %v6453_v12  ;;  %v1740_v12 = vadd.f32 %v6514_v31, %v6501_v20  ;;  %v1943_v34 = vpop.f32.mrf.mxu3  ;;  %v6628_v21 = vpop.f32.mrf.mxu2 }
 0x1e4   : > { %v1826_v33 = vadd.f32 %v1825_v49, %v1740_v12  ;;  %v1748_v49 = vadd.f32 %v6529_v41, %v6521_v35  ;;  %v1484_v12 = vld [vmem:[#allocation8 + $0x8] sm:$0xff]  ;;  %v8448_v35 = vand.u32 4294901760, %v6494_v14 }
 0x1e7   : > { %v6609_v2 = vpop.f32.mrf.mxu0  ;;  %v6611_v63 = vpop.f32.mrf.mxu1 }
 0x1ea   : > { %2097 = vmatmul.f32.gmra.mxu0 %v6469_v40  ;;  %2176 = vmatmul.f32.gmra.mxu1 %v6461_v26  ;;  %v1926_v26 = vadd.f32 %v1925_v61, %v1826_v33  ;;  %v6630_v31 = vpop.f32.mrf.mxu3 }
 0x1ef   : > { %v6615_v6 = vpop.f32.mrf.mxu0  ;;  %v6617_v9 = vpop.f32.mrf.mxu1 }
 0x1f2   : > { %2101 = vmatmul.f32.gmra.mxu0 %v6477_v25  ;;  %2180 = vmatmul.f32.gmra.mxu1 %v6469_v40  ;;  %v1483_v40 = vld [vmem:[#allocation8] sm:$0xff] }
 0x1f7   : > { %v6623_v27 = vpop.f32.mrf.mxu1  ;;  %v2042_v32 = vpop.f32.mrf.mxu0 }
 0x1f8   : > { %v2043_v57 = vadd.f32 %v2042_v32, %v1926_v26 }
 0x1fa   : > { %2184 = vmatmul.f32.gmra.mxu1 %v6477_v25 }
 0x1ff   : > { %v2046_v36 = vpop.f32.mrf.mxu0  ;;  %v2125_v16 = vpop.f32.mrf.mxu1 }
 0x200   : > { %v2126_v20 = vadd.f32 %v2125_v16, %v2043_v57  ;;  %v2047_v61 = vadd.f32 %v2046_v36, %v1932_v8  ;;  %v1836_v16 = vadd.f32 %v1835_v4, %v1748_v49  ;;  %v6639_v57 = vpop.f32.mrf.mxu2  ;;  %v1955_v4 = vpop.f32.mrf.mxu3  ;;  %v1841_v49 = vadd.f32 %v1840_v10, %v1752_v59 }
 0x202   : > { %v2188_v37 = vmul.f32 %v2126_v20, %v1483_v40  ;;  %v1938_v36 = vadd.f32 %v1937_v3, %v1836_v16 }
 0x204   : > { %v6634_v25 = vand.u32 4294901760, %v2188_v37 }
 0x206   : > { %v2239_v30 = vsub.f32 %v2188_v37, %v6634_v25  ;;  %2394 = vmatmul.f32.vlgmr.msrb.gmra.mxu3 %v6634_v25  ;;  %v8449_v37 = vand.u32 4294901760, %v6499_v18 }
 0x207   : > { %3470 = vmatpush.msrb.mxu3 %v6488_v11  ;;  %v2050_v38 = vpop.f32.mrf.mxu0  ;;  %v2129_v24 = vpop.f32.mrf.mxu1 }
 0x208   : > { %v2240_v1 = vand.u32 4294901760, %v2239_v30  ;;  %v2130_v22 = vadd.f32 %v2129_v24, %v2047_v61  ;;  %2480 = vmatmul.f32.vlgmr.msra.gmra.mxu0 %v2239_v30  ;;  %v2051_v26 = vadd.f32 %v2050_v38, %v1938_v36  ;;  %v1855_v42 = vpop.f32.mrf.mxu2  ;;  %v1944_v38 = vadd.f32 %v1943_v34, %v1841_v49  ;;  %v1961_v16 = vpop.f32.mrf.mxu3 }
 0x209   : > { %3472 = vmatpush.msrb.mxu3 %v6491_v13  ;;  %3587 = vmatpush.msra.mxu0 %v8448_v35  ;;  %v1760_v36 = vadd.f32 %v6547_v46, %v6539_v43 }
 0x20a   : > { %v2241_v8 = vsub.f32 %v2239_v30, %v2240_v1  ;;  %v2189_v41 = vmul.f32 %v2130_v22, %v1484_v12  ;;  %2580 = vmatmul.f32.vlgmr.msra.gmra.mxu1 %v2240_v1  ;;  %v1756_v12 = vadd.f32 %v6541_v44, %v6533_v58 }
 0x20b   : > { %3591 = vmatpush.msra.mxu0 %v8449_v37  ;;  %3672 = vmatpush.msra.mxu1 %v6488_v11  ;;  %v1485_v11 = vld [vmem:[#allocation8 + $0x10] sm:$0xff]  ;;  %v1851_v49 = vadd.f32 %v6639_v57, %v1760_v36 }
 0x20c   : > { %v2242_v32 = vand.u32 4294901760, %v2241_v8  ;;  %v6649_v33 = vand.u32 4294901760, %v2189_v41  ;;  %v1846_v8 = vadd.f32 %v6628_v21, %v1756_v12 }
 0x20d   : > { %3674 = vmatpush.msra.mxu1 %v6491_v13 }
 0x20e   : > { %2243 = vmatmul.f32.vlgmr.msrb.gmra.mxu2 %v2242_v32  ;;  %2398 = vmatmul.f32.gmra.mxu3 %v6649_v33  ;;  %v2247_v40 = vsub.f32 %v2189_v41, %v6649_v33  ;;  %v1950_v44 = vadd.f32 %v6630_v31, %v1846_v8 }
 0x20f   : > { %3370 = vmatpush.msrb.mxu2 %v6494_v14  ;;  %v2054_v20 = vpop.f32.mrf.mxu0  ;;  %v2133_v3 = vpop.f32.mrf.mxu1 }
 0x210   : > { %v2134_v61 = vadd.f32 %v2133_v3, %v2051_v26  ;;  %2485 = vmatmul.f32.gmra.mxu0 %v2247_v40  ;;  %v2248_v39 = vand.u32 4294901760, %v2247_v40  ;;  %v2055_v1 = vadd.f32 %v2054_v20, %v1944_v38  ;;  %v1860_v59 = vpop.f32.mrf.mxu2 }
 0x211   : > { %3373 = vmatpush.msrb.mxu2 %v6499_v18  ;;  %v1486_v18 = vld [vmem:[#allocation8 + $0x18] sm:$0xff] }
 0x212   : > { %v2190_v30 = vmul.f32 %v2134_v61, %v1485_v11  ;;  %2586 = vmatmul.f32.gmra.mxu1 %v2248_v39  ;;  %v2249_v13 = vsub.f32 %v2247_v40, %v2248_v39  ;;  %v1487_v11 = vld [vmem:[#allocation8 + $0x20] sm:$0xff]  ;;  %v1967_v61 = vpop.f32.mrf.mxu3 }
 0x214   : > { %v6658_v24 = vand.u32 4294901760, %v2190_v30  ;;  %v2250_v14 = vand.u32 4294901760, %v2249_v13  ;;  %v1764_v13 = vadd.f32 %v6555_v45, %v6545_v7 }
 0x216   : > { %2251 = vmatmul.f32.gmra.mxu2 %v2250_v14  ;;  %2402 = vmatmul.f32.gmra.mxu3 %v6658_v24  ;;  %v2255_v10 = vsub.f32 %v2190_v30, %v6658_v24  ;;  %v1956_v30 = vadd.f32 %v1955_v4, %v1851_v49 }
 0x217   : > { %v2058_v22 = vpop.f32.mrf.mxu0  ;;  %v2137_v35 = vpop.f32.mrf.mxu1 }
 0x218   : > { %v2138_v41 = vadd.f32 %v2137_v35, %v2055_v1  ;;  %2490 = vmatmul.f32.gmra.mxu0 %v2255_v10  ;;  %v2256_v34 = vand.u32 4294901760, %v2255_v10  ;;  %v2059_v40 = vadd.f32 %v2058_v22, %v1950_v44  ;;  %v1865_v14 = vpop.f32.mrf.mxu2  ;;  %v1488_v22 = vld [vmem:[#allocation8 + $0x28] sm:$0xff]  ;;  %v1856_v35 = vadd.f32 %v1855_v42, %v1764_v13 }
 0x21a   : > { %v2191_v37 = vmul.f32 %v2138_v41, %v1486_v18  ;;  %2592 = vmatmul.f32.gmra.mxu1 %v2256_v34  ;;  %v2257_v58 = vsub.f32 %v2255_v10, %v2256_v34  ;;  %v1973_v41 = vpop.f32.mrf.mxu3  ;;  %v1962_v45 = vadd.f32 %v1961_v16, %v1856_v35  ;;  %v1776_v35 = vadd.f32 %v6583_v23, %v6571_v52 }
 0x21c   : > { %v6666_v32 = vand.u32 4294901760, %v2191_v37  ;;  %v2258_v26 = vand.u32 4294901760, %v2257_v58 }
 0x21e   : > { %2259 = vmatmul.f32.gmra.mxu2 %v2258_v26  ;;  %2406 = vmatmul.f32.gmra.mxu3 %v6666_v32  ;;  %v2263_v21 = vsub.f32 %v2191_v37, %v6666_v32  ;;  %v1768_v37 = vadd.f32 %v6563_v50, %v6553_v47 }
 0x21f   : > { %v2062_v20 = vpop.f32.mrf.mxu0  ;;  %v2141_v3 = vpop.f32.mrf.mxu1 }
 0x220   : > { %v2142_v31 = vadd.f32 %v2141_v3, %v2059_v40  ;;  %2495 = vmatmul.f32.gmra.mxu0 %v2263_v21  ;;  %v2264_v39 = vand.u32 4294901760, %v2263_v21  ;;  %v2063_v1 = vadd.f32 %v2062_v20, %v1956_v30  ;;  %v1489_v40 = vld [vmem:[#allocation8 + $0x30] sm:$0xff]  ;;  %v1861_v20 = vadd.f32 %v1860_v59, %v1768_v37  ;;  %v1491_v37 = vld [vmem:[#allocation8 + $0x40] sm:$0xff] }
 0x222   : > { %v2192_v43 = vmul.f32 %v2142_v31, %v1487_v11  ;;  %2598 = vmatmul.f32.gmra.mxu1 %v2264_v39  ;;  %v2265_v46 = vsub.f32 %v2263_v21, %v2264_v39  ;;  %v1870_v11 = vpop.f32.mrf.mxu2  ;;  %v1968_v50 = vadd.f32 %v1967_v61, %v1861_v20  ;;  %v1772_v31 = vadd.f32 %v6573_v19, %v6561_v54  ;;  %v1979_v39 = vpop.f32.mrf.mxu3 }
 0x224   : > { %v6673_v38 = vand.u32 4294901760, %v2192_v43  ;;  %v2266_v12 = vand.u32 4294901760, %v2265_v46 }
 0x226   : > { %2267 = vmatmul.f32.gmra.mxu2 %v2266_v12  ;;  %2410 = vmatmul.f32.gmra.mxu3 %v6673_v38  ;;  %v2271_v57 = vsub.f32 %v2192_v43, %v6673_v38  ;;  %v1490_v12 = vld [vmem:[#allocation8 + $0x38] sm:$0xff] }
 0x227   : > { %v2066_v10 = vpop.f32.mrf.mxu0  ;;  %v2145_v18 = vpop.f32.mrf.mxu1 }
 0x228   : > { %v2146_v8 = vadd.f32 %v2145_v18, %v2063_v1  ;;  %2500 = vmatmul.f32.gmra.mxu0 %v2271_v57  ;;  %v2272_v4 = vand.u32 4294901760, %v2271_v57  ;;  %v2067_v36 = vadd.f32 %v2066_v10, %v1962_v45 }
 0x22a   : > { %v2193_v34 = vmul.f32 %v2146_v8, %v1488_v22  ;;  %2604 = vmatmul.f32.gmra.mxu1 %v2272_v4  ;;  %v2273_v7 = vsub.f32 %v2271_v57, %v2272_v4  ;;  %v1866_v57 = vadd.f32 %v1865_v14, %v1772_v31  ;;  %v1875_v22 = vpop.f32.mrf.mxu2 }
 0x22c   : > { %v6679_v58 = vand.u32 4294901760, %v2193_v34  ;;  %v2274_v44 = vand.u32 4294901760, %v2273_v7  ;;  %v1974_v19 = vadd.f32 %v1973_v41, %v1866_v57 }
 0x22e   : > { %2275 = vmatmul.f32.gmra.mxu2 %v2274_v44  ;;  %2414 = vmatmul.f32.gmra.mxu3 %v6679_v58  ;;  %v2279_v42 = vsub.f32 %v2193_v34, %v6679_v58  ;;  %v1985_v34 = vpop.f32.mrf.mxu3 }
 0x22f   : > { %v2070_v26 = vpop.f32.mrf.mxu0  ;;  %v2149_v21 = vpop.f32.mrf.mxu1 }
 0x230   : > { %v2150_v3 = vadd.f32 %v2149_v21, %v2067_v36  ;;  %2505 = vmatmul.f32.gmra.mxu0 %v2279_v42  ;;  %v2280_v16 = vand.u32 4294901760, %v2279_v42  ;;  %v2071_v30 = vadd.f32 %v2070_v26, %v1968_v50  ;;  %v1871_v36 = vadd.f32 %v1870_v11, %v1776_v35 }
 0x232   : > { %v2194_v49 = vmul.f32 %v2150_v3, %v1489_v40  ;;  %2610 = vmatmul.f32.gmra.mxu1 %v2280_v16  ;;  %v2281_v47 = vsub.f32 %v2279_v42, %v2280_v16  ;;  %v1980_v23 = vadd.f32 %v1979_v39, %v1871_v36  ;;  %v1780_v40 = vadd.f32 %v6591_v56, %v6581_v28  ;;  %v1880_v21 = vpop.f32.mrf.mxu2 }
 0x234   : > { %v6685_v43 = vand.u32 4294901760, %v2194_v49  ;;  %v2282_v46 = vand.u32 4294901760, %v2281_v47  ;;  %v1492_v47 = vld [vmem:[#allocation8 + $0x48] sm:$0xff]  ;;  %v1876_v31 = vadd.f32 %v1875_v22, %v1780_v40 }
 0x236   : > { %2283 = vmatmul.f32.gmra.mxu2 %v2282_v46  ;;  %2418 = vmatmul.f32.gmra.mxu3 %v6685_v43  ;;  %v2287_v59 = vsub.f32 %v2194_v49, %v6685_v43  ;;  %v1986_v56 = vadd.f32 %v1985_v34, %v1876_v31 }
 0x237   : > { %v2074_v13 = vpop.f32.mrf.mxu0  ;;  %v2153_v1 = vpop.f32.mrf.mxu1 }
 0x238   : > { %v2154_v10 = vadd.f32 %v2153_v1, %v2071_v30  ;;  %2510 = vmatmul.f32.gmra.mxu0 %v2287_v59  ;;  %v2288_v61 = vand.u32 4294901760, %v2287_v59  ;;  %v2075_v7 = vadd.f32 %v2074_v13, %v1974_v19  ;;  %v1991_v30 = vpop.f32.mrf.mxu3  ;;  %v1784_v13 = vadd.f32 %v6599_v17, %v6589_v55 }
 0x23a   : > { %v2195_v18 = vmul.f32 %v2154_v10, %v1490_v12  ;;  %2616 = vmatmul.f32.gmra.mxu1 %v2288_v61  ;;  %v2289_v54 = vsub.f32 %v2287_v59, %v2288_v61  ;;  %v1885_v57 = vpop.f32.mrf.mxu2  ;;  %v1881_v19 = vadd.f32 %v1880_v21, %v1784_v13 }
 0x23c   : > { %v6691_v8 = vand.u32 4294901760, %v2195_v18  ;;  %v2290_v4 = vand.u32 4294901760, %v2289_v54 }
 0x23e   : > { %2291 = vmatmul.f32.gmra.mxu2 %v2290_v4  ;;  %2422 = vmatmul.f32.gmra.mxu3 %v6691_v8  ;;  %v2295_v14 = vsub.f32 %v2195_v18, %v6691_v8  ;;  %v1493_v18 = vld [vmem:[#allocation8 + $0x50] sm:$0xff] }
 0x23f   : > { %v2078_v45 = vpop.f32.mrf.mxu0  ;;  %v2157_v44 = vpop.f32.mrf.mxu1 }
 0x240   : > { %v2158_v42 = vadd.f32 %v2157_v44, %v2075_v7  ;;  %2515 = vmatmul.f32.gmra.mxu0 %v2295_v14  ;;  %v2296_v41 = vand.u32 4294901760, %v2295_v14  ;;  %v2079_v16 = vadd.f32 %v2078_v45, %v1980_v23  ;;  %v1997_v17 = vpop.f32.mrf.mxu3  ;;  %v1992_v7 = vadd.f32 %v1991_v30, %v1881_v19  ;;  %v1496_v19 = vld [vmem:[#allocation8 + $0x68] sm:$0xff] }
 0x242   : > { %v2196_v26 = vmul.f32 %v2158_v42, %v1491_v37  ;;  %2622 = vmatmul.f32.gmra.mxu1 %v2296_v41  ;;  %v2297_v52 = vsub.f32 %v2295_v14, %v2296_v41  ;;  %v1788_v14 = vadd.f32 %v6605_v62, %v6597_v15  ;;  %v1494_v41 = vld [vmem:[#allocation8 + $0x58] sm:$0xff]  ;;  %v1890_v21 = vpop.f32.mrf.mxu2 }
 0x244   : > { %v6697_v20 = vand.u32 4294901760, %v2196_v26  ;;  %v2298_v3 = vand.u32 4294901760, %v2297_v52  ;;  %v1886_v52 = vadd.f32 %v1885_v57, %v1788_v14  ;;  %v1796_v57 = vadd.f32 %v6617_v9, %v6609_v2 }
 0x245   : > { %v1800_v14 = vadd.f32 %v6623_v27, %v6615_v6 }
 0x246   : > { %2299 = vmatmul.f32.gmra.mxu2 %v2298_v3  ;;  %2426 = vmatmul.f32.gmra.mxu3 %v6697_v20  ;;  %v2303_v11 = vsub.f32 %v2196_v26, %v6697_v20  ;;  %v1998_v62 = vadd.f32 %v1997_v17, %v1886_v52 }
 0x247   : > { %v2082_v49 = vpop.f32.mrf.mxu0  ;;  %v2161_v50 = vpop.f32.mrf.mxu1 }
 0x248   : > { %v2162_v46 = vadd.f32 %v2161_v50, %v2079_v16  ;;  %2520 = vmatmul.f32.gmra.mxu0 %v2303_v11  ;;  %v2304_v39 = vand.u32 4294901760, %v2303_v11  ;;  %v2083_v10 = vadd.f32 %v2082_v49, %v1986_v56  ;;  %v1792_v16 = vadd.f32 %v6611_v63, %v6603_v53 }
 0x24a   : > { %v2197_v59 = vmul.f32 %v2162_v46, %v1492_v47  ;;  %2628 = vmatmul.f32.gmra.mxu1 %v2304_v39  ;;  %v2305_v28 = vsub.f32 %v2303_v11, %v2304_v39  ;;  %v2003_v47 = vpop.f32.mrf.mxu3  ;;  %v1495_v39 = vld [vmem:[#allocation8 + $0x60] sm:$0xff]  ;;  %v1895_v63 = vpop.f32.mrf.mxu2 }
 0x24c   : > { %v6703_v12 = vand.u32 4294901760, %v2197_v59  ;;  %v2306_v1 = vand.u32 4294901760, %v2305_v28 }
 0x24e   : > { %2307 = vmatmul.f32.gmra.mxu2 %v2306_v1  ;;  %2430 = vmatmul.f32.gmra.mxu3 %v6703_v12  ;;  %v2311_v61 = vsub.f32 %v2197_v59, %v6703_v12  ;;  %v1891_v59 = vadd.f32 %v1890_v21, %v1792_v16 }
 0x24f   : > { %v2086_v22 = vpop.f32.mrf.mxu0  ;;  %v2165_v54 = vpop.f32.mrf.mxu1 }
 0x250   : > { %v2166_v35 = vadd.f32 %v2165_v54, %v2083_v10  ;;  %2525 = vmatmul.f32.gmra.mxu0 %v2311_v61  ;;  %v2312_v4 = vand.u32 4294901760, %v2311_v61  ;;  %v2087_v44 = vadd.f32 %v2086_v22, %v1992_v7  ;;  %v2004_v1 = vadd.f32 %v2003_v47, %v1891_v59 }
 0x252   : > { %v2198_v34 = vmul.f32 %v2166_v35, %v1493_v18  ;;  %2634 = vmatmul.f32.gmra.mxu1 %v2312_v4  ;;  %v2313_v55 = vsub.f32 %v2311_v61, %v2312_v4  ;;  %v2009_v54 = vpop.f32.mrf.mxu3  ;;  %v1896_v4 = vadd.f32 %v1895_v63, %v1796_v57 }
 0x254   : > { %v6709_v45 = vand.u32 4294901760, %v2198_v34  ;;  %v2314_v37 = vand.u32 4294901760, %v2313_v55  ;;  %v2010_v9 = vadd.f32 %v2009_v54, %v1896_v4  ;;  %v2205_v4 = vld [vmem:[%s8398_s13 + $0x8] sm:$0xff] }
 0x256   : > { %2315 = vmatmul.f32.gmra.mxu2 %v2314_v37  ;;  %2434 = vmatmul.f32.gmra.mxu3 %v6709_v45  ;;  %v2319_v36 = vsub.f32 %v2198_v34, %v6709_v45 }
 0x257   : > { %v2090_v42 = vpop.f32.mrf.mxu0  ;;  %v2169_v26 = vpop.f32.mrf.mxu1 }
 0x258   : > { %v2170_v23 = vadd.f32 %v2169_v26, %v2087_v44  ;;  %2530 = vmatmul.f32.gmra.mxu0 %v2319_v36  ;;  %v2320_v40 = vand.u32 4294901760, %v2319_v36  ;;  %v2091_v50 = vadd.f32 %v2090_v42, %v1998_v62  ;;  %v1497_v26 = vld [vmem:[#allocation8 + $0x70] sm:$0xff] }
 0x25a   : > { %v2199_v3 = vmul.f32 %v2170_v23, %v1494_v41  ;;  %2640 = vmatmul.f32.gmra.mxu1 %v2320_v40  ;;  %v2321_v15 = vsub.f32 %v2319_v36, %v2320_v40  ;;  %v1900_v36 = vpop.f32.mrf.mxu2 }
 0x25b   : > { %v1901_v23 = vadd.f32 %v1900_v36, %v1800_v14 }
 0x25c   : > { %v6715_v11 = vand.u32 4294901760, %v2199_v3  ;;  %v2322_v49 = vand.u32 4294901760, %v2321_v15 }
 0x25e   : > { %2323 = vmatmul.f32.gmra.mxu2 %v2322_v49  ;;  %2438 = vmatmul.f32.gmra.mxu3 %v6715_v11  ;;  %v2327_v31 = vsub.f32 %v2199_v3, %v6715_v11  ;;  %v2015_v3 = vpop.f32.mrf.mxu3 }
 0x25f   : > { %v2094_v46 = vpop.f32.mrf.mxu0  ;;  %v2173_v30 = vpop.f32.mrf.mxu1  ;;  %v2016_v62 = vadd.f32 %v2015_v3, %v1901_v23 }
 0x260   : > { %v2174_v28 = vadd.f32 %v2173_v30, %v2091_v50  ;;  %2535 = vmatmul.f32.gmra.mxu0 %v2327_v31  ;;  %v2328_v56 = vand.u32 4294901760, %v2327_v31  ;;  %v2095_v22 = vadd.f32 %v2094_v46, %v2004_v1 }
 0x262   : > { %v2200_v13 = vmul.f32 %v2174_v28, %v1495_v39  ;;  %2646 = vmatmul.f32.gmra.mxu1 %v2328_v56  ;;  %v2329_v53 = vsub.f32 %v2327_v31, %v2328_v56  ;;  %v1498_v31 = vld [vmem:[#allocation8 + $0x78] sm:$0xff] }
 0x264   : > { %v6721_v10 = vand.u32 4294901760, %v2200_v13  ;;  %v2330_v61 = vand.u32 4294901760, %v2329_v53 }
 0x266   : > { %2331 = vmatmul.f32.gmra.mxu2 %v2330_v61  ;;  %2442 = vmatmul.f32.gmra.mxu3 %v6721_v10  ;;  %v2335_v18 = vsub.f32 %v2200_v13, %v6721_v10 }
 0x267   : > { %v2177_v35 = vpop.f32.mrf.mxu1  ;;  %v2098_v17 = vpop.f32.mrf.mxu0 }
 0x268   : > { %v2178_v34 = vadd.f32 %v2177_v35, %v2095_v22  ;;  %2540 = vmatmul.f32.gmra.mxu0 %v2335_v18  ;;  %v2336_v55 = vand.u32 4294901760, %v2335_v18  ;;  %v2099_v42 = vadd.f32 %v2098_v17, %v2010_v9  ;;  %v2204_v22 = vld [vmem:[%s8398_s13] sm:$0xff] }
 0x26a   : > { %v2201_v7 = vmul.f32 %v2178_v34, %v1496_v19  ;;  %2652 = vmatmul.f32.gmra.mxu1 %v2336_v55  ;;  %v2337_v2 = vsub.f32 %v2335_v18, %v2336_v55 }
 0x26c   : > { %v6727_v37 = vand.u32 4294901760, %v2201_v7  ;;  %v2338_v44 = vand.u32 4294901760, %v2337_v2 }
 0x26e   : > { %2339 = vmatmul.f32.gmra.mxu2 %v2338_v44  ;;  %2446 = vmatmul.f32.gmra.mxu3 %v6727_v37  ;;  %v2343_v41 = vsub.f32 %v2201_v7, %v6727_v37  ;;  %v2206_v7 = vld [vmem:[%s8398_s13 + $0x10] sm:$0xff]  ;;  %v2207_v44 = vld [vmem:[%s8398_s13 + $0x18] sm:$0xff] }
 0x26f   : > { %v2181_v52 = vpop.f32.mrf.mxu1  ;;  %v2102_v27 = vpop.f32.mrf.mxu0 }
 0x270   : > { %v2182_v40 = vadd.f32 %v2181_v52, %v2099_v42  ;;  %2545 = vmatmul.f32.gmra.mxu0 %v2343_v41  ;;  %v2344_v21 = vand.u32 4294901760, %v2343_v41  ;;  %v2103_v47 = vadd.f32 %v2102_v27, %v2016_v62  ;;  %v2210_v27 = vld [vmem:[%s8398_s13 + $0x30] sm:$0xff] }
 0x272   : > { %v2202_v15 = vmul.f32 %v2182_v40, %v1497_v26  ;;  %2658 = vmatmul.f32.gmra.mxu1 %v2344_v21  ;;  %v2345_v6 = vsub.f32 %v2343_v41, %v2344_v21  ;;  %v2208_v26 = vld [vmem:[%s8398_s13 + $0x20] sm:$0xff]  ;;  %v2209_v21 = vld [vmem:[%s8398_s13 + $0x28] sm:$0xff] }
 0x274   : > { %v6731_v16 = vand.u32 4294901760, %v2202_v15  ;;  %v2346_v49 = vand.u32 4294901760, %v2345_v6 }
 0x276   : > { %2347 = vmatmul.f32.gmra.mxu2 %v2346_v49  ;;  %2450 = vmatmul.f32.gmra.mxu3 %v6731_v16  ;;  %v2351_v50 = vsub.f32 %v2202_v15, %v6731_v16 }
 0x277   : > { %v2185_v46 = vpop.f32.mrf.mxu1 }
 0x278   : > { %v2186_v39 = vadd.f32 %v2185_v46, %v2103_v47  ;;  %2550 = vmatmul.f32.gmra.mxu0 %v2351_v50  ;;  %v2352_v30 = vand.u32 4294901760, %v2351_v50 }
 0x27a   : > { %v2203_v59 = vmul.f32 %v2186_v39, %v1498_v31  ;;  %2664 = vmatmul.f32.gmra.mxu1 %v2352_v30  ;;  %v2353_v28 = vsub.f32 %v2351_v50, %v2352_v30  ;;  %v2211_v50 = vld [vmem:[%s8398_s13 + $0x38] sm:$0xff] }
 0x27c   : > { %v6735_v56 = vand.u32 4294901760, %v2203_v59  ;;  %v2354_v13 = vand.u32 4294901760, %v2353_v28 }
 0x27e   : > { %2355 = vmatmul.f32.gmra.mxu2 %v2354_v13  ;;  %2454 = vmatmul.f32.gmra.mxu3 %v6735_v56  ;;  %v2359_v53 = vsub.f32 %v2203_v59, %v6735_v56 }
 0x280   : > { %2555 = vmatmul.f32.gmra.mxu0 %v2359_v53  ;;  %v2360_v63 = vand.u32 4294901760, %v2359_v53 }
 0x282   : > { %2670 = vmatmul.f32.gmra.mxu1 %v2360_v63  ;;  %v2361_v1 = vsub.f32 %v2359_v53, %v2360_v63 }
 0x284   : > { %v2362_v57 = vand.u32 4294901760, %v2361_v1 }
 0x286   : > { %2363 = vmatmul.f32.gmra.mxu2 %v2362_v57  ;;  %2780 = vmatmul.f32.vlgmr.msra.gmra.mxu3 %v6634_v25  ;;  %v2481_v57 = vpop.f32.mrf.mxu0 }
 0x289   : > { %v2395_v61 = vpop.f32.mrf.mxu3 }
 0x28e   : > { %2697 = vmatmul.f32.vlgmr.msra.gmra.mxu2 %v6634_v25  ;;  %2784 = vmatmul.f32.gmra.mxu3 %v6649_v33 }
 0x291   : > { %v2244_v18 = vpop.f32.mrf.mxu2  ;;  %v2399_v54 = vpop.f32.mrf.mxu3 }
 0x292   : > { %v2245_v19 = vadd.f32 %v2244_v18, %v2204_v22  ;;  %v2486_v18 = vpop.f32.mrf.mxu0 }
 0x294   : > { %v6745_v35 = vadd.f32 %v2395_v61, %v2245_v19 }
 0x296   : > { %2701 = vmatmul.f32.gmra.mxu2 %v6649_v33  ;;  %2788 = vmatmul.f32.gmra.mxu3 %v6658_v24 }
 0x299   : > { %v2252_v25 = vpop.f32.mrf.mxu2  ;;  %v2403_v34 = vpop.f32.mrf.mxu3 }
 0x29a   : > { %v2253_v55 = vadd.f32 %v2252_v25, %v2205_v4  ;;  %v2482_v4 = vadd.f32 %v2481_v57, %v6745_v35  ;;  %v2491_v25 = vpop.f32.mrf.mxu0 }
 0x29c   : > { %v6752_v17 = vadd.f32 %v2399_v54, %v2253_v55 }
 0x29e   : > { %2705 = vmatmul.f32.gmra.mxu2 %v6658_v24  ;;  %2792 = vmatmul.f32.gmra.mxu3 %v6666_v32 }
 0x2a1   : > { %v2260_v33 = vpop.f32.mrf.mxu2  ;;  %v2407_v2 = vpop.f32.mrf.mxu3 }
 0x2a2   : > { %v2261_v9 = vadd.f32 %v2260_v33, %v2206_v7 }
 0x2a4   : > { %v6759_v14 = vadd.f32 %v2403_v34, %v2261_v9 }
 0x2a6   : > { %2709 = vmatmul.f32.gmra.mxu2 %v6666_v32  ;;  %2796 = vmatmul.f32.gmra.mxu3 %v6673_v38 }
 0x2a9   : > { %v2268_v24 = vpop.f32.mrf.mxu2  ;;  %v2411_v36 = vpop.f32.mrf.mxu3 }
 0x2aa   : > { %v2269_v42 = vadd.f32 %v2268_v24, %v2207_v44 }
 0x2ac   : > { %v6766_v41 = vadd.f32 %v2407_v2, %v2269_v42  ;;  %v2487_v2 = vadd.f32 %v2486_v18, %v6752_v17 }
 0x2ae   : > { %2713 = vmatmul.f32.gmra.mxu2 %v6673_v38  ;;  %2800 = vmatmul.f32.gmra.mxu3 %v6679_v58 }
 0x2b1   : > { %v2276_v32 = vpop.f32.mrf.mxu2  ;;  %v2415_v52 = vpop.f32.mrf.mxu3 }
 0x2b2   : > { %v2277_v23 = vadd.f32 %v2276_v32, %v2208_v26  ;;  %v2496_v26 = vpop.f32.mrf.mxu0  ;;  %v2492_v32 = vadd.f32 %v2491_v25, %v6759_v14 }
 0x2b4   : > { %v6773_v40 = vadd.f32 %v2411_v36, %v2277_v23 }
 0x2b6   : > { %2717 = vmatmul.f32.gmra.mxu2 %v6679_v58  ;;  %2804 = vmatmul.f32.gmra.mxu3 %v6685_v43 }
 0x2b9   : > { %v2284_v38 = vpop.f32.mrf.mxu2  ;;  %v2419_v3 = vpop.f32.mrf.mxu3 }
 0x2ba   : > { %v2285_v15 = vadd.f32 %v2284_v38, %v2209_v21 }
 0x2bc   : > { %v6780_v6 = vadd.f32 %v2415_v52, %v2285_v15 }
 0x2be   : > { %2721 = vmatmul.f32.gmra.mxu2 %v6685_v43  ;;  %2808 = vmatmul.f32.gmra.mxu3 %v6691_v8 }
 0x2c1   : > { %v2292_v58 = vpop.f32.mrf.mxu2  ;;  %v2423_v62 = vpop.f32.mrf.mxu3 }
 0x2c2   : > { %v2293_v49 = vadd.f32 %v2292_v58, %v2210_v27  ;;  %v2497_v27 = vadd.f32 %v2496_v26, %v6766_v41  ;;  %v2501_v58 = vpop.f32.mrf.mxu0 }
 0x2c3   : > { %v2502_v57 = vadd.f32 %v2501_v58, %v6773_v40 }
 0x2c4   : > { %v6787_v47 = vadd.f32 %v2419_v3, %v2293_v49 }
 0x2c6   : > { %2725 = vmatmul.f32.gmra.mxu2 %v6691_v8  ;;  %2812 = vmatmul.f32.gmra.mxu3 %v6697_v20 }
 0x2c9   : > { %v2300_v43 = vpop.f32.mrf.mxu2  ;;  %v6794_v31 = vpop.f32.mrf.mxu3 }
 0x2ca   : > { %v2301_v46 = vadd.f32 %v2300_v43, %v2211_v50 }
 0x2cc   : > { %v6796_v39 = vadd.f32 %v2423_v62, %v2301_v46 }
 0x2ce   : > { %2729 = vmatmul.f32.gmra.mxu2 %v6697_v20  ;;  %2816 = vmatmul.f32.gmra.mxu3 %v6703_v12 }
 0x2d1   : > { %v6800_v30 = vpop.f32.mrf.mxu2  ;;  %v6802_v59 = vpop.f32.mrf.mxu3 }
 0x2d6   : > { %2733 = vmatmul.f32.gmra.mxu2 %v6703_v12  ;;  %2820 = vmatmul.f32.gmra.mxu3 %v6709_v45 }
 0x2d9   : > { %v6806_v8 = vpop.f32.mrf.mxu2  ;;  %v6808_v28 = vpop.f32.mrf.mxu3 }
 0x2de   : > { %2737 = vmatmul.f32.gmra.mxu2 %v6709_v45  ;;  %2824 = vmatmul.f32.gmra.mxu3 %v6715_v11 }
 0x2e1   : > { %v6812_v13 = vpop.f32.mrf.mxu2  ;;  %v6814_v20 = vpop.f32.mrf.mxu3 }
 0x2e6   : > { %2741 = vmatmul.f32.gmra.mxu2 %v6715_v11  ;;  %2828 = vmatmul.f32.gmra.mxu3 %v6721_v10 }
 0x2e9   : > { %v6818_v53 = vpop.f32.mrf.mxu2  ;;  %v6820_v12 = vpop.f32.mrf.mxu3 }
 0x2ee   : > { %2745 = vmatmul.f32.gmra.mxu2 %v6721_v10  ;;  %2832 = vmatmul.f32.gmra.mxu3 %v6727_v37  ;;  %v2581_v10 = vpop.f32.mrf.mxu1 }
 0x2ef   : > { %v2582_v34 = vadd.f32 %v2581_v10, %v2482_v4 }
 0x2f1   : > { %v6824_v63 = vpop.f32.mrf.mxu2  ;;  %v6826_v45 = vpop.f32.mrf.mxu3 }
 0x2f6   : > { %2749 = vmatmul.f32.gmra.mxu2 %v6727_v37  ;;  %2836 = vmatmul.f32.gmra.mxu3 %v6731_v16  ;;  %v2587_v19 = vpop.f32.mrf.mxu1 }
 0x2f9   : > { %v6830_v1 = vpop.f32.mrf.mxu2  ;;  %v6832_v11 = vpop.f32.mrf.mxu3 }
 0x2fe   : > { %2753 = vmatmul.f32.gmra.mxu2 %v6731_v16  ;;  %2840 = vmatmul.f32.gmra.mxu3 %v6735_v56  ;;  %v2593_v9 = vpop.f32.mrf.mxu1 }
 0x2ff   : > { %v2594_v17 = vadd.f32 %v2593_v9, %v2492_v32 }
 0x301   : > { %v6836_v61 = vpop.f32.mrf.mxu2  ;;  %v6838_v22 = vpop.f32.mrf.mxu3 }
 0x306   : > { %2757 = vmatmul.f32.gmra.mxu2 %v6735_v56  ;;  %v2588_v56 = vadd.f32 %v2587_v19, %v2487_v2  ;;  %v2599_v23 = vpop.f32.mrf.mxu1 }
 0x307   : > { %v2600_v49 = vadd.f32 %v2599_v23, %v2497_v27 }
 0x309   : > { %v6841_v37 = vpop.f32.mrf.mxu2  ;;  %v2781_v54 = vpop.f32.mrf.mxu3 }
 0x30e   : > { %v2605_v14 = vpop.f32.mrf.mxu1 }
 0x30f   : > { %v2606_v41 = vadd.f32 %v2605_v14, %v2502_v57 }
 0x311   : > { %v2698_v55 = vpop.f32.mrf.mxu2  ;;  %v2785_v16 = vpop.f32.mrf.mxu3 }
 0x312   : > { %v2699_v7 = vadd.f32 %v2698_v55, %v2582_v34 }
 0x314   : > { %v6844_v33 = vadd.f32 %v2781_v54, %v2699_v7  ;;  %v2506_v54 = vpop.f32.mrf.mxu0 }
 0x315   : > { %v2507_v55 = vadd.f32 %v2506_v54, %v6780_v6 }
 0x316   : > { %v2844_v44 = vsel %vm1515_vm1, %v6844_v33, -inf  ;;  %v2611_v25 = vpop.f32.mrf.mxu1 }
 0x317   : > { %2845 = vmax.xlane.f32.xlu0 %v2844_v44  ;;  %v2612_v40 = vadd.f32 %v2611_v25, %v2507_v55  ;;  %v2213_v25 = vld [vmem:[%s8398_s13 + $0x48] sm:$0xff] }
 0x319   : > { %v2702_v24 = vpop.f32.mrf.mxu2  ;;  %v2789_v36 = vpop.f32.mrf.mxu3 }
 0x31a   : > { %v2703_v42 = vadd.f32 %v2702_v24, %v2588_v56 }
 0x31c   : > { %v6849_v35 = vadd.f32 %v2785_v16, %v2703_v42  ;;  %v2511_v2 = vpop.f32.mrf.mxu0 }
 0x31d   : > { %v2512_v24 = vadd.f32 %v2511_v2, %v6787_v47 }
 0x31e   : > { %v2847_v52 = vsel %vm1515_vm1, %v6849_v35, -inf }
 0x31f   : > { %2848 = vmax.xlane.f32.xlu0 %v2847_v52 }
 0x321   : > { %v2706_v21 = vpop.f32.mrf.mxu2  ;;  %v2793_v3 = vpop.f32.mrf.mxu3 }
 0x322   : > { %v2707_v38 = vadd.f32 %v2706_v21, %v2594_v17 }
 0x324   : > { %v6854_v15 = vadd.f32 %v2789_v36, %v2707_v38  ;;  %v2617_v36 = vpop.f32.mrf.mxu1  ;;  %v2516_v23 = vpop.f32.mrf.mxu0 }
 0x325   : > { %v2618_v26 = vadd.f32 %v2617_v36, %v2512_v24  ;;  %v2517_v21 = vadd.f32 %v2516_v23, %v6796_v39  ;;  %v2212_v39 = vld [vmem:[%s8398_s13 + $0x40] sm:$0xff]  ;;  %v2214_v36 = vld [vmem:[%s8398_s13 + $0x50] sm:$0xff] }
 0x326   : > { %v2850_v62 = vsel %vm1515_vm1, %v6854_v15, -inf }
 0x327   : > { %2851 = vmax.xlane.f32.xlu1 %v2850_v62 }
 0x329   : > { %v2710_v50 = vpop.f32.mrf.mxu2  ;;  %v2797_v10 = vpop.f32.mrf.mxu3 }
 0x32a   : > { %v2711_v43 = vadd.f32 %v2710_v50, %v2600_v49 }
 0x32c   : > { %v6859_v46 = vadd.f32 %v2793_v3, %v2711_v43  ;;  %v2623_v3 = vpop.f32.mrf.mxu1  ;;  %v2521_v50 = vpop.f32.mrf.mxu0 }
 0x32d   : > { %v2624_v47 = vadd.f32 %v2623_v3, %v2517_v21 }
 0x32e   : > { %v2853_v18 = vsel %vm1515_vm1, %v6859_v46, -inf }
 0x32f   : > { %2854 = vmax.xlane.f32.xlu1 %v2853_v18 }
 0x331   : > { %v2714_v19 = vpop.f32.mrf.mxu2  ;;  %v2801_v7 = vpop.f32.mrf.mxu3 }
 0x332   : > { %v2715_v4 = vadd.f32 %v2714_v19, %v2606_v41 }
 0x334   : > { %v6864_v34 = vadd.f32 %v2797_v10, %v2715_v4  ;;  %v2629_v43 = vpop.f32.mrf.mxu1  ;;  %v2309_v10 = vadd.f32 %v6800_v30, %v2212_v39  ;;  %v2526_v54 = vpop.f32.mrf.mxu0 }
 0x336   : > { %v2856_v16 = vsel %vm1515_vm1, %v6864_v34, -inf  ;;  %v2428_v4 = vadd.f32 %v6794_v31, %v2309_v10 }
 0x337   : > { %2857 = vmax.xlane.f32.xlu2 %v2856_v16 }
 0x338   : > { %v2522_v2 = vadd.f32 %v2521_v50, %v2428_v4 }
 0x339   : > { %v2718_v9 = vpop.f32.mrf.mxu2  ;;  %v2805_v6 = vpop.f32.mrf.mxu3 }
 0x33a   : > { %v2719_v44 = vadd.f32 %v2718_v9, %v2612_v40  ;;  %v2317_v40 = vadd.f32 %v6806_v8, %v2213_v25  ;;  %v2630_v24 = vadd.f32 %v2629_v43, %v2522_v2 }
 0x33c   : > { %v6869_v56 = vadd.f32 %v2801_v7, %v2719_v44  ;;  %v2635_v16 = vpop.f32.mrf.mxu1  ;;  %v2432_v44 = vadd.f32 %v6802_v59, %v2317_v40  ;;  %v2531_v31 = vpop.f32.mrf.mxu0 }
 0x33e   : > { %v2859_v42 = vsel %vm1515_vm1, %v6869_v56, -inf }
 0x33f   : > { %2860 = vmax.xlane.f32.xlu2 %v2859_v42 }
 0x341   : > { %v2722_v32 = vpop.f32.mrf.mxu2  ;;  %v2809_v62 = vpop.f32.mrf.mxu3 }
 0x342   : > { %v2723_v52 = vadd.f32 %v2722_v32, %v2618_v26  ;;  %v2527_v32 = vadd.f32 %v2526_v54, %v2432_v44 }
 0x344   : > { %v6874_v17 = vadd.f32 %v2805_v6, %v2723_v52  ;;  %v2641_v59 = vpop.f32.mrf.mxu1  ;;  %v2536_v43 = vpop.f32.mrf.mxu0 }
 0x346   : > { %v2862_v38 = vsel %vm1515_vm1, %v6874_v17, -inf }
 0x347   : > { %2863 = vmax.xlane.f32.xlu0 %v2862_v38 }
 0x349   : > { %v2726_v27 = vpop.f32.mrf.mxu2  ;;  %v2813_v41 = vpop.f32.mrf.mxu3 }
 0x34a   : > { %v2727_v58 = vadd.f32 %v2726_v27, %v2624_v47  ;;  %v2636_v47 = vadd.f32 %v2635_v16, %v2527_v32 }
 0x34c   : > { %v6879_v49 = vadd.f32 %v2809_v62, %v2727_v58  ;;  %v2215_v58 = vld [vmem:[%s8398_s13 + $0x58] sm:$0xff]  ;;  %v2541_v2 = vpop.f32.mrf.mxu0 }
 0x34e   : > { %v2865_v14 = vsel %vm1515_vm1, %v6879_v49, -inf }
 0x34f   : > { %2866 = vmax.xlane.f32.xlu2 %v2865_v14 }
 0x351   : > { %v2730_v57 = vpop.f32.mrf.mxu2  ;;  %v2817_v42 = vpop.f32.mrf.mxu3 }
 0x352   : > { %v2731_v6 = vadd.f32 %v2730_v57, %v2630_v24 }
 0x354   : > { %v6903_v21 = vadd.f32 %v2813_v41, %v2731_v6  ;;  %v2217_v6 = vld [vmem:[%s8398_s13 + $0x68] sm:$0xff] }
 0x359   : > { %v2734_v7 = vpop.f32.mrf.mxu2  ;;  %v2821_v39 = vpop.f32.mrf.mxu3 }
 0x35a   : > { %v2735_v14 = vadd.f32 %v2734_v7, %v2636_v47 }
 0x35c   : > { %v6917_v10 = vadd.f32 %v2817_v42, %v2735_v14 }
 0x35e   : > { %v2871_v40 = vsel %vm1515_vm1, %v6917_v10, -inf }
 0x361   : > { %v2738_v52 = vpop.f32.mrf.mxu2 }
 0x369   : > { %v2742_v54 = vpop.f32.mrf.mxu2 }
 0x38a   : > { %v2846_v18 = vpop.xlane.xlu0 %2845 }
 0x38b   : > { %v2892_v19 = vsub.f32 %v6844_v33, %v2846_v18  ;;  %v2647_v18 = vpop.f32.mrf.mxu1 }
 0x38d   : > { %v2908_v55 = vmul.f32 1.442695, %v2892_v19 }
 0x38f   : > { %5648 = vpow2.f32 %v2908_v55  ;;  %v2216_v55 = vld [vmem:[%s8398_s13 + $0x60] sm:$0xff] }
 0x392   : > { %v2849_v9 = vpop.xlane.xlu0 %2848 }
 0x393   : > { %v2893_v30 = vsub.f32 %v6849_v35, %v2849_v9  ;;  %v2325_v35 = vadd.f32 %v6812_v13, %v2214_v36  ;;  %v2868_v13 = vsel %vm1515_vm1, %v6903_v21, -inf  ;;  %v2825_v9 = vpop.f32.mrf.mxu3 }
 0x395   : > { %v6895_v33 = vpop.eup %5648  ;;  %v2910_v26 = vmul.f32 1.442695, %v2893_v30  ;;  %v2436_v3 = vadd.f32 %v6808_v28, %v2325_v35  ;;  %v2333_v28 = vadd.f32 %v6818_v53, %v2215_v58 }
 0x396   : > { %v2940_v8 = vsel %vm1515_vm1, %v6895_v33, 0.0 }
 0x397   : > { %5650 = vpow2.f32 %v2910_v26  ;;  %2941 = vadd.xlane.f32.xlu1 %v2940_v8  ;;  %v2440_v19 = vadd.f32 %v6814_v20, %v2333_v28  ;;  %v2341_v20 = vadd.f32 %v6824_v63, %v2216_v55  ;;  %v2653_v26 = vpop.f32.mrf.mxu1  ;;  %v2746_v8 = vpop.f32.mrf.mxu2 }
 0x39a   : > { %v2852_v23 = vpop.xlane.xlu1 %2851 }
 0x39b   : > { %v2894_v38 = vsub.f32 %v6854_v15, %v2852_v23  ;;  %v2532_v15 = vadd.f32 %v2531_v31, %v2436_v3  ;;  %v2444_v31 = vadd.f32 %v6820_v12, %v2341_v20  ;;  %v2349_v12 = vadd.f32 %v6830_v1, %v2217_v6  ;;  %v2829_v3 = vpop.f32.mrf.mxu3 }
 0x39d   : > { %v6907_v27 = vpop.eup %5650  ;;  %v2912_v62 = vmul.f32 1.442695, %v2894_v38  ;;  %v2642_v4 = vadd.f32 %v2641_v59, %v2532_v15  ;;  %v2546_v38 = vpop.f32.mrf.mxu0  ;;  %v2448_v58 = vadd.f32 %v6826_v45, %v2349_v12 }
 0x39e   : > { %v2943_v50 = vsel %vm1515_vm1, %v6907_v27, 0.0 }
 0x39f   : > { %5652 = vpow2.f32 %v2912_v62  ;;  %2869 = vmax.xlane.f32.xlu1 %v2868_v13  ;;  %2944 = vadd.xlane.f32.xlu0 %v2943_v50  ;;  %v2739_v7 = vadd.f32 %v2738_v52, %v2642_v4  ;;  %v2218_v13 = vld [vmem:[%s8398_s13 + $0x70] sm:$0xff]  ;;  %v2659_v28 = vpop.f32.mrf.mxu1  ;;  %v2750_v15 = vpop.f32.mrf.mxu2 }
 0x3a0   : > { %v2357_v45 = vadd.f32 %v6836_v61, %v2218_v13 }
 0x3a1   : > { %v6931_v44 = vadd.f32 %v2821_v39, %v2739_v7 }
 0x3a2   : > { %v2855_v57 = vpop.xlane.xlu1 %2854 }
 0x3a3   : > { %v2895_v41 = vsub.f32 %v6859_v46, %v2855_v57  ;;  %v2537_v46 = vadd.f32 %v2536_v43, %v2440_v19  ;;  %v2874_v32 = vsel %vm1515_vm1, %v6931_v44, -inf  ;;  %v2833_v7 = vpop.f32.mrf.mxu3 }
 0x3a5   : > { %v6921_v25 = vpop.eup %5652  ;;  %v2914_v16 = vmul.f32 1.442695, %v2895_v41  ;;  %v2648_v36 = vadd.f32 %v2647_v18, %v2537_v46  ;;  %v2452_v41 = vadd.f32 %v6832_v11, %v2357_v45  ;;  %v2551_v55 = vpop.f32.mrf.mxu0 }
 0x3a6   : > { %v2946_v53 = vsel %vm1515_vm1, %v6921_v25, 0.0 }
 0x3a7   : > { %5654 = vpow2.f32 %v2914_v16  ;;  %2947 = vadd.xlane.f32.xlu2 %v2946_v53  ;;  %2872 = vmax.xlane.f32.xlu0 %v2871_v40  ;;  %v2743_v35 = vadd.f32 %v2742_v54, %v2648_v36  ;;  %v2219_v16 = vld [vmem:[%s8398_s13 + $0x78] sm:$0xff]  ;;  %v2665_v46 = vpop.f32.mrf.mxu1 }
 0x3a8   : > { %v2365_v11 = vadd.f32 %v6841_v37, %v2219_v16 }
 0x3a9   : > { %v6945_v23 = vadd.f32 %v2825_v9, %v2743_v35 }
 0x3aa   : > { %v2858_v30 = vpop.xlane.xlu2 %2857 }
 0x3ab   : > { %v2896_v24 = vsub.f32 %v6864_v34, %v2858_v30  ;;  %v2542_v34 = vadd.f32 %v2541_v2, %v2444_v31  ;;  %v2877_v1 = vsel %vm1515_vm1, %v6945_v23, -inf  ;;  %v2754_v2 = vpop.f32.mrf.mxu2  ;;  %v2456_v31 = vadd.f32 %v6838_v22, %v2365_v11 }
 0x3ad   : > { %v6935_v42 = vpop.eup %5654  ;;  %v2916_v63 = vmul.f32 1.442695, %v2896_v24  ;;  %v2654_v62 = vadd.f32 %v2653_v26, %v2542_v34  ;;  %v2556_v35 = vpop.f32.mrf.mxu0 }
 0x3ae   : > { %v2949_v59 = vsel %vm1515_vm1, %v6935_v42, 0.0 }
 0x3af   : > { %5656 = vpow2.f32 %v2916_v63  ;;  %2875 = vmax.xlane.f32.xlu2 %v2874_v32  ;;  %2950 = vadd.xlane.f32.xlu1 %v2949_v59  ;;  %v2747_v43 = vadd.f32 %v2746_v8, %v2654_v62  ;;  %v2837_v32 = vpop.f32.mrf.mxu3  ;;  %v2557_v59 = vadd.f32 %v2556_v35, %v2456_v31  ;;  %v2671_v22 = vpop.f32.mrf.mxu1 }
 0x3b1   : > { %v6959_v18 = vadd.f32 %v2829_v3, %v2747_v43  ;;  %v2672_v34 = vadd.f32 %v2671_v22, %v2557_v59 }
 0x3b2   : > { %v2861_v52 = vpop.xlane.xlu2 %2860 }
 0x3b3   : > { %v2897_v47 = vsub.f32 %v6869_v56, %v2861_v52  ;;  %v2547_v56 = vadd.f32 %v2546_v38, %v2448_v58  ;;  %v2880_v20 = vsel %vm1515_vm1, %v6959_v18, -inf  ;;  %v2758_v12 = vpop.f32.mrf.mxu2 }
 0x3b4   : > { %v2759_v38 = vadd.f32 %v2758_v12, %v2672_v34 }
 0x3b5   : > { %v6949_v14 = vpop.eup %5656  ;;  %v2918_v50 = vmul.f32 1.442695, %v2897_v47  ;;  %v2660_v19 = vadd.f32 %v2659_v28, %v2547_v56 }
 0x3b6   : > { %v2952_v39 = vsel %vm1515_vm1, %v6949_v14, 0.0 }
 0x3b7   : > { %5658 = vpow2.f32 %v2918_v50  ;;  %2878 = vmax.xlane.f32.xlu1 %v2877_v1  ;;  %2953 = vadd.xlane.f32.xlu0 %v2952_v39  ;;  %v2751_v40 = vadd.f32 %v2750_v15, %v2660_v19  ;;  %v2841_v58 = vpop.f32.mrf.mxu3 }
 0x3b8   : > { %v6991_v62 = vadd.f32 %v2841_v58, %v2759_v38 }
 0x3b9   : > { %v6973_v30 = vadd.f32 %v2833_v7, %v2751_v40 }
 0x3ba   : > { %v2864_v57 = vpop.xlane.xlu0 %2863  ;;  %v2889_v13 = vsel %vm1515_vm1, %v6991_v62, -inf }
 0x3bb   : > { %v2898_v54 = vsub.f32 %v6874_v17, %v2864_v57  ;;  %v2552_v17 = vadd.f32 %v2551_v55, %v2452_v41  ;;  %v2883_v63 = vsel %vm1515_vm1, %v6973_v30, -inf }
 0x3bd   : > { %v6963_v4 = vpop.eup %5658  ;;  %v2920_v53 = vmul.f32 1.442695, %v2898_v54  ;;  %v2666_v36 = vadd.f32 %v2665_v46, %v2552_v17 }
 0x3be   : > { %v2955_v61 = vsel %vm1515_vm1, %v6963_v4, 0.0 }
 0x3bf   : > { %5660 = vpow2.f32 %v2920_v53  ;;  %2956 = vadd.xlane.f32.xlu2 %v2955_v61  ;;  %2881 = vmax.xlane.f32.xlu0 %v2880_v20  ;;  %v2755_v8 = vadd.f32 %v2754_v2, %v2666_v36 }
 0x3c2   : > { %v2867_v9 = vpop.xlane.xlu2 %2866 }
 0x3c3   : > { %v2899_v24 = vsub.f32 %v6879_v49, %v2867_v9  ;;  %v6983_v49 = vadd.f32 %v2837_v32, %v2755_v8 }
 0x3c5   : > { %v6977_v26 = vpop.eup %5660  ;;  %v2922_v6 = vmul.f32 1.442695, %v2899_v24  ;;  %v2886_v47 = vsel %vm1515_vm1, %v6983_v49, -inf }
 0x3c6   : > { %v2958_v37 = vsel %vm1515_vm1, %v6977_v26, 0.0 }
 0x3c7   : > { %5662 = vpow2.f32 %v2922_v6  ;;  %2884 = vmax.xlane.f32.xlu2 %v2883_v63  ;;  %2959 = vadd.xlane.f32.xlu1 %v2958_v37 }
 0x3cd   : > { %v6985_v52 = vpop.eup %5662 }
 0x3ce   : > { %v2961_v3 = vsel %vm1515_vm1, %v6985_v52, 0.0 }
 0x3cf   : > { %2962 = vadd.xlane.f32.xlu0 %v2961_v3  ;;  %2887 = vmax.xlane.f32.xlu1 %v2886_v47 }
 0x3d7   : > { %2890 = vmax.xlane.f32.xlu0 %v2889_v13 }
 0x40a   : > { %v2942_v50 = vpop.xlane.xlu1 %2941 }
 0x40b   : > { %5664 = vrcp.f32 %v2942_v50 }
 0x411   : > { %v5665_v43 = vpop.eup %5664 }
 0x412   : > { %v3004_v1 = vmul.f32 %v5665_v43, %v2942_v50  ;;  %v2870_v39 = vpop.xlane.xlu1 %2869  ;;  %v2945_v28 = vpop.xlane.xlu0 %2944 }
 0x413   : > { %v2900_v15 = vsub.f32 %v6903_v21, %v2870_v39  ;;  %5666 = vrcp.f32 %v2945_v28 }
 0x414   : > { %v3020_v45 = vsub.f32 2.0, %v3004_v1 }
 0x415   : > { %v2924_v56 = vmul.f32 1.442695, %v2900_v15 }
 0x416   : > { %v3036_v57 = vmul.f32 %v5665_v43, %v3020_v45 }
 0x417   : > { %5668 = vpow2.f32 %v2924_v56 }
 0x418   : > { %v3052_v54 = vmul.f32 %v6895_v33, %v3036_v57 }
 0x419   : > { %v5667_v41 = vpop.eup %5666 }
 0x41a   : > { %v3069_v19 = vsel %vm1515_vm1, %v3052_v54, 0  ;;  %v3005_v55 = vmul.f32 %v5667_v41, %v2945_v28  ;;  %v2948_v16 = vpop.xlane.xlu2 %2947  ;;  %v2873_v7 = vpop.xlane.xlu0 %2872 }
 0x41b   : > { %v6998_v53 = vand.u32 4294901760, %v3069_v19  ;;  %5670 = vrcp.f32 %v2948_v16  ;;  %v2901_v40 = vsub.f32 %v6917_v10, %v2873_v7 }
 0x41c   : > { %v3021_v61 = vsub.f32 2.0, %v3005_v55 }
 0x41d   : > { %v7001_v21 = vpop.eup %5668  ;;  %v3135_v20 = vsub.f32 %v3069_v19, %v6998_v53  ;;  %v2926_v11 = vmul.f32 1.442695, %v2901_v40  ;;  %3290 = vmatmul.f32.vlgmr.msrb.gmra.mxu1 %v6998_v53 }
 0x41e   : > { %v3037_v33 = vmul.f32 %v5667_v41, %v3021_v61  ;;  %v2964_v17 = vsel %vm1515_vm1, %v7001_v21, 0.0 }
 0x41f   : > { %5672 = vpow2.f32 %v2926_v11  ;;  %3376 = vmatmul.f32.vlgmr.msrb.gmra.mxu2 %v3135_v20  ;;  %2965 = vadd.xlane.f32.xlu2 %v2964_v17  ;;  %v3136_v46 = vand.u32 4294901760, %v3135_v20 }
 0x420   : > { %v3053_v2 = vmul.f32 %v6907_v27, %v3037_v33 }
 0x421   : > { %v5671_v9 = vpop.eup %5670  ;;  %3476 = vmatmul.f32.vlgmr.msrb.gmra.mxu3 %v3136_v46  ;;  %v3137_v10 = vsub.f32 %v3135_v20, %v3136_v46 }
 0x422   : > { %v3072_v24 = vsel %vm1515_vm1, %v3053_v2, 0  ;;  %v3006_v31 = vmul.f32 %v5671_v9, %v2948_v16  ;;  %v2876_v36 = vpop.xlane.xlu2 %2875  ;;  %v2951_v6 = vpop.xlane.xlu1 %2950 }
 0x423   : > { %v2902_v8 = vsub.f32 %v6931_v44, %v2876_v36  ;;  %5674 = vrcp.f32 %v2951_v6  ;;  %v3138_v63 = vand.u32 4294901760, %v3137_v10  ;;  %v7010_v37 = vand.u32 4294901760, %v3072_v24 }
 0x424   : > { %v3022_v35 = vsub.f32 2.0, %v3006_v31 }
 0x425   : > { %v7012_v32 = vpop.eup %5672  ;;  %v2928_v59 = vmul.f32 1.442695, %v2902_v8  ;;  %3139 = vmatmul.f32.vlgmr.msrb.gmra.mxu0 %v3138_v63  ;;  %3294 = vmatmul.f32.gmra.mxu1 %v7010_v37  ;;  %v3143_v27 = vsub.f32 %v3072_v24, %v7010_v37 }
 0x426   : > { %v3038_v22 = vmul.f32 %v5671_v9, %v3022_v35  ;;  %v2967_v12 = vsel %vm1515_vm1, %v7012_v32, 0.0 }
 0x427   : > { %5676 = vpow2.f32 %v2928_v59  ;;  %3381 = vmatmul.f32.gmra.mxu2 %v3143_v27  ;;  %2968 = vadd.xlane.f32.xlu1 %v2967_v12  ;;  %v3144_v44 = vand.u32 4294901760, %v3143_v27 }
 0x428   : > { %v3054_v34 = vmul.f32 %v6921_v25, %v3038_v22 }
 0x429   : > { %v5675_v38 = vpop.eup %5674  ;;  %3482 = vmatmul.f32.gmra.mxu3 %v3144_v44  ;;  %v3145_v3 = vsub.f32 %v3143_v27, %v3144_v44 }
 0x42a   : > { %v3075_v47 = vsel %vm1515_vm1, %v3054_v34, 0  ;;  %v3007_v58 = vmul.f32 %v5675_v38, %v2951_v6  ;;  %v2879_v13 = vpop.xlane.xlu1 %2878  ;;  %v2954_v50 = vpop.xlane.xlu0 %2953 }
 0x42b   : > { %v2903_v43 = vsub.f32 %v6945_v23, %v2879_v13  ;;  %5678 = vrcp.f32 %v2954_v50  ;;  %v3146_v1 = vand.u32 4294901760, %v3145_v3  ;;  %v7021_v39 = vand.u32 4294901760, %v3075_v47 }
 0x42c   : > { %v3023_v28 = vsub.f32 2.0, %v3007_v58 }
 0x42d   : > { %v7023_v15 = vpop.eup %5676  ;;  %v2930_v45 = vmul.f32 1.442695, %v2903_v43  ;;  %3147 = vmatmul.f32.gmra.mxu0 %v3146_v1  ;;  %3298 = vmatmul.f32.gmra.mxu1 %v7021_v39  ;;  %v3151_v25 = vsub.f32 %v3075_v47, %v7021_v39 }
 0x42e   : > { %v3039_v56 = vmul.f32 %v5675_v38, %v3023_v28  ;;  %v2970_v57 = vsel %vm1515_vm1, %v7023_v15, 0.0 }
 0x42f   : > { %5680 = vpow2.f32 %v2930_v45  ;;  %2971 = vadd.xlane.f32.xlu2 %v2970_v57  ;;  %3386 = vmatmul.f32.gmra.mxu2 %v3151_v25  ;;  %v3152_v23 = vand.u32 4294901760, %v3151_v25 }
 0x430   : > { %v3055_v54 = vmul.f32 %v6935_v42, %v3039_v56 }
 0x431   : > { %v5679_v41 = vpop.eup %5678  ;;  %3488 = vmatmul.f32.gmra.mxu3 %v3152_v23  ;;  %v3153_v19 = vsub.f32 %v3151_v25, %v3152_v23 }
 0x432   : > { %v3078_v55 = vsel %vm1515_vm1, %v3055_v54, 0  ;;  %v3008_v16 = vmul.f32 %v5679_v41, %v2954_v50  ;;  %v2957_v7 = vpop.xlane.xlu2 %2956  ;;  %v2882_v40 = vpop.xlane.xlu0 %2881 }
 0x433   : > { %5682 = vrcp.f32 %v2957_v7  ;;  %v2904_v61 = vsub.f32 %v6959_v18, %v2882_v40  ;;  %v3154_v20 = vand.u32 4294901760, %v3153_v19  ;;  %v7032_v11 = vand.u32 4294901760, %v3078_v55 }
 0x434   : > { %v3024_v33 = vsub.f32 2.0, %v3008_v16 }
 0x435   : > { %v7034_v17 = vpop.eup %5680  ;;  %v2932_v46 = vmul.f32 1.442695, %v2904_v61  ;;  %3155 = vmatmul.f32.gmra.mxu0 %v3154_v20  ;;  %3302 = vmatmul.f32.gmra.mxu1 %v7032_v11  ;;  %v3159_v42 = vsub.f32 %v3078_v55, %v7032_v11 }
 0x436   : > { %v3040_v2 = vmul.f32 %v5679_v41, %v3024_v33  ;;  %v2973_v9 = vsel %vm1515_vm1, %v7034_v17, 0.0 }
 0x437   : > { %5684 = vpow2.f32 %v2932_v46  ;;  %3391 = vmatmul.f32.gmra.mxu2 %v3159_v42  ;;  %2974 = vadd.xlane.f32.xlu0 %v2973_v9  ;;  %v3160_v18 = vand.u32 4294901760, %v3159_v42 }
 0x438   : > { %v3056_v10 = vmul.f32 %v6949_v14, %v3040_v2 }
 0x439   : > { %v5683_v24 = vpop.eup %5682  ;;  %3494 = vmatmul.f32.gmra.mxu3 %v3160_v18  ;;  %v3161_v31 = vsub.f32 %v3159_v42, %v3160_v18 }
 0x43a   : > { %v3081_v36 = vsel %vm1515_vm1, %v3056_v10, 0  ;;  %v3009_v6 = vmul.f32 %v5683_v24, %v2957_v7  ;;  %v2885_v8 = vpop.xlane.xlu2 %2884  ;;  %v2960_v63 = vpop.xlane.xlu1 %2959 }
 0x43b   : > { %v2905_v35 = vsub.f32 %v6973_v30, %v2885_v8  ;;  %5686 = vrcp.f32 %v2960_v63  ;;  %v3162_v59 = vand.u32 4294901760, %v3161_v31  ;;  %v7043_v27 = vand.u32 4294901760, %v3081_v36 }
 0x43c   : > { %v3025_v22 = vsub.f32 2.0, %v3009_v6 }
 0x43d   : > { %v7045_v12 = vpop.eup %5684  ;;  %v2934_v44 = vmul.f32 1.442695, %v2905_v35  ;;  %3163 = vmatmul.f32.gmra.mxu0 %v3162_v59  ;;  %3306 = vmatmul.f32.gmra.mxu1 %v7043_v27  ;;  %v3167_v14 = vsub.f32 %v3081_v36, %v7043_v27 }
 0x43e   : > { %v3041_v34 = vmul.f32 %v5683_v24, %v3025_v22  ;;  %v2976_v38 = vsel %vm1515_vm1, %v7045_v12, 0.0 }
 0x43f   : > { %5688 = vpow2.f32 %v2934_v44  ;;  %3396 = vmatmul.f32.gmra.mxu2 %v3167_v14  ;;  %2977 = vadd.xlane.f32.xlu1 %v2976_v38  ;;  %v3168_v30 = vand.u32 4294901760, %v3167_v14 }
 0x440   : > { %v3057_v3 = vmul.f32 %v6963_v4, %v3041_v34 }
 0x441   : > { %v5687_v47 = vpop.eup %5686  ;;  %3500 = vmatmul.f32.gmra.mxu3 %v3168_v30  ;;  %v3169_v58 = vsub.f32 %v3167_v14, %v3168_v30 }
 0x442   : > { %v3084_v13 = vsel %vm1515_vm1, %v3057_v3, 0  ;;  %v3010_v50 = vmul.f32 %v5687_v47, %v2960_v63  ;;  %v2888_v43 = vpop.xlane.xlu1 %2887  ;;  %v2963_v1 = vpop.xlane.xlu0 %2962 }
 0x443   : > { %v2906_v28 = vsub.f32 %v6983_v49, %v2888_v43  ;;  %5690 = vrcp.f32 %v2963_v1  ;;  %v3170_v45 = vand.u32 4294901760, %v3169_v58  ;;  %v7054_v25 = vand.u32 4294901760, %v3084_v13 }
 0x444   : > { %v3026_v56 = vsub.f32 2.0, %v3010_v50 }
 0x445   : > { %v7056_v57 = vpop.eup %5688  ;;  %v2936_v23 = vmul.f32 1.442695, %v2906_v28  ;;  %3171 = vmatmul.f32.gmra.mxu0 %v3170_v45  ;;  %3310 = vmatmul.f32.gmra.mxu1 %v7054_v25  ;;  %v3175_v4 = vsub.f32 %v3084_v13, %v7054_v25 }
 0x446   : > { %v3042_v54 = vmul.f32 %v5687_v47, %v3026_v56  ;;  %v2979_v41 = vsel %vm1515_vm1, %v7056_v57, 0.0 }
 0x447   : > { %5692 = vpow2.f32 %v2936_v23  ;;  %2980 = vadd.xlane.f32.xlu2 %v2979_v41  ;;  %3401 = vmatmul.f32.gmra.mxu2 %v3175_v4  ;;  %v3176_v49 = vand.u32 4294901760, %v3175_v4 }
 0x448   : > { %v3058_v19 = vmul.f32 %v6977_v26, %v3042_v54 }
 0x449   : > { %v5691_v55 = vpop.eup %5690  ;;  %3506 = vmatmul.f32.gmra.mxu3 %v3176_v49  ;;  %v3177_v16 = vsub.f32 %v3175_v4, %v3176_v49 }
 0x44a   : > { %v3087_v7 = vsel %vm1515_vm1, %v3058_v19, 0  ;;  %v3011_v40 = vmul.f32 %v5691_v55, %v2963_v1  ;;  %v2891_v61 = vpop.xlane.xlu0 %2890 }
 0x44b   : > { %v2907_v20 = vsub.f32 %v6991_v62, %v2891_v61  ;;  %v3178_v33 = vand.u32 4294901760, %v3177_v16  ;;  %v7065_v46 = vand.u32 4294901760, %v3087_v7 }
 0x44c   : > { %v3027_v42 = vsub.f32 2.0, %v3011_v40 }
 0x44d   : > { %v7067_v2 = vpop.eup %5692  ;;  %v2938_v9 = vmul.f32 1.442695, %v2907_v20  ;;  %3179 = vmatmul.f32.gmra.mxu0 %v3178_v33  ;;  %3314 = vmatmul.f32.gmra.mxu1 %v7065_v46  ;;  %v3183_v26 = vsub.f32 %v3087_v7, %v7065_v46 }
 0x44e   : > { %v3043_v18 = vmul.f32 %v5691_v55, %v3027_v42  ;;  %v2982_v10 = vsel %vm1515_vm1, %v7067_v2, 0.0 }
 0x44f   : > { %5694 = vpow2.f32 %v2938_v9  ;;  %3406 = vmatmul.f32.gmra.mxu2 %v3183_v26  ;;  %2983 = vadd.xlane.f32.xlu0 %v2982_v10  ;;  %v3184_v62 = vand.u32 4294901760, %v3183_v26 }
 0x450   : > { %v3059_v24 = vmul.f32 %v6985_v52, %v3043_v18 }
 0x451   : > { %3512 = vmatmul.f32.gmra.mxu3 %v3184_v62  ;;  %v3185_v31 = vsub.f32 %v3183_v26, %v3184_v62 }
 0x452   : > { %v3090_v36 = vsel %vm1515_vm1, %v3059_v24, 0 }
 0x453   : > { %v3186_v6 = vand.u32 4294901760, %v3185_v31  ;;  %v7075_v8 = vand.u32 4294901760, %v3090_v36 }
 0x455   : > { %v7077_v63 = vpop.eup %5694  ;;  %3187 = vmatmul.f32.gmra.mxu0 %v3186_v6  ;;  %3318 = vmatmul.f32.gmra.mxu1 %v7075_v8  ;;  %v3191_v35 = vsub.f32 %v3090_v36, %v7075_v8 }
 0x456   : > { %v2985_v59 = vsel %vm1515_vm1, %v7077_v63, 0.0 }
 0x457   : > { %3411 = vmatmul.f32.gmra.mxu2 %v3191_v35  ;;  %2986 = vadd.xlane.f32.xlu1 %v2985_v59  ;;  %v3192_v52 = vand.u32 4294901760, %v3191_v35 }
 0x459   : > { %3518 = vmatmul.f32.gmra.mxu3 %v3192_v52  ;;  %v3193_v22 = vsub.f32 %v3191_v35, %v3192_v52 }
 0x45b   : > { %v3194_v44 = vand.u32 4294901760, %v3193_v22 }
 0x45d   : > { %3195 = vmatmul.f32.gmra.mxu0 %v3194_v44 }
 0x492   : > { %v2966_v14 = vpop.xlane.xlu2 %2965 }
 0x493   : > { %5696 = vrcp.f32 %v2966_v14 }
 0x499   : > { %v5697_v34 = vpop.eup %5696 }
 0x49a   : > { %v3012_v38 = vmul.f32 %v5697_v34, %v2966_v14  ;;  %v2969_v30 = vpop.xlane.xlu1 %2968 }
 0x49b   : > { %5698 = vrcp.f32 %v2969_v30 }
 0x49c   : > { %v3028_v3 = vsub.f32 2.0, %v3012_v38 }
 0x49e   : > { %v3044_v47 = vmul.f32 %v5697_v34, %v3028_v3 }
 0x4a0   : > { %v3060_v58 = vmul.f32 %v7001_v21, %v3044_v47 }
 0x4a1   : > { %v5699_v13 = vpop.eup %5698 }
 0x4a2   : > { %v3093_v50 = vsel %vm1515_vm1, %v3060_v58, 0  ;;  %v3013_v43 = vmul.f32 %v5699_v13, %v2969_v30  ;;  %v2972_v1 = vpop.xlane.xlu2 %2971 }
 0x4a3   : > { %v7085_v28 = vand.u32 4294901760, %v3093_v50  ;;  %5700 = vrcp.f32 %v2972_v1 }
 0x4a4   : > { %v3029_v45 = vsub.f32 2.0, %v3013_v43 }
 0x4a5   : > { %3322 = vmatmul.f32.gmra.mxu1 %v7085_v28  ;;  %v3199_v56 = vsub.f32 %v3093_v50, %v7085_v28 }
 0x4a6   : > { %v3045_v23 = vmul.f32 %v5699_v13, %v3029_v45 }
 0x4a7   : > { %3416 = vmatmul.f32.gmra.mxu2 %v3199_v56  ;;  %v3200_v4 = vand.u32 4294901760, %v3199_v56 }
 0x4a8   : > { %v3061_v54 = vmul.f32 %v7012_v32, %v3045_v23 }
 0x4a9   : > { %3524 = vmatmul.f32.gmra.mxu3 %v3200_v4  ;;  %v3201_v21 = vsub.f32 %v3199_v56, %v3200_v4  ;;  %v5701_v41 = vpop.eup %5700 }
 0x4aa   : > { %v3096_v49 = vsel %vm1515_vm1, %v3061_v54, 0  ;;  %v3014_v19 = vmul.f32 %v5701_v41, %v2972_v1  ;;  %v2975_v55 = vpop.xlane.xlu0 %2974 }
 0x4ab   : > { %v3202_v16 = vand.u32 4294901760, %v3201_v21  ;;  %v7091_v7 = vand.u32 4294901760, %v3096_v49  ;;  %5702 = vrcp.f32 %v2975_v55 }
 0x4ac   : > { %v3030_v40 = vsub.f32 2.0, %v3014_v19 }
 0x4ad   : > { %3203 = vmatmul.f32.gmra.mxu0 %v3202_v16  ;;  %3326 = vmatmul.f32.gmra.mxu1 %v7091_v7  ;;  %v3207_v61 = vsub.f32 %v3096_v49, %v7091_v7 }
 0x4ae   : > { %v3046_v20 = vmul.f32 %v5701_v41, %v3030_v40 }
 0x4af   : > { %3421 = vmatmul.f32.gmra.mxu2 %v3207_v61  ;;  %v3208_v32 = vand.u32 4294901760, %v3207_v61 }
 0x4b0   : > { %v3062_v33 = vmul.f32 %v7023_v15, %v3046_v20 }
 0x4b1   : > { %3530 = vmatmul.f32.gmra.mxu3 %v3208_v32  ;;  %v3209_v42 = vsub.f32 %v3207_v61, %v3208_v32  ;;  %v5703_v9 = vpop.eup %5702 }
 0x4b2   : > { %v3099_v26 = vsel %vm1515_vm1, %v3062_v33, 0  ;;  %v3015_v18 = vmul.f32 %v5703_v9, %v2975_v55  ;;  %v2978_v10 = vpop.xlane.xlu1 %2977 }
 0x4b3   : > { %v3210_v62 = vand.u32 4294901760, %v3209_v42  ;;  %5704 = vrcp.f32 %v2978_v10  ;;  %v7097_v24 = vand.u32 4294901760, %v3099_v26 }
 0x4b4   : > { %v3031_v31 = vsub.f32 2.0, %v3015_v18 }
 0x4b5   : > { %3211 = vmatmul.f32.gmra.mxu0 %v3210_v62  ;;  %3330 = vmatmul.f32.gmra.mxu1 %v7097_v24  ;;  %v3215_v36 = vsub.f32 %v3099_v26, %v7097_v24 }
 0x4b6   : > { %v3047_v6 = vmul.f32 %v5703_v9, %v3031_v31 }
 0x4b7   : > { %3426 = vmatmul.f32.gmra.mxu2 %v3215_v36  ;;  %v3216_v15 = vand.u32 4294901760, %v3215_v36 }
 0x4b8   : > { %v3063_v35 = vmul.f32 %v7034_v17, %v3047_v6  ;;  %v7123_v6 = vpop.f32.mrf.mxu1 }
 0x4b9   : > { %v5705_v59 = vpop.eup %5704  ;;  %3536 = vmatmul.f32.gmra.mxu3 %v3216_v15  ;;  %v3217_v22 = vsub.f32 %v3215_v36, %v3216_v15 }
 0x4ba   : > { %v2981_v52 = vpop.xlane.xlu2 %2980  ;;  %v3102_v44 = vsel %vm1515_vm1, %v3063_v35, 0  ;;  %v3016_v14 = vmul.f32 %v5705_v59, %v2978_v10 }
 0x4bb   : > { %5706 = vrcp.f32 %v2981_v52  ;;  %v3218_v34 = vand.u32 4294901760, %v3217_v22  ;;  %v7103_v38 = vand.u32 4294901760, %v3102_v44 }
 0x4bc   : > { %v3032_v30 = vsub.f32 2.0, %v3016_v14 }
 0x4bd   : > { %3219 = vmatmul.f32.gmra.mxu0 %v3218_v34  ;;  %3334 = vmatmul.f32.gmra.mxu1 %v7103_v38  ;;  %v3223_v3 = vsub.f32 %v3102_v44, %v7103_v38 }
 0x4be   : > { %v3048_v47 = vmul.f32 %v5705_v59, %v3032_v30  ;;  %v7131_v30 = vpop.f32.mrf.mxu0 }
 0x4bf   : > { %3431 = vmatmul.f32.gmra.mxu2 %v3223_v3  ;;  %v3224_v17 = vand.u32 4294901760, %v3223_v3 }
 0x4c0   : > { %v3064_v13 = vmul.f32 %v7045_v12, %v3048_v47  ;;  %v7134_v47 = vpop.f32.mrf.mxu2 }
 0x4c1   : > { %v5707_v58 = vpop.eup %5706  ;;  %3542 = vmatmul.f32.gmra.mxu3 %v3224_v17  ;;  %v3225_v1 = vsub.f32 %v3223_v3, %v3224_v17  ;;  %v7136_v17 = vpop.f32.mrf.mxu1 }
 0x4c2   : > { %v3017_v50 = vmul.f32 %v5707_v58, %v2981_v52  ;;  %v2984_v43 = vpop.xlane.xlu0 %2983  ;;  %v3105_v45 = vsel %vm1515_vm1, %v3064_v13, 0 }
 0x4c3   : > { %5708 = vrcp.f32 %v2984_v43  ;;  %v3226_v23 = vand.u32 4294901760, %v3225_v1  ;;  %v7109_v4 = vand.u32 4294901760, %v3105_v45 }
 0x4c4   : > { %v3033_v56 = vsub.f32 2.0, %v3017_v50 }
 0x4c5   : > { %3227 = vmatmul.f32.gmra.mxu0 %v3226_v23  ;;  %3338 = vmatmul.f32.gmra.mxu1 %v7109_v4  ;;  %v3231_v21 = vsub.f32 %v3105_v45, %v7109_v4 }
 0x4c6   : > { %v3049_v54 = vmul.f32 %v5707_v58, %v3033_v56  ;;  %v7139_v58 = vpop.f32.mrf.mxu3 }
 0x4c7   : > { %3436 = vmatmul.f32.gmra.mxu2 %v3231_v21  ;;  %v3232_v12 = vand.u32 4294901760, %v3231_v21 }
 0x4c8   : > { %v3065_v41 = vmul.f32 %v7056_v57, %v3049_v54  ;;  %v7146_v45 = vpop.f32.mrf.mxu2 }
 0x4c9   : > { %v5709_v49 = vpop.eup %5708  ;;  %3548 = vmatmul.f32.gmra.mxu3 %v3232_v12  ;;  %v3233_v40 = vsub.f32 %v3231_v21, %v3232_v12  ;;  %v7144_v1 = vpop.f32.mrf.mxu1 }
 0x4ca   : > { %v3108_v19 = vsel %vm1515_vm1, %v3065_v41, 0  ;;  %v3018_v55 = vmul.f32 %v5709_v49, %v2984_v43  ;;  %v2987_v16 = vpop.xlane.xlu1 %2986  ;;  %v7141_v43 = vpop.f32.mrf.mxu0 }
 0x4cb   : > { %5710 = vrcp.f32 %v2987_v16  ;;  %v7115_v61 = vand.u32 4294901760, %v3108_v19  ;;  %v3234_v32 = vand.u32 4294901760, %v3233_v40 }
 0x4cc   : > { %v3034_v20 = vsub.f32 2.0, %v3018_v55 }
 0x4cd   : > { %v3239_v33 = vsub.f32 %v3108_v19, %v7115_v61  ;;  %3235 = vmatmul.f32.gmra.mxu0 %v3234_v32  ;;  %3342 = vmatmul.f32.gmra.mxu1 %v7115_v61 }
 0x4ce   : > { %v3050_v42 = vmul.f32 %v5709_v49, %v3034_v20  ;;  %v7148_v56 = vpop.f32.mrf.mxu3 }
 0x4cf   : > { %v3240_v57 = vand.u32 4294901760, %v3239_v33  ;;  %3441 = vmatmul.f32.gmra.mxu2 %v3239_v33 }
 0x4d0   : > { %v3066_v9 = vmul.f32 %v7067_v2, %v3050_v42  ;;  %v7156_v21 = vpop.f32.mrf.mxu2 }
 0x4d1   : > { %v5711_v26 = vpop.eup %5710  ;;  %v3241_v18 = vsub.f32 %v3239_v33, %v3240_v57  ;;  %3554 = vmatmul.f32.gmra.mxu3 %v3240_v57  ;;  %v7154_v54 = vpop.f32.mrf.mxu1 }
 0x4d2   : > { %v3111_v10 = vsel %vm1515_vm1, %v3066_v9, 0  ;;  %v3019_v62 = vmul.f32 %v5711_v26, %v2987_v16  ;;  %v7152_v23 = vpop.f32.mrf.mxu0 }
 0x4d3   : > { %v3242_v31 = vand.u32 4294901760, %v3241_v18  ;;  %v7121_v36 = vand.u32 4294901760, %v3111_v10 }
 0x4d4   : > { %v3035_v15 = vsub.f32 2.0, %v3019_v62 }
 0x4d5   : > { %v3247_v35 = vsub.f32 %v3111_v10, %v7121_v36  ;;  %3243 = vmatmul.f32.gmra.mxu0 %v3242_v31  ;;  %3346 = vmatmul.f32.gmra.mxu1 %v7121_v36 }
 0x4d6   : > { %v3051_v59 = vmul.f32 %v5711_v26, %v3035_v15  ;;  %v7158_v41 = vpop.f32.mrf.mxu3 }
 0x4d7   : > { %v3248_v2 = vand.u32 4294901760, %v3247_v35  ;;  %3446 = vmatmul.f32.gmra.mxu2 %v3247_v35 }
 0x4d8   : > { %v3067_v52 = vmul.f32 %v7077_v63, %v3051_v59  ;;  %v7166_v19 = vpop.f32.mrf.mxu2 }
 0x4d9   : > { %v3249_v22 = vsub.f32 %v3247_v35, %v3248_v2  ;;  %3560 = vmatmul.f32.gmra.mxu3 %v3248_v2  ;;  %v7164_v49 = vpop.f32.mrf.mxu1 }
 0x4da   : > { %v3114_v44 = vsel %vm1515_vm1, %v3067_v52, 0  ;;  %v7162_v12 = vpop.f32.mrf.mxu0 }
 0x4db   : > { %v3250_v14 = vand.u32 4294901760, %v3249_v22  ;;  %v7129_v34 = vand.u32 4294901760, %v3114_v44 }
 0x4dd   : > { %v3255_v3 = vsub.f32 %v3114_v44, %v7129_v34  ;;  %3251 = vmatmul.f32.gmra.mxu0 %v3250_v14  ;;  %3350 = vmatmul.f32.gmra.mxu1 %v7129_v34 }
 0x4df   : > { %v3256_v63 = vand.u32 4294901760, %v3255_v3  ;;  %3451 = vmatmul.f32.gmra.mxu2 %v3255_v3 }
 0x4e0   : > { %v7176_v40 = vpop.f32.mrf.mxu2 }
 0x4e1   : > { %v3257_v13 = vsub.f32 %v3255_v3, %v3256_v63  ;;  %3566 = vmatmul.f32.gmra.mxu3 %v3256_v63  ;;  %v7174_v16 = vpop.f32.mrf.mxu1 }
 0x4e2   : > { %v7172_v55 = vpop.f32.mrf.mxu0 }
 0x4e3   : > { %v3258_v50 = vand.u32 4294901760, %v3257_v13 }
 0x4e5   : > { %3259 = vmatmul.f32.gmra.mxu0 %v3258_v50  ;;  %3676 = vmatmul.f32.vlgmr.msra.gmra.mxu1 %v6998_v53 }
 0x4e8   : > { %v7188_v32 = vpop.f32.mrf.mxu2 }
 0x4ea   : > { %v7182_v20 = vpop.f32.mrf.mxu0 }
 0x4ed   : > { %3593 = vmatmul.f32.vlgmr.msra.gmra.mxu0 %v6998_v53  ;;  %3680 = vmatmul.f32.gmra.mxu1 %v7010_v37  ;;  %v7168_v53 = vpop.f32.mrf.mxu3 }
 0x4f0   : > { %v7198_v57 = vpop.f32.mrf.mxu2 }
 0x4f5   : > { %3597 = vmatmul.f32.gmra.mxu0 %v7010_v37  ;;  %3684 = vmatmul.f32.gmra.mxu1 %v7021_v39  ;;  %v7180_v37 = vpop.f32.mrf.mxu3 }
 0x4f8   : > { %v7206_v18 = vpop.f32.mrf.mxu2 }
 0x4fd   : > { %3601 = vmatmul.f32.gmra.mxu0 %v7021_v39  ;;  %3688 = vmatmul.f32.gmra.mxu1 %v7032_v11  ;;  %v7186_v39 = vpop.f32.mrf.mxu1  ;;  %v7190_v33 = vpop.f32.mrf.mxu3 }
 0x505   : > { %3605 = vmatmul.f32.gmra.mxu0 %v7032_v11  ;;  %3692 = vmatmul.f32.gmra.mxu1 %v7043_v27  ;;  %v7194_v11 = vpop.f32.mrf.mxu0  ;;  %v7196_v42 = vpop.f32.mrf.mxu1 }
 0x506   : > { %v7200_v9 = vpop.f32.mrf.mxu3 }
 0x50d   : > { %3609 = vmatmul.f32.gmra.mxu0 %v7043_v27  ;;  %3696 = vmatmul.f32.gmra.mxu1 %v7054_v25  ;;  %v7204_v27 = vpop.f32.mrf.mxu0 }
 0x515   : > { %3613 = vmatmul.f32.gmra.mxu0 %v7054_v25  ;;  %3700 = vmatmul.f32.gmra.mxu1 %v7065_v46  ;;  %v7208_v25 = vpop.f32.mrf.mxu3 }
 0x51d   : > { %3617 = vmatmul.f32.gmra.mxu0 %v7065_v46  ;;  %3704 = vmatmul.f32.gmra.mxu1 %v7075_v8 }
 0x522   : > { %v3323_v26 = vpop.f32.mrf.mxu1 }
 0x525   : > { %3621 = vmatmul.f32.gmra.mxu0 %v7075_v8  ;;  %3708 = vmatmul.f32.gmra.mxu1 %v7085_v28 }
 0x52a   : > { %v3204_v10 = vpop.f32.mrf.mxu0  ;;  %v7212_v62 = vpop.f32.mrf.mxu1 }
 0x52b   : > { %v3324_v31 = vadd.f32 %v3323_v26, %v3204_v10  ;;  %v3417_v15 = vpop.f32.mrf.mxu2  ;;  %v3296_v10 = vadd.f32 %v7136_v17, %v7141_v43  ;;  %v3304_v43 = vadd.f32 %v7154_v54, %v7162_v12  ;;  %v3312_v12 = vadd.f32 %v7174_v16, %v7182_v20 }
 0x52c   : > { %v3525_v46 = vpop.f32.mrf.mxu3  ;;  %v3320_v20 = vadd.f32 %v7196_v42, %v7204_v27 }
 0x52d   : > { %v3418_v35 = vadd.f32 %v3417_v15, %v3324_v31  ;;  %3625 = vmatmul.f32.gmra.mxu0 %v7085_v28  ;;  %3712 = vmatmul.f32.gmra.mxu1 %v7091_v7 }
 0x52f   : > { %v7216_v59 = vadd.f32 %v3525_v46, %v3418_v35  ;;  %v3383_v35 = vadd.f32 %v7146_v45, %v3296_v10 }
 0x532   : > { %v7218_v2 = vpop.f32.mrf.mxu0  ;;  %v7220_v52 = vpop.f32.mrf.mxu1 }
 0x535   : > { %3629 = vmatmul.f32.gmra.mxu0 %v7091_v7  ;;  %3716 = vmatmul.f32.gmra.mxu1 %v7097_v24 }
 0x53a   : > { %v7224_v8 = vpop.f32.mrf.mxu0  ;;  %v7226_v22 = vpop.f32.mrf.mxu1 }
 0x53d   : > { %3633 = vmatmul.f32.gmra.mxu0 %v7097_v24  ;;  %3720 = vmatmul.f32.gmra.mxu1 %v7103_v38 }
 0x542   : > { %v7230_v28 = vpop.f32.mrf.mxu0  ;;  %v7232_v44 = vpop.f32.mrf.mxu1 }
 0x545   : > { %3637 = vmatmul.f32.gmra.mxu0 %v7103_v38  ;;  %3724 = vmatmul.f32.gmra.mxu1 %v7109_v4 }
 0x54a   : > { %v7236_v14 = vpop.f32.mrf.mxu0  ;;  %v7238_v7 = vpop.f32.mrf.mxu1 }
 0x54d   : > { %3641 = vmatmul.f32.gmra.mxu0 %v7109_v4  ;;  %3728 = vmatmul.f32.gmra.mxu1 %v7115_v61  ;;  %v3292_v4 = vadd.f32 %v7123_v6, %v7131_v30  ;;  %v3484_v6 = vadd.f32 %v7148_v56, %v3383_v35  ;;  %v3300_v30 = vadd.f32 %v7144_v1, %v7152_v23 }
 0x54e   : > { %v3393_v56 = vadd.f32 %v7166_v19, %v3304_v43  ;;  %v3308_v23 = vadd.f32 %v7164_v49, %v7172_v55  ;;  %v3316_v55 = vadd.f32 %v7186_v39, %v7194_v11  ;;  %v3422_v39 = vpop.f32.mrf.mxu2 }
 0x54f   : > { %v3378_v26 = vadd.f32 %v7134_v47, %v3292_v4 }
 0x550   : > { %v3496_v1 = vadd.f32 %v7168_v53, %v3393_v56  ;;  %v3403_v53 = vadd.f32 %v7188_v32, %v3312_v12 }
 0x552   : > { %v7242_v3 = vpop.f32.mrf.mxu0  ;;  %v7244_v24 = vpop.f32.mrf.mxu1  ;;  %v3508_v49 = vadd.f32 %v7190_v33, %v3403_v53  ;;  %v3413_v33 = vadd.f32 %v7206_v18, %v3320_v20  ;;  %v3336_v20 = vadd.f32 %v7226_v22, %v7230_v28 }
 0x554   : > { %v3520_v11 = vadd.f32 %v7208_v25, %v3413_v33 }
 0x555   : > { %3645 = vmatmul.f32.gmra.mxu0 %v7115_v61  ;;  %3732 = vmatmul.f32.gmra.mxu1 %v7121_v36  ;;  %v3478_v61 = vadd.f32 %v7139_v58, %v3378_v26  ;;  %v3388_v58 = vadd.f32 %v7156_v21, %v3300_v30 }
 0x557   : > { %v3490_v17 = vadd.f32 %v7158_v41, %v3388_v58  ;;  %v3398_v41 = vadd.f32 %v7176_v40, %v3308_v23 }
 0x559   : > { %v3502_v54 = vadd.f32 %v7180_v37, %v3398_v41  ;;  %v3408_v37 = vadd.f32 %v7198_v57, %v3316_v55 }
 0x55a   : > { %v7248_v63 = vpop.f32.mrf.mxu0  ;;  %v7250_v38 = vpop.f32.mrf.mxu1 }
 0x55b   : > { %v3514_v16 = vadd.f32 %v7200_v9, %v3408_v37  ;;  %v3427_v9 = vpop.f32.mrf.mxu2 }
 0x55d   : > { %3649 = vmatmul.f32.gmra.mxu0 %v7121_v36  ;;  %3736 = vmatmul.f32.gmra.mxu1 %v7129_v34 }
 0x562   : > { %v7256_v13 = vpop.f32.mrf.mxu0  ;;  %v3677_v50 = vpop.f32.mrf.mxu1 }
 0x565   : > { %3653 = vmatmul.f32.gmra.mxu0 %v7129_v34 }
 0x56a   : > { %v3594_v31 = vpop.f32.mrf.mxu0  ;;  %v3681_v15 = vpop.f32.mrf.mxu1 }
 0x56b   : > { %v3595_v36 = vadd.f32 %v3594_v31, %v3478_v61 }
 0x56d   : > { %v7264_v46 = vadd.f32 %v3677_v50, %v3595_v36 }
 0x572   : > { %v3598_v47 = vpop.f32.mrf.mxu0  ;;  %v3685_v4 = vpop.f32.mrf.mxu1 }
 0x573   : > { %v3599_v34 = vadd.f32 %v3598_v47, %v3484_v6 }
 0x575   : > { %v7270_v26 = vadd.f32 %v3681_v15, %v3599_v34 }
 0x57a   : > { %v3602_v45 = vpop.f32.mrf.mxu0  ;;  %v3689_v50 = vpop.f32.mrf.mxu1 }
 0x57b   : > { %v3603_v61 = vadd.f32 %v3602_v45, %v3490_v17 }
 0x57d   : > { %v7276_v10 = vadd.f32 %v3685_v4, %v3603_v61  ;;  %v3531_v61 = vpop.f32.mrf.mxu3 }
 0x582   : > { %v3606_v21 = vpop.f32.mrf.mxu0  ;;  %v3693_v31 = vpop.f32.mrf.mxu1 }
 0x583   : > { %v3607_v15 = vadd.f32 %v3606_v21, %v3496_v1 }
 0x585   : > { %v7282_v36 = vadd.f32 %v3689_v50, %v3607_v15  ;;  %v3537_v18 = vpop.f32.mrf.mxu3  ;;  %v3432_v15 = vpop.f32.mrf.mxu2 }
 0x58a   : > { %v3610_v19 = vpop.f32.mrf.mxu0  ;;  %v3697_v35 = vpop.f32.mrf.mxu1 }
 0x58b   : > { %v3611_v6 = vadd.f32 %v3610_v19, %v3502_v54 }
 0x58d   : > { %v7288_v30 = vadd.f32 %v3693_v31, %v3611_v6  ;;  %v3543_v41 = vpop.f32.mrf.mxu3  ;;  %v3437_v12 = vpop.f32.mrf.mxu2 }
 0x592   : > { %v3614_v40 = vpop.f32.mrf.mxu0  ;;  %v3701_v47 = vpop.f32.mrf.mxu1 }
 0x593   : > { %v3615_v4 = vadd.f32 %v3614_v40, %v3508_v49  ;;  %v3344_v40 = vadd.f32 %v7238_v7, %v7242_v3  ;;  %v3328_v7 = vadd.f32 %v7212_v62, %v7218_v2  ;;  %v3433_v3 = vadd.f32 %v3432_v15, %v3336_v20  ;;  %v5722_v20 = vld [vmem:[#allocation8 + $0x60] sm:$0xff] }
 0x595   : > { %v7294_v34 = vadd.f32 %v3697_v35, %v3615_v4  ;;  %v3549_v19 = vpop.f32.mrf.mxu3  ;;  %v3442_v53 = vpop.f32.mrf.mxu2  ;;  %v3348_v4 = vadd.f32 %v7244_v24, %v7248_v63  ;;  %v3352_v63 = vadd.f32 %v7250_v38, %v7256_v13 }
 0x59a   : > { %v3618_v32 = vpop.f32.mrf.mxu0  ;;  %v3705_v58 = vpop.f32.mrf.mxu1 }
 0x59b   : > { %v3619_v17 = vadd.f32 %v3618_v32, %v3514_v16  ;;  %v3443_v32 = vadd.f32 %v3442_v53, %v3344_v40 }
 0x59d   : > { %v7300_v43 = vadd.f32 %v3701_v47, %v3619_v17  ;;  %v3555_v55 = vpop.f32.mrf.mxu3  ;;  %v3340_v47 = vadd.f32 %v7232_v44, %v7236_v14  ;;  %v3447_v37 = vpop.f32.mrf.mxu2 }
 0x59e   : > { %v3448_v33 = vadd.f32 %v3447_v37, %v3348_v4  ;;  %v3556_v44 = vadd.f32 %v3555_v55, %v3443_v32  ;;  %v5720_v55 = vld [vmem:[#allocation8 + $0x70] sm:$0xff] }
 0x59f   : > { %v3438_v17 = vadd.f32 %v3437_v12, %v3340_v47 }
 0x5a2   : > { %v3622_v45 = vpop.f32.mrf.mxu0  ;;  %v3709_v50 = vpop.f32.mrf.mxu1 }
 0x5a3   : > { %v3623_v57 = vadd.f32 %v3622_v45, %v3520_v11  ;;  %v3550_v45 = vadd.f32 %v3549_v19, %v3438_v17 }
 0x5a5   : > { %v7303_v56 = vadd.f32 %v3705_v58, %v3623_v57  ;;  %v3332_v58 = vadd.f32 %v7220_v52, %v7224_v8  ;;  %v3561_v11 = vpop.f32.mrf.mxu3  ;;  %v3423_v57 = vadd.f32 %v3422_v39, %v3328_v7  ;;  %v3452_v12 = vpop.f32.mrf.mxu2 }
 0x5a6   : > { %v3562_v24 = vadd.f32 %v3561_v11, %v3448_v33  ;;  %v3453_v53 = vadd.f32 %v3452_v12, %v3352_v63  ;;  %v5724_v33 = vld [vmem:[#allocation8 + $0x50] sm:$0xff] }
 0x5a7   : > { %v3428_v14 = vadd.f32 %v3427_v9, %v3332_v58  ;;  %v3532_v15 = vadd.f32 %v3531_v61, %v3423_v57 }
 0x5aa   : > { %v3626_v1 = vpop.f32.mrf.mxu0  ;;  %v7305_v23 = vpop.f32.mrf.mxu1 }
 0x5ab   : > { %v3627_v42 = vadd.f32 %v3626_v1, %v7216_v59  ;;  %v3544_v1 = vadd.f32 %v3543_v41, %v3433_v3  ;;  %v5726_v3 = vld [vmem:[#allocation8 + $0x48] sm:$0xff] }
 0x5ad   : > { %v7308_v27 = vadd.f32 %v3709_v50, %v3627_v42  ;;  %v3538_v42 = vadd.f32 %v3537_v18, %v3428_v14  ;;  %v3567_v4 = vpop.f32.mrf.mxu3 }
 0x5ae   : > { %v3568_v38 = vadd.f32 %v3567_v4, %v3453_v53  ;;  %v5729_v53 = vld [vmem:[#allocation8 + $0x30] sm:$0xff] }
 0x5b2   : > { %v3630_v21 = vpop.f32.mrf.mxu0  ;;  %v3717_v31 = vpop.f32.mrf.mxu1 }
 0x5b3   : > { %v3631_v13 = vadd.f32 %v3630_v21, %v3532_v15 }
 0x5b5   : > { %v3714_v61 = vadd.f32 %v7305_v23, %v3631_v13 }
 0x5ba   : > { %v3634_v25 = vpop.f32.mrf.mxu0  ;;  %v3721_v54 = vpop.f32.mrf.mxu1 }
 0x5bb   : > { %v3635_v9 = vadd.f32 %v3634_v25, %v3538_v42  ;;  %v5723_v25 = vld [vmem:[#allocation8 + $0x58] sm:$0xff] }
 0x5c2   : > { %v3638_v35 = vpop.f32.mrf.mxu0  ;;  %v3725_v6 = vpop.f32.mrf.mxu1 }
 0x5c3   : > { %v3639_v40 = vadd.f32 %v3638_v35, %v3544_v1  ;;  %v5728_v1 = vld [vmem:[#allocation8 + $0x38] sm:$0xff] }
 0x5c5   : > { %v3722_v37 = vadd.f32 %v3721_v54, %v3639_v40  ;;  %v3746_v40 = vmul.f32 %v5729_v53, %v7300_v43 }
 0x5ca   : > { %v3642_v49 = vpop.f32.mrf.mxu0  ;;  %v3729_v59 = vpop.f32.mrf.mxu1 }
 0x5cb   : > { %v3643_v52 = vadd.f32 %v3642_v49, %v3550_v45  ;;  %v3718_v49 = vadd.f32 %v3717_v31, %v3635_v9  ;;  %v5725_v31 = vld [vmem:[#allocation8 + $0x78] sm:$0xff] }
 0x5cd   : > { %v3726_v19 = vadd.f32 %v3725_v6, %v3643_v52  ;;  %v3751_v6 = vmul.f32 %v5723_v25, %v3722_v37  ;;  %v3750_v21 = vmul.f32 %v5724_v33, %v3718_v49  ;;  %v3747_v52 = vmul.f32 %v5728_v1, %v7303_v56  ;;  %v5731_v37 = vld [vmem:[#allocation8 + $0x20] sm:$0xff] }
 0x5cf   : > { %v3752_v18 = vmul.f32 %v5722_v20, %v3726_v19  ;;  %v7334_v14 = vand.u32 4294901760, %v3751_v6  ;;  %v5730_v19 = vld [vmem:[#allocation8 + $0x28] sm:$0xff] }
 0x5d0   : > { %v3745_v43 = vmul.f32 %v5730_v19, %v7294_v34 }
 0x5d1   : > { %v7329_v54 = vand.u32 4294901760, %v3752_v18  ;;  %v7356_v42 = vsub.f32 %v3751_v6, %v7334_v14 }
 0x5d2   : > { %v3646_v16 = vpop.f32.mrf.mxu0  ;;  %v3733_v22 = vpop.f32.mrf.mxu1 }
 0x5d3   : > { %v3647_v50 = vadd.f32 %v3646_v16, %v3556_v44  ;;  %v5721_v16 = vld [vmem:[#allocation8 + $0x68] sm:$0xff]  ;;  %v3749_v44 = vmul.f32 %v5726_v3, %v3714_v61  ;;  %v3833_v13 = vand.u32 4294901760, %v7356_v42 }
 0x5d5   : > { %v3730_v62 = vadd.f32 %v3729_v59, %v3647_v50  ;;  %v7342_v50 = vand.u32 4294901760, %v3750_v21  ;;  %v3834_v25 = vsub.f32 %v7356_v42, %v3833_v13 }
 0x5d7   : > { %v3753_v39 = vmul.f32 %v5721_v16, %v3730_v62  ;;  %v3744_v16 = vmul.f32 %v5731_v37, %v7288_v30  ;;  %v3835_v53 = vand.u32 4294901760, %v3834_v25 }
 0x5d9   : > { %v7327_v58 = vand.u32 4294901760, %v3753_v39 }
 0x5da   : > { %v3650_v28 = vpop.f32.mrf.mxu0  ;;  %v3737_v59 = vpop.f32.mrf.mxu1 }
 0x5db   : > { %v3651_v8 = vadd.f32 %v3650_v28, %v3562_v24  ;;  %v7337_v23 = vsub.f32 %v3753_v39, %v7327_v58  ;;  %v5727_v24 = vld [vmem:[#allocation8 + $0x40] sm:$0xff]  ;;  %v7387_v39 = vand.u32 4294901760, %v3746_v40 }
 0x5dc   : > { %v3748_v63 = vmul.f32 %v5727_v24, %v7308_v27  ;;  %v5734_v24 = vld [vmem:[#allocation8 + $0x8] sm:$0xff] }
 0x5dd   : > { %v3734_v2 = vadd.f32 %v3733_v22, %v3651_v8  ;;  %v7345_v22 = vsub.f32 %v3752_v18, %v7329_v54  ;;  %v7353_v8 = vand.u32 4294901760, %v3749_v44  ;;  %v3821_v12 = vand.u32 4294901760, %v7337_v23  ;;  %v5732_v18 = vld [vmem:[#allocation8 + $0x18] sm:$0xff] }
 0x5de   : > { %v7362_v62 = vand.u32 4294901760, %v3748_v63 }
 0x5df   : > { %v3754_v47 = vmul.f32 %v5720_v55, %v3734_v2  ;;  %v7365_v2 = vsub.f32 %v3750_v21, %v7342_v50  ;;  %v3827_v9 = vand.u32 4294901760, %v7345_v22  ;;  %v7376_v55 = vand.u32 4294901760, %v3747_v52 }
 0x5e0   : > { %v7390_v34 = vsub.f32 %v3748_v63, %v7362_v62  ;;  %v7409_v21 = vand.u32 4294901760, %v3744_v16  ;;  %v3741_v63 = vmul.f32 %v5734_v24, %v7270_v26 }
 0x5e1   : > { %v7324_v32 = vand.u32 4294901760, %v3754_v47  ;;  %v3828_v49 = vsub.f32 %v7345_v22, %v3827_v9  ;;  %v3839_v20 = vand.u32 4294901760, %v7365_v2  ;;  %v7401_v30 = vsub.f32 %v3747_v52, %v7376_v55 }
 0x5e2   : > { %v3654_v41 = vpop.f32.mrf.mxu0  ;;  %v7439_v26 = vsub.f32 %v3744_v16, %v7409_v21 }
 0x5e3   : > { %v3655_v35 = vadd.f32 %v3654_v41, %v3568_v38  ;;  %v7332_v11 = vsub.f32 %v3754_v47, %v7324_v32  ;;  %v7379_v47 = vsub.f32 %v3749_v44, %v7353_v8  ;;  %v3822_v38 = vsub.f32 %v7337_v23, %v3821_v12 }
 0x5e4   : > { %v3840_v3 = vsub.f32 %v7365_v2, %v3839_v20  ;;  %v3851_v44 = vand.u32 4294901760, %v7390_v34 }
 0x5e5   : > { %v3738_v17 = vadd.f32 %v3737_v59, %v3655_v35  ;;  %v3815_v57 = vand.u32 4294901760, %v7332_v11  ;;  %v3743_v35 = vmul.f32 %v5732_v18, %v7282_v36  ;;  %v7398_v59 = vand.u32 4294901760, %v3745_v43 }
 0x5e6   : > { %v3823_v61 = vand.u32 4294901760, %v3822_v38  ;;  %v3845_v6 = vand.u32 4294901760, %v7379_v47  ;;  %v7412_v36 = vsub.f32 %v3746_v40, %v7387_v39  ;;  %v3852_v38 = vsub.f32 %v7390_v34, %v3851_v44 }
 0x5e7   : > { %v3755_v7 = vmul.f32 %v5725_v31, %v3738_v17  ;;  %v3816_v15 = vsub.f32 %v7332_v11, %v3815_v57  ;;  %v5733_v17 = vld [vmem:[#allocation8 + $0x10] sm:$0xff]  ;;  %v3756_v31 = vld [vmem:[%s8399_s14] sm:$0xff]  ;;  %v7425_v1 = vand.u32 4294901760, %v3743_v35  ;;  %v7428_v52 = vsub.f32 %v3745_v43, %v7398_v59 }
 0x5e8   : > { %v3742_v33 = vmul.f32 %v5733_v17, %v7276_v10  ;;  %v7422_v10 = vand.u32 4294901760, %v3756_v31  ;;  %v3846_v40 = vsub.f32 %v7379_v47, %v3845_v6  ;;  %v3841_v43 = vand.u32 4294901760, %v3840_v3 }
 0x5e9   : > { %v7339_v45 = vand.u32 4294901760, %v3755_v7  ;;  %v3817_v41 = vand.u32 4294901760, %v3816_v15  ;;  %v5735_v15 = vld [vmem:[#allocation8] sm:$0xff]  ;;  %v8414_v37 = vand.u32 4294901760, %v7412_v36 }
 0x5ea   : > { %v3740_v19 = vmul.f32 %v5735_v15, %v7264_v46  ;;  %v7452_v46 = vsub.f32 %v3743_v35, %v7425_v1  ;;  %v3847_v16 = vand.u32 4294901760, %v3846_v40  ;;  %v3757_v35 = vld [vmem:[%s8399_s14 + $0x8] sm:$0xff] }
 0x5eb   : > { %v7348_v28 = vsub.f32 %v3755_v7, %v7339_v45  ;;  %3759 = vmatpush.msra.mxu2 %v7339_v45  ;;  %v3829_v7 = vand.u32 4294901760, %v3828_v49  ;;  %v7449_v49 = vand.u32 4294901760, %v3741_v63  ;;  %v3864_v3 = vsub.f32 %v7412_v36, %v8414_v37 }
 0x5ec   : > { %v7459_v25 = vand.u32 4294901760, %v3740_v19 }
 0x5ed   : > { %3761 = vmatpush.msra.mxu2 %v7324_v32  ;;  %v3809_v27 = vand.u32 4294901760, %v7348_v28 }
 0x5ef   : > { %3763 = vmatpush.msra.mxu2 %v7327_v58  ;;  %v3810_v56 = vsub.f32 %v7348_v28, %v3809_v27 }
 0x5f1   : > { %3765 = vmatpush.msra.mxu2 %v7329_v54  ;;  %v3811_v4 = vand.u32 4294901760, %v3810_v56  ;;  %v8416_v56 = vand.u32 4294901760, %v7401_v30 }
 0x5f3   : > { %3767 = vmatpush.msra.mxu2 %v7334_v14  ;;  %3812 = vmatpush.msra.mxu3 %v3811_v4  ;;  %v7436_v4 = vand.u32 4294901760, %v3742_v33  ;;  %v3858_v18 = vsub.f32 %v7401_v30, %v8416_v56 }
 0x5f5   : > { %3769 = vmatpush.msra.mxu2 %v7342_v50  ;;  %3818 = vmatpush.msra.mxu3 %v3817_v41  ;;  %v7447_v41 = vsub.f32 %v3756_v31, %v7422_v10  ;;  %v7462_v17 = vsub.f32 %v3742_v33, %v7436_v4  ;;  %v8415_v31 = vand.u32 4294901760, %v7439_v26  ;;  %v7476_v33 = vsub.f32 %v3741_v63, %v7449_v49 }
 0x5f6   : > { %v3859_v40 = vand.u32 4294901760, %v3858_v18  ;;  %v3865_v63 = vand.u32 4294901760, %v3864_v3 }
 0x5f7   : > { %3771 = vmatpush.msra.mxu2 %v7353_v8  ;;  %3824 = vmatpush.msra.mxu3 %v3823_v61  ;;  %v8413_v61 = vand.u32 4294901760, %v7428_v52  ;;  %v3792_v24 = vand.u32 4294901760, %v7447_v41  ;;  %v8418_v3 = vand.u32 4294901760, %v7476_v33 }
 0x5f9   : > { %3773 = vmatpush.msra.mxu2 %v7362_v62  ;;  %3830 = vmatpush.msra.mxu3 %v3829_v7  ;;  %v3853_v7 = vand.u32 4294901760, %v3852_v38  ;;  %v3870_v15 = vsub.f32 %v7428_v52, %v8413_v61  ;;  %v7484_v38 = vsub.f32 %v3740_v19, %v7459_v25  ;;  %v3793_v18 = vsub.f32 %v7447_v41, %v3792_v24 }
 0x5fb   : > { %3775 = vmatpush.msra.mxu2 %v7376_v55  ;;  %3836 = vmatpush.msra.mxu3 %v3835_v53  ;;  %v7473_v53 = vand.u32 4294901760, %v3757_v35  ;;  %v3871_v19 = vand.u32 4294901760, %v3870_v15  ;;  %v3899_v37 = vand.u32 4294901760, %v7484_v38  ;;  %v3794_v56 = vand.u32 4294901760, %v3793_v18 }
 0x5fd   : > { %3777 = vmatpush.msra.mxu2 %v7387_v39  ;;  %3842 = vmatpush.msra.mxu3 %v3841_v43  ;;  %v8417_v43 = vand.u32 4294901760, %v7452_v46  ;;  %v7495_v61 = vsub.f32 %v3757_v35, %v7473_v53 }
 0x5ff   : > { %3779 = vmatpush.msra.mxu2 %v7398_v59  ;;  %3848 = vmatpush.msra.mxu3 %v3847_v16  ;;  %v3887_v16 = vand.u32 4294901760, %v7462_v17 }
 0x601   : > { %3781 = vmatpush.msra.mxu2 %v7409_v21  ;;  %3854 = vmatpush.msra.mxu3 %v3853_v7  ;;  %v3876_v7 = vsub.f32 %v7439_v26, %v8415_v31  ;;  %v3888_v35 = vsub.f32 %v7462_v17, %v3887_v16 }
 0x603   : > { %3783 = vmatpush.msra.mxu2 %v7425_v1  ;;  %3860 = vmatpush.msra.mxu3 %v3859_v40  ;;  %v3882_v40 = vsub.f32 %v7452_v46, %v8417_v43  ;;  %v3877_v31 = vand.u32 4294901760, %v3876_v7  ;;  %v3894_v43 = vsub.f32 %v7476_v33, %v8418_v3  ;;  %v3900_v7 = vsub.f32 %v7484_v38, %v3899_v37 }
 0x605   : > { %3785 = vmatpush.msra.mxu2 %v7436_v4  ;;  %3866 = vmatpush.msra.mxu3 %v3865_v63  ;;  %v3800_v63 = vand.u32 4294901760, %v7495_v61  ;;  %v3883_v15 = vand.u32 4294901760, %v3882_v40  ;;  %v3901_v40 = vand.u32 4294901760, %v3900_v7 }
 0x607   : > { %3787 = vmatpush.msra.mxu2 %v7449_v49  ;;  %3872 = vmatpush.msra.mxu3 %v3871_v19  ;;  %v3889_v19 = vand.u32 4294901760, %v3888_v35  ;;  %v3801_v18 = vsub.f32 %v7495_v61, %v3800_v63  ;;  %v4137_v35 = vld [vmem:[%s8387_s2 + $0x38] sm:$0xff] }
 0x609   : > { %3789 = vmatpush.msra.mxu2 %v7459_v25  ;;  %3878 = vmatpush.msra.mxu3 %v3877_v31  ;;  %v3895_v31 = vand.u32 4294901760, %v3894_v43  ;;  %v3802_v3 = vand.u32 4294901760, %v3801_v18  ;;  %v4136_v18 = vld [vmem:[%s8387_s2 + $0x30] sm:$0xff] }
 0x60a   : > { %3795 = vmatmul.f32.vlgmr.msra.gmra.mxu2 %v3794_v56 }
 0x60b   : > { %3914 = vmatpush.msrb.mxu2 %v7348_v28  ;;  %3884 = vmatpush.msra.mxu3 %v3883_v15  ;;  %v4144_v28 = vld [vmem:[%s8387_s2 + $0x70] sm:$0xff]  ;;  %v7728_v15 = vand.u32 4294901760, %v4137_v35 }
 0x60d   : > { %3917 = vmatpush.msrb.mxu2 %v7332_v11  ;;  %3890 = vmatpush.msra.mxu3 %v3889_v19  ;;  %v8450_v11 = vand.u32 4294901760, %v7401_v30 }
 0x60f   : > { %3920 = vmatpush.msrb.mxu2 %v7337_v23  ;;  %3896 = vmatpush.msra.mxu3 %v3895_v31  ;;  %v8455_v23 = vand.u32 4294901760, %v7476_v33  ;;  %v7740_v31 = vand.u32 4294901760, %v4136_v18 }
 0x611   : > { %3923 = vmatpush.msrb.mxu2 %v7345_v22  ;;  %3902 = vmatpush.msra.mxu3 %v3901_v40  ;;  %v7743_v40 = vsub.f32 %v4137_v35, %v7728_v15  ;;  %v4130_v35 = vld [vmem:[%s8387_s2] sm:$0xff] }
 0x612   : > { %3904 = vmatmul.f32.vlgmr.msra.gmra.mxu3 %v7422_v10  ;;  %3803 = vmatmul.f32.gmra.mxu2 %v3802_v3 }
 0x613   : > { %3926 = vmatpush.msrb.mxu2 %v7356_v42  ;;  %3972 = vmatpush.msrb.mxu3 %v7339_v45  ;;  %v4142_v42 = vld [vmem:[%s8387_s2 + $0x60] sm:$0xff] }
 0x615   : > { %3929 = vmatpush.msrb.mxu2 %v7365_v2  ;;  %3974 = vmatpush.msrb.mxu3 %v7324_v32  ;;  %v4141_v2 = vld [vmem:[%s8387_s2 + $0x58] sm:$0xff] }
 0x617   : > { %3932 = vmatpush.msrb.mxu2 %v7379_v47  ;;  %3976 = vmatpush.msrb.mxu3 %v7327_v58 }
 0x619   : > { %3935 = vmatpush.msrb.mxu2 %v7390_v34  ;;  %3978 = vmatpush.msrb.mxu3 %v7329_v54  ;;  %v7654_v34 = vand.u32 4294901760, %v4141_v2 }
 0x61a   : > { %3908 = vmatmul.f32.gmra.mxu3 %v7473_v53 }
 0x61b   : > { %3938 = vmatpush.msrb.mxu2 %v7401_v30  ;;  %3980 = vmatpush.msrb.mxu3 %v7334_v14 }
 0x61d   : > { %3941 = vmatpush.msrb.mxu2 %v7412_v36  ;;  %3982 = vmatpush.msrb.mxu3 %v7342_v50 }
 0x61f   : > { %3944 = vmatpush.msrb.mxu2 %v7428_v52  ;;  %3984 = vmatpush.msrb.mxu3 %v7353_v8 }
 0x621   : > { %3947 = vmatpush.msrb.mxu2 %v7439_v26  ;;  %3986 = vmatpush.msrb.mxu3 %v7362_v62 }
 0x623   : > { %3950 = vmatpush.msrb.mxu2 %v7452_v46  ;;  %3988 = vmatpush.msrb.mxu3 %v7376_v55 }
 0x625   : > { %3953 = vmatpush.msrb.mxu2 %v7462_v17  ;;  %3990 = vmatpush.msrb.mxu3 %v7387_v39 }
 0x627   : > { %3956 = vmatpush.msrb.mxu2 %v7476_v33  ;;  %3992 = vmatpush.msrb.mxu3 %v7398_v59 }
 0x629   : > { %3959 = vmatpush.msrb.mxu2 %v7484_v38  ;;  %3994 = vmatpush.msrb.mxu3 %v7409_v21 }
 0x62a   : > { %3962 = vmatmul.f32.vlgmr.msrb.gmra.mxu2 %v7447_v41  ;;  %v4138_v41 = vld [vmem:[%s8387_s2 + $0x40] sm:$0xff] }
 0x62b   : > { %4019 = vmatpush.msra.mxu2 %v3809_v27  ;;  %3996 = vmatpush.msrb.mxu3 %v7425_v1  ;;  %v7631_v27 = vand.u32 4294901760, %v4144_v28 }
 0x62d   : > { %4023 = vmatpush.msra.mxu2 %v3815_v57  ;;  %3998 = vmatpush.msrb.mxu3 %v7436_v4 }
 0x62f   : > { %4027 = vmatpush.msra.mxu2 %v3821_v12  ;;  %4000 = vmatpush.msrb.mxu3 %v7449_v49 }
 0x631   : > { %4031 = vmatpush.msra.mxu2 %v3827_v9  ;;  %4002 = vmatpush.msrb.mxu3 %v7459_v25 }
 0x632   : > { %4006 = vmatmul.f32.vlgmr.msrb.gmra.mxu3 %v3792_v24  ;;  %3967 = vmatmul.f32.gmra.mxu2 %v7495_v61  ;;  %v7708_v24 = vand.u32 4294901760, %v4138_v41 }
 0x633   : > { %4035 = vmatpush.msra.mxu2 %v3833_v13  ;;  %4090 = vmatpush.msra.mxu3 %v7339_v45  ;;  %v4145_v45 = vld [vmem:[%s8387_s2 + $0x78] sm:$0xff] }
 0x635   : > { %4039 = vmatpush.msra.mxu2 %v3839_v20  ;;  %4092 = vmatpush.msra.mxu3 %v7324_v32  ;;  %v8451_v32 = vand.u32 4294901760, %v7412_v36 }
 0x637   : > { %4043 = vmatpush.msra.mxu2 %v3845_v6  ;;  %4094 = vmatpush.msra.mxu3 %v7327_v58  ;;  %v8452_v58 = vand.u32 4294901760, %v7428_v52 }
 0x639   : > { %4047 = vmatpush.msra.mxu2 %v3851_v44  ;;  %4096 = vmatpush.msra.mxu3 %v7329_v54  ;;  %v8453_v54 = vand.u32 4294901760, %v7439_v26  ;;  %v4140_v44 = vld [vmem:[%s8387_s2 + $0x50] sm:$0xff] }
 0x63a   : > { %4012 = vmatmul.f32.gmra.mxu3 %v3800_v63  ;;  %v7726_v63 = vsub.f32 %v4138_v41, %v7708_v24 }
 0x63b   : > { %4051 = vmatpush.msra.mxu2 %v8450_v11  ;;  %4098 = vmatpush.msra.mxu3 %v7334_v14  ;;  %v8454_v14 = vand.u32 4294901760, %v7452_v46 }
 0x63c   : > { %v4240_v19 = vand.u32 4294901760, %v7726_v63 }
 0x63d   : > { %4055 = vmatpush.msra.mxu2 %v8451_v32  ;;  %4100 = vmatpush.msra.mxu3 %v7342_v50  ;;  %v7613_v50 = vand.u32 4294901760, %v4145_v45  ;;  %v4135_v32 = vld [vmem:[%s8387_s2 + $0x28] sm:$0xff] }
 0x63e   : > { %v4241_v7 = vsub.f32 %v7726_v63, %v4240_v19 }
 0x63f   : > { %4059 = vmatpush.msra.mxu2 %v8452_v58  ;;  %4102 = vmatpush.msra.mxu3 %v7353_v8  ;;  %v7617_v22 = vsub.f32 %v4145_v45, %v7613_v50  ;;  %v4143_v8 = vld [vmem:[%s8387_s2 + $0x68] sm:$0xff]  ;;  %v4246_v58 = vand.u32 4294901760, %v7743_v40  ;;  %v4133_v45 = vld [vmem:[%s8387_s2 + $0x18] sm:$0xff] }
 0x640   : > { %4361 = vmatpush.msrb.mxu1 %v7613_v50  ;;  %v7633_v12 = vand.u32 4294901760, %v4143_v8  ;;  %v4242_v11 = vand.u32 4294901760, %v4241_v7 }
 0x641   : > { %4063 = vmatpush.msra.mxu2 %v8453_v54  ;;  %4104 = vmatpush.msra.mxu3 %v7362_v62  ;;  %v4198_v57 = vand.u32 4294901760, %v7617_v22  ;;  %v7635_v62 = vand.u32 4294901760, %v4142_v42  ;;  %v7750_v54 = vand.u32 4294901760, %v4135_v32 }
 0x642   : > { %4303 = vmatpush.msrb.mxu0 %v7617_v22  ;;  %v7648_v47 = vsub.f32 %v4143_v8, %v7633_v12  ;;  %4363 = vmatpush.msrb.mxu1 %v7631_v27 }
 0x643   : > { %4067 = vmatpush.msra.mxu2 %v8454_v14  ;;  %4106 = vmatpush.msra.mxu3 %v7376_v55  ;;  %v4199_v9 = vsub.f32 %v7617_v22, %v4198_v57  ;;  %v7645_v55 = vsub.f32 %v4144_v28, %v7631_v27  ;;  %v7651_v13 = vsub.f32 %v4142_v42, %v7635_v62 }
 0x644   : > { %4365 = vmatpush.msrb.mxu1 %v7633_v12  ;;  %v7753_v14 = vsub.f32 %v4136_v18, %v7740_v31  ;;  %v4247_v28 = vsub.f32 %v7743_v40, %v4246_v58 }
 0x645   : > { %4071 = vmatpush.msra.mxu2 %v3887_v16  ;;  %4108 = vmatpush.msra.mxu3 %v7387_v39  ;;  %v4200_v39 = vand.u32 4294901760, %v4199_v9  ;;  %v4204_v20 = vand.u32 4294901760, %v7645_v55  ;;  %v4216_v30 = vand.u32 4294901760, %v7651_v13  ;;  %v7774_v9 = vand.u32 4294901760, %v4133_v45 }
 0x646   : > { %4306 = vmatpush.msrb.mxu0 %v7645_v55  ;;  %4367 = vmatpush.msrb.mxu1 %v7635_v62  ;;  %v4252_v8 = vand.u32 4294901760, %v7753_v14 }
 0x647   : > { %4075 = vmatpush.msra.mxu2 %v8455_v23  ;;  %4110 = vmatpush.msra.mxu3 %v7398_v59  ;;  %v4210_v59 = vand.u32 4294901760, %v7648_v47  ;;  %v4205_v6 = vsub.f32 %v7645_v55, %v4204_v20  ;;  %v4217_v36 = vsub.f32 %v7651_v13, %v4216_v30  ;;  %v4134_v23 = vld [vmem:[%s8387_s2 + $0x20] sm:$0xff]  ;;  %v7795_v41 = vsub.f32 %v4133_v45, %v7774_v9 }
 0x648   : > { %4309 = vmatpush.msrb.mxu0 %v7648_v47  ;;  %4369 = vmatpush.msrb.mxu1 %v7654_v34  ;;  %v7768_v42 = vand.u32 4294901760, %v4134_v23 }
 0x649   : > { %4079 = vmatpush.msra.mxu2 %v3899_v37  ;;  %4112 = vmatpush.msra.mxu3 %v7409_v21  ;;  %v4211_v21 = vsub.f32 %v7648_v47, %v4210_v59  ;;  %v4206_v52 = vand.u32 4294901760, %v4205_v6  ;;  %v4253_v6 = vsub.f32 %v7753_v14, %v4252_v8 }
 0x64a   : > { %4081 = vmatmul.f32.vlgmr.msra.gmra.mxu2 %v7422_v10  ;;  %4312 = vmatpush.msrb.mxu0 %v7651_v13 }
 0x64b   : > { %4114 = vmatpush.msra.mxu3 %v7425_v1  ;;  %4148 = vmatpush.msrb.mxu2 %v7613_v50  ;;  %v4139_v1 = vld [vmem:[%s8387_s2 + $0x48] sm:$0xff]  ;;  %v4212_v56 = vand.u32 4294901760, %v4211_v21  ;;  %v7782_v21 = vsub.f32 %v4134_v23, %v7768_v42 }
 0x64c   : > { %v7688_v37 = vand.u32 4294901760, %v4139_v1 }
 0x64d   : > { %4116 = vmatpush.msra.mxu3 %v7436_v4  ;;  %4150 = vmatpush.msrb.mxu2 %v7631_v27  ;;  %v7684_v4 = vand.u32 4294901760, %v4140_v44 }
 0x64f   : > { %4118 = vmatpush.msra.mxu3 %v7449_v49  ;;  %4152 = vmatpush.msrb.mxu2 %v7633_v12  ;;  %v4218_v49 = vand.u32 4294901760, %v4217_v36  ;;  %v7696_v46 = vsub.f32 %v4140_v44, %v7684_v4  ;;  %v4132_v44 = vld [vmem:[%s8387_s2 + $0x10] sm:$0xff] }
 0x650   : > { %4371 = vmatpush.msrb.mxu1 %v7684_v4 }
 0x651   : > { %4120 = vmatpush.msra.mxu3 %v7459_v25  ;;  %4154 = vmatpush.msrb.mxu2 %v7635_v62  ;;  %v7702_v25 = vsub.f32 %v4139_v1, %v7688_v37  ;;  %v4228_v17 = vand.u32 4294901760, %v7696_v46  ;;  %v4254_v1 = vand.u32 4294901760, %v4253_v6 }
 0x652   : > { %4122 = vmatmul.f32.vlgmr.msra.gmra.mxu3 %v7422_v10  ;;  %4085 = vmatmul.f32.gmra.mxu2 %v7473_v53  ;;  %v7677_v10 = vsub.f32 %v4141_v2, %v7654_v34  ;;  %v7772_v2 = vsub.f32 %v4135_v32, %v7750_v54  ;;  %v4177_v32 = vand.u32 4294901760, %v4130_v35 }
 0x653   : > { %4201 = vmatpush.msrb.mxu3 %v4200_v39  ;;  %4156 = vmatpush.msrb.mxu2 %v7654_v34  ;;  %v4234_v33 = vand.u32 4294901760, %v7702_v25  ;;  %v4229_v43 = vsub.f32 %v7696_v46, %v4228_v17  ;;  %v4248_v39 = vand.u32 4294901760, %v4247_v28 }
 0x654   : > { %v4222_v26 = vand.u32 4294901760, %v7677_v10  ;;  %4315 = vmatpush.msrb.mxu0 %v7677_v10  ;;  %4373 = vmatpush.msrb.mxu1 %v7688_v37  ;;  %v4258_v36 = vand.u32 4294901760, %v7772_v2  ;;  %v4287_v6 = vsub.f32 %v4130_v35, %v4177_v32  ;;  %v8458_v35 = vld [vmem:[#allocation23_spill] sm:$0xff] }
 0x655   : > { %4207 = vmatpush.msrb.mxu3 %v4206_v52  ;;  %4158 = vmatpush.msrb.mxu2 %v7684_v4  ;;  %v4235_v38 = vsub.f32 %v7702_v25, %v4234_v33  ;;  %v4230_v16 = vand.u32 4294901760, %v4229_v43  ;;  %v4264_v52 = vand.u32 4294901760, %v7782_v21  ;;  %v4270_v43 = vand.u32 4294901760, %v7795_v41 }
 0x656   : > { %v4223_v61 = vsub.f32 %v7677_v10, %v4222_v26  ;;  %4318 = vmatpush.msrb.mxu0 %v7696_v46  ;;  %4375 = vmatpush.msrb.mxu1 %v7708_v24 }
 0x657   : > { %4213 = vmatpush.msrb.mxu3 %v4212_v56  ;;  %4160 = vmatpush.msrb.mxu2 %v7688_v37  ;;  %v4236_v3 = vand.u32 4294901760, %v4235_v38  ;;  %v7792_v56 = vand.u32 4294901760, %v4132_v44  ;;  %v4271_v18 = vsub.f32 %v7795_v41, %v4270_v43 }
 0x658   : > { %4321 = vmatpush.msrb.mxu0 %v7702_v25  ;;  %4377 = vmatpush.msrb.mxu1 %v7728_v15 }
 0x659   : > { %4219 = vmatpush.msrb.mxu3 %v4218_v49  ;;  %4162 = vmatpush.msrb.mxu2 %v7708_v24  ;;  %v4259_v49 = vsub.f32 %v7772_v2, %v4258_v36  ;;  %v4272_v45 = vand.u32 4294901760, %v4271_v18  ;;  %v8459_v18 = vld [vmem:[#allocation21_spill] sm:$0xff] }
 0x65a   : > { %4126 = vmatmul.f32.gmra.mxu3 %v7473_v53  ;;  %v4224_v53 = vand.u32 4294901760, %v4223_v61  ;;  %4324 = vmatpush.msrb.mxu0 %v7726_v63  ;;  %v4131_v61 = vld [vmem:[%s8387_s2 + $0x8] sm:$0xff] }
 0x65b   : > { %4164 = vmatpush.msrb.mxu2 %v7728_v15  ;;  %4379 = vmatpush.msrb.mxu1 %v7740_v31  ;;  %v7810_v38 = vand.u32 4294901760, %v4131_v61 }
 0x65c   : > { %4225 = vmatpush.msrb.mxu3 %v4224_v53  ;;  %4327 = vmatpush.msrb.mxu0 %v7743_v40  ;;  %v4265_v53 = vsub.f32 %v7782_v21, %v4264_v52 }
 0x65d   : > { %4166 = vmatpush.msrb.mxu2 %v7740_v31  ;;  %4381 = vmatpush.msrb.mxu1 %v7750_v54  ;;  %v4281_v23 = vsub.f32 %v4131_v61, %v7810_v38 }
 0x65e   : > { %4231 = vmatpush.msrb.mxu3 %v4230_v16  ;;  %4330 = vmatpush.msrb.mxu0 %v7753_v14  ;;  %v4275_v16 = vsub.f32 %v4132_v44, %v7792_v56  ;;  %v4266_v7 = vand.u32 4294901760, %v4265_v53 }
 0x65f   : > { %4168 = vmatpush.msrb.mxu2 %v7750_v54  ;;  %4383 = vmatpush.msrb.mxu1 %v7768_v42 }
 0x660   : > { %4237 = vmatpush.msrb.mxu3 %v4236_v3  ;;  %4333 = vmatpush.msrb.mxu0 %v7772_v2  ;;  %v4260_v3 = vand.u32 4294901760, %v4259_v49 }
 0x661   : > { %4170 = vmatpush.msrb.mxu2 %v7768_v42  ;;  %4385 = vmatpush.msrb.mxu1 %v7774_v9 }
 0x662   : > { %4243 = vmatpush.msrb.mxu3 %v4242_v11  ;;  %4336 = vmatpush.msrb.mxu0 %v7782_v21  ;;  %v4276_v11 = vand.u32 4294901760, %v4275_v16 }
 0x663   : > { %4172 = vmatpush.msrb.mxu2 %v7774_v9  ;;  %4387 = vmatpush.msrb.mxu1 %v7792_v56 }
 0x664   : > { %4249 = vmatpush.msrb.mxu3 %v4248_v39  ;;  %4339 = vmatpush.msrb.mxu0 %v7795_v41  ;;  %v4277_v28 = vsub.f32 %v4275_v16, %v4276_v11  ;;  %v4282_v39 = vand.u32 4294901760, %v4281_v23  ;;  %v4288_v41 = vand.u32 4294901760, %v4287_v6 }
 0x665   : > { %4174 = vmatpush.msrb.mxu2 %v7792_v56  ;;  %4389 = vmatpush.msrb.mxu1 %v7810_v38 }
 0x666   : > { %4255 = vmatpush.msrb.mxu3 %v4254_v1  ;;  %4342 = vmatpush.msrb.mxu0 %v4275_v16  ;;  %v4278_v44 = vand.u32 4294901760, %v4277_v28  ;;  %v4283_v1 = vsub.f32 %v4281_v23, %v4282_v39  ;;  %v4289_v61 = vsub.f32 %v4287_v6, %v4288_v41 }
 0x667   : > { %4176 = vmatpush.msrb.mxu2 %v7810_v38  ;;  %4391 = vmatpush.msrb.mxu1 %v4177_v32 }
 0x668   : > { %4261 = vmatpush.msrb.mxu3 %v4260_v3  ;;  %4345 = vmatpush.msrb.mxu0 %v4281_v23  ;;  %v4284_v49 = vand.u32 4294901760, %v4283_v1  ;;  %v4290_v16 = vand.u32 4294901760, %v4289_v61  ;;  %v8460_v23 = vld [vmem:[#allocation24_spill] sm:$0xff] }
 0x669   : > { %4178 = vmatpush.msrb.mxu2 %v4177_v32 }
 0x66a   : > { %4267 = vmatpush.msrb.mxu3 %v4266_v7  ;;  %4348 = vmatpush.msrb.mxu0 %v4287_v6 }
 0x66b   : > { %4408 = vmatpush.msra.mxu2 %v4198_v57 }
 0x66c   : > { %4273 = vmatpush.msrb.mxu3 %v4272_v45 }
 0x66d   : > { %4412 = vmatpush.msra.mxu2 %v4204_v20 }
 0x66e   : > { %4279 = vmatpush.msrb.mxu3 %v4278_v44 }
 0x66f   : > { %4416 = vmatpush.msra.mxu2 %v4210_v59 }
 0x670   : > { %4285 = vmatpush.msrb.mxu3 %v4284_v49 }
 0x671   : > { %4420 = vmatpush.msra.mxu2 %v4216_v30 }
 0x672   : > { %4291 = vmatpush.msrb.mxu3 %v4290_v16 }
 0x673   : > { %4424 = vmatpush.msra.mxu2 %v4222_v26 }
 0x674   : > { %4479 = vmatpush.msra.mxu3 %v7613_v50 }
 0x675   : > { %4428 = vmatpush.msra.mxu2 %v4228_v17 }
 0x676   : > { %4481 = vmatpush.msra.mxu3 %v7631_v27 }
 0x677   : > { %4432 = vmatpush.msra.mxu2 %v4234_v33 }
 0x678   : > { %4483 = vmatpush.msra.mxu3 %v7633_v12 }
 0x679   : > { %4436 = vmatpush.msra.mxu2 %v4240_v19 }
 0x67a   : > { %4485 = vmatpush.msra.mxu3 %v7635_v62 }
 0x67b   : > { %4440 = vmatpush.msra.mxu2 %v4246_v58 }
 0x67c   : > { %4487 = vmatpush.msra.mxu3 %v7654_v34 }
 0x67d   : > { %4444 = vmatpush.msra.mxu2 %v4252_v8 }
 0x67e   : > { %4489 = vmatpush.msra.mxu3 %v7684_v4 }
 0x67f   : > { %4448 = vmatpush.msra.mxu2 %v4258_v36 }
 0x680   : > { %4491 = vmatpush.msra.mxu3 %v7688_v37 }
 0x681   : > { %4452 = vmatpush.msra.mxu2 %v4264_v52  ;;  %v8456_v52 = vld [vmem:[#allocation20_spill] sm:$0xff] }
 0x682   : > { %4493 = vmatpush.msra.mxu3 %v7708_v24 }
 0x683   : > { %4456 = vmatpush.msra.mxu2 %v4270_v43  ;;  %v8457_v43 = vld [vmem:[#allocation22_spill] sm:$0xff] }
 0x684   : > { %4495 = vmatpush.msra.mxu3 %v7728_v15 }
 0x685   : > { %4460 = vmatpush.msra.mxu2 %v4276_v11 }
 0x686   : > { %4497 = vmatpush.msra.mxu3 %v7740_v31 }
 0x687   : > { %4464 = vmatpush.msra.mxu2 %v4282_v39 }
 0x688   : > { %4499 = vmatpush.msra.mxu3 %v7750_v54 }
 0x689   : > { %4468 = vmatpush.msra.mxu2 %v4288_v41 }
 0x68a   : > { %4501 = vmatpush.msra.mxu3 %v7768_v42  ;;  %v1343_v42 = vadd.f32 %v6557_v48, %v6551_v29 }
 0x68c   : > { %4503 = vmatpush.msra.mxu3 %v7774_v9  ;;  %v1377_v2 = vadd.f32 %v6481_v60, %v1343_v42  ;;  %v1347_v9 = vadd.f32 %v6569_v0, %v6565_v51  ;;  %v8461_v51 = vld [vmem:[#allocation25_spill] sm:$0xff] }
 0x68d   : > { %v3796_v53 = vpop.f32.mrf.mxu2 }
 0x68e   : > { %4505 = vmatpush.msra.mxu3 %v7792_v56  ;;  %v1409_v21 = vadd.f32 %v6484_v5, %v1377_v2  ;;  %v1382_v56 = vadd.f32 %v8456_v52, %v1347_v9 }
 0x690   : > { %4507 = vmatpush.msra.mxu3 %v7810_v38  ;;  %v1448_v38 = vadd.f32 %v8457_v43, %v1409_v21  ;;  %v1415_v11 = vadd.f32 %v8459_v18, %v1382_v56 }
 0x692   : > { %4509 = vmatpush.msra.mxu3 %v4177_v32  ;;  %v1477_v7 = vadd.f32 %v8458_v35, %v1448_v38  ;;  %v1452_v29 = vadd.f32 %v8460_v23, %v1415_v11 }
 0x694   : > { %v1481_v0 = vadd.f32 %v8461_v51, %v1452_v29 }
 0x695   : > { %v3905_v22 = vpop.f32.mrf.mxu3  ;;  %v3804_v57 = vpop.f32.mrf.mxu2 }
 0x696   : > { %v3906_v55 = vadd.f32 %v3905_v22, %v3796_v53 }
 0x69d   : > { %v3909_v50 = vpop.f32.mrf.mxu3 }
 0x69e   : > { %v3910_v20 = vadd.f32 %v3909_v50, %v3804_v57 }
 0x6ad   : > { %v3963_v27 = vpop.f32.mrf.mxu2 }
 0x6ae   : > { %v3964_v13 = vadd.f32 %v3963_v27, %v3906_v55 }
 0x6b5   : > { %v4007_v12 = vpop.f32.mrf.mxu3  ;;  %v3968_v62 = vpop.f32.mrf.mxu2 }
 0x6b6   : > { %v4008_v59 = vadd.f32 %v4007_v12, %v3964_v13  ;;  %v3969_v4 = vadd.f32 %v3968_v62, %v3910_v20  ;;  %v4590_v13 = vld [vmem:[#allocation5 + $0x70] sm:$0xff] }
 0x6bd   : > { %v4013_v47 = vpop.f32.mrf.mxu3 }
 0x6be   : > { %v4014_v25 = vadd.f32 %v4013_v47, %v3969_v4  ;;  %v4591_v47 = vld [vmem:[#allocation5 + $0x78] sm:$0xff] }
 0x6bf   : > { %v7879_v20 = vand.u32 4294901760, %v4591_v47  ;;  %v4587_v4 = vld [vmem:[#allocation5 + $0x58] sm:$0xff] }
 0x6c1   : > { %4597 = vmatpush.msra.mxu0 %v7879_v20 }
 0x6cd   : > { %v4082_v34 = vpop.f32.mrf.mxu2 }
 0x6ce   : > { %v4083_v30 = vadd.f32 %v4082_v34, %v4008_v59  ;;  %v4589_v34 = vld [vmem:[#allocation5 + $0x68] sm:$0xff]  ;;  %v7881_v59 = vand.u32 4294901760, %v4590_v13 }
 0x6d0   : > { %4599 = vmatpush.msra.mxu0 %v7881_v59 }
 0x6d5   : > { %v4123_v10 = vpop.f32.mrf.mxu3  ;;  %v4086_v46 = vpop.f32.mrf.mxu2 }
 0x6d6   : > { %v4124_v26 = vadd.f32 %v4123_v10, %v4083_v30  ;;  %v4087_v33 = vadd.f32 %v4086_v46, %v4014_v25  ;;  %v7883_v30 = vand.u32 4294901760, %v4589_v34  ;;  %v4588_v10 = vld [vmem:[#allocation5 + $0x60] sm:$0xff]  ;;  %v7887_v46 = vand.u32 4294901760, %v4587_v4 }
 0x6d8   : > { %v4179_v37 = vand.u32 4294901760, %v4124_v26  ;;  %4601 = vmatpush.msra.mxu0 %v7883_v30 }
 0x6da   : > { %v4180_v17 = vsub.f32 %v4124_v26, %v4179_v37  ;;  %4293 = vmatmul.f32.vlgmr.msrb.gmra.mxu3 %v4179_v37  ;;  %v4586_v26 = vld [vmem:[#allocation5 + $0x50] sm:$0xff] }
 0x6db   : > { %v7889_v25 = vand.u32 4294901760, %v4586_v26  ;;  %4810 = vmatpush.msrb.mxu3 %v7879_v20 }
 0x6dc   : > { %v4181_v24 = vand.u32 4294901760, %v4180_v17  ;;  %4351 = vmatmul.f32.vlgmr.msrb.gmra.mxu0 %v4180_v17 }
 0x6dd   : > { %v4127_v63 = vpop.f32.mrf.mxu3  ;;  %4812 = vmatpush.msrb.mxu3 %v7881_v59 }
 0x6de   : > { %v4182_v15 = vsub.f32 %v4180_v17, %v4181_v24  ;;  %v4128_v19 = vadd.f32 %v4127_v63, %v4087_v33  ;;  %4395 = vmatmul.f32.vlgmr.msrb.gmra.mxu1 %v4181_v24  ;;  %v4585_v17 = vld [vmem:[#allocation5 + $0x48] sm:$0xff]  ;;  %v4584_v24 = vld [vmem:[#allocation5 + $0x40] sm:$0xff]  ;;  %v7892_v33 = vsub.f32 %v4591_v47, %v7879_v20  ;;  %v7895_v63 = vsub.f32 %v4590_v13, %v7881_v59 }
 0x6df   : > { %v7917_v42 = vand.u32 4294901760, %v4584_v24  ;;  %4814 = vmatpush.msrb.mxu3 %v7883_v30 }
 0x6e0   : > { %v4183_v31 = vand.u32 4294901760, %v4182_v15  ;;  %v4187_v40 = vand.u32 4294901760, %v4128_v19  ;;  %v7898_v15 = vsub.f32 %v4589_v34, %v7883_v30 }
 0x6e2   : > { %v4188_v58 = vsub.f32 %v4128_v19, %v4187_v40  ;;  %4184 = vmatmul.f32.vlgmr.msrb.gmra.mxu2 %v4183_v31  ;;  %4297 = vmatmul.f32.gmra.mxu3 %v4187_v40  ;;  %v7901_v19 = vand.u32 4294901760, %v4585_v17 }
 0x6e3   : > { %4752 = vmatpush.msrb.mxu2 %v7892_v33 }
 0x6e4   : > { %v4189_v54 = vand.u32 4294901760, %v4188_v58  ;;  %4356 = vmatmul.f32.gmra.mxu0 %v4188_v58  ;;  %v7922_v9 = vsub.f32 %v4585_v17, %v7901_v19 }
 0x6e5   : > { %4755 = vmatpush.msrb.mxu2 %v7895_v63 }
 0x6e6   : > { %v4190_v14 = vsub.f32 %v4188_v58, %v4189_v54  ;;  %4401 = vmatmul.f32.gmra.mxu1 %v4189_v54  ;;  %v7911_v58 = vsub.f32 %v4586_v26, %v7889_v25  ;;  %v4647_v54 = vand.u32 4294901760, %v7892_v33 }
 0x6e7   : > { %4758 = vmatpush.msrb.mxu2 %v7898_v15 }
 0x6e8   : > { %v4191_v8 = vand.u32 4294901760, %v4190_v14  ;;  %v4653_v14 = vand.u32 4294901760, %v7895_v63  ;;  %v4648_v21 = vsub.f32 %v7892_v33, %v4647_v54  ;;  %v4677_v43 = vand.u32 4294901760, %v7911_v58 }
 0x6ea   : > { %4192 = vmatmul.f32.gmra.mxu2 %v4191_v8  ;;  %4511 = vmatmul.f32.vlgmr.msra.gmra.mxu3 %v4179_v37  ;;  %v4659_v8 = vand.u32 4294901760, %v7898_v15  ;;  %v4649_v38 = vand.u32 4294901760, %v4648_v21  ;;  %v4678_v29 = vsub.f32 %v7911_v58, %v4677_v43 }
 0x6ec   : > { %v4660_v52 = vsub.f32 %v7898_v15, %v4659_v8  ;;  %4650 = vmatpush.msra.mxu1 %v4649_v38 }
 0x6ee   : > { %v4661_v18 = vand.u32 4294901760, %v4660_v52 }
 0x6f2   : > { %4470 = vmatmul.f32.vlgmr.msra.gmra.mxu2 %v4179_v37  ;;  %4515 = vmatmul.f32.gmra.mxu3 %v4187_v40  ;;  %v7885_v37 = vand.u32 4294901760, %v4588_v10 }
 0x6f4   : > { %v7905_v31 = vsub.f32 %v4588_v10, %v7885_v37  ;;  %4603 = vmatpush.msra.mxu0 %v7885_v37  ;;  %4816 = vmatpush.msrb.mxu3 %v7885_v37 }
 0x6f6   : > { %v4665_v2 = vand.u32 4294901760, %v7905_v31  ;;  %4605 = vmatpush.msra.mxu0 %v7887_v46  ;;  %4761 = vmatpush.msrb.mxu2 %v7905_v31 }
 0x6f7   : > { %4818 = vmatpush.msrb.mxu3 %v7887_v46 }
 0x6f8   : > { %v4666_v35 = vsub.f32 %v7905_v31, %v4665_v2  ;;  %4607 = vmatpush.msra.mxu0 %v7889_v25 }
 0x6f9   : > { %4820 = vmatpush.msrb.mxu3 %v7889_v25 }
 0x6fa   : > { %4474 = vmatmul.f32.gmra.mxu2 %v4187_v40  ;;  %v7908_v40 = vsub.f32 %v4587_v4, %v7887_v46  ;;  %v4667_v23 = vand.u32 4294901760, %v4666_v35  ;;  %4609 = vmatpush.msra.mxu0 %v7901_v19  ;;  %v4580_v4 = vld [vmem:[#allocation5 + $0x20] sm:$0xff] }
 0x6fb   : > { %4822 = vmatpush.msrb.mxu3 %v7901_v19  ;;  %v8017_v21 = vand.u32 4294901760, %v4580_v4 }
 0x6fc   : > { %v4671_v56 = vand.u32 4294901760, %v7908_v40  ;;  %4764 = vmatpush.msrb.mxu2 %v7908_v40  ;;  %4611 = vmatpush.msra.mxu0 %v7917_v42 }
 0x6fd   : > { %4824 = vmatpush.msrb.mxu3 %v7917_v42  ;;  %v8027_v35 = vsub.f32 %v4580_v4, %v8017_v21 }
 0x6fe   : > { %v4672_v11 = vsub.f32 %v7908_v40, %v4671_v56  ;;  %4767 = vmatpush.msrb.mxu2 %v7911_v58 }
 0x700   : > { %4770 = vmatpush.msrb.mxu2 %v7922_v9 }
 0x759   : > { %v4352_v45 = vpop.f32.mrf.mxu0 }
 0x75b   : > { %v4396_v6 = vpop.f32.mrf.mxu1 }
 0x75d   : > { %v4294_v36 = vpop.f32.mrf.mxu3 }
 0x761   : > { %v4357_v53 = vpop.f32.mrf.mxu0 }
 0x763   : > { %v4402_v57 = vpop.f32.mrf.mxu1 }
 0x765   : > { %v4185_v3 = vpop.f32.mrf.mxu2  ;;  %v4298_v48 = vpop.f32.mrf.mxu3 }
 0x766   : > { %v4186_v32 = vadd.f32 %v4185_v3, %v1477_v7  ;;  %v7944_v7 = vsub.f32 %v4584_v24, %v7917_v42 }
 0x768   : > { %v4295_v60 = vadd.f32 %v4294_v36, %v4186_v32  ;;  %v4654_v36 = vsub.f32 %v7895_v63, %v4653_v14  ;;  %v4683_v32 = vand.u32 4294901760, %v7922_v9  ;;  %4773 = vmatpush.msrb.mxu2 %v7944_v7 }
 0x76a   : > { %v4353_v5 = vadd.f32 %v4352_v45, %v4295_v60  ;;  %v4655_v3 = vand.u32 4294901760, %v4654_v36  ;;  %v4673_v45 = vand.u32 4294901760, %v4672_v11  ;;  %v4579_v36 = vld [vmem:[#allocation5 + $0x18] sm:$0xff]  ;;  %v4578_v11 = vld [vmem:[#allocation5 + $0x10] sm:$0xff] }
 0x76c   : > { %v4397_v44 = vadd.f32 %v4396_v6, %v4353_v5  ;;  %4656 = vmatpush.msra.mxu1 %v4655_v3  ;;  %v4679_v5 = vand.u32 4294901760, %v4678_v29 }
 0x76d   : > { %v4193_v28 = vpop.f32.mrf.mxu2  ;;  %v4512_v49 = vpop.f32.mrf.mxu3 }
 0x76e   : > { %v4194_v39 = vadd.f32 %v4193_v28, %v1481_v0  ;;  %4662 = vmatpush.msra.mxu1 %v4661_v18  ;;  %v4684_v28 = vsub.f32 %v7922_v9, %v4683_v32  ;;  %v7969_v0 = vld [vmem:[%s8400_s15] ss:$0 sm:$0xff]  ;;  %v8031_v18 = vand.u32 4294901760, %v4579_v36 }
 0x770   : > { %v4299_v1 = vadd.f32 %v4298_v48, %v4194_v39  ;;  %v4689_v48 = vand.u32 4294901760, %v7944_v7  ;;  %4668 = vmatpush.msra.mxu1 %v4667_v23 }
 0x772   : > { %v4358_v16 = vadd.f32 %v4357_v53, %v4299_v1  ;;  %v4690_v39 = vsub.f32 %v7944_v7, %v4689_v48  ;;  %4674 = vmatpush.msra.mxu1 %v4673_v45  ;;  %v8038_v45 = vand.u32 4294901760, %v4578_v11 }
 0x774   : > { %v4403_v50 = vadd.f32 %v4402_v57, %v4358_v16  ;;  %4680 = vmatpush.msra.mxu1 %v4679_v5 }
 0x775   : > { %v4471_v41 = vpop.f32.mrf.mxu2  ;;  %v4516_v62 = vpop.f32.mrf.mxu3 }
 0x776   : > { %v4472_v61 = vadd.f32 %v4471_v41, %v4397_v44  ;;  %v4685_v44 = vand.u32 4294901760, %v4684_v28  ;;  %v4691_v41 = vand.u32 4294901760, %v4690_v39  ;;  %v8042_v28 = vsub.f32 %v4579_v36, %v8031_v18 }
 0x778   : > { %v7873_v22 = vadd.f32 %v4512_v49, %v4472_v61  ;;  %4686 = vmatpush.msra.mxu1 %v4685_v44 }
 0x77a   : > { %4521 = vadd.xlane.f32.xlu2 %v7873_v22  ;;  %4692 = vmatpush.msra.mxu1 %v4691_v41  ;;  %v4719_v41 = vand.u32 4294901760, %v8042_v28 }
 0x77d   : > { %v4475_v27 = vpop.f32.mrf.mxu2 }
 0x77e   : > { %v4476_v12 = vadd.f32 %v4475_v27, %v4403_v50  ;;  %v4583_v50 = vld [vmem:[#allocation5 + $0x38] sm:$0xff] }
 0x77f   : > { %v7992_v27 = vand.u32 4294901760, %v4583_v50 }
 0x780   : > { %v7876_v55 = vadd.f32 %v4516_v62, %v4476_v12  ;;  %v4582_v12 = vld [vmem:[#allocation5 + $0x30] sm:$0xff] }
 0x781   : > { %v7995_v62 = vsub.f32 %v4583_v50, %v7992_v27  ;;  %v7997_v47 = vand.u32 4294901760, %v4582_v12  ;;  %4613 = vmatpush.msra.mxu0 %v7992_v27  ;;  %4826 = vmatpush.msrb.mxu3 %v7992_v27  ;;  %v4720_v50 = vsub.f32 %v8042_v28, %v4719_v41 }
 0x782   : > { %4523 = vadd.xlane.f32.xlu0 %v7876_v55 }
 0x783   : > { %v4695_v13 = vand.u32 4294901760, %v7995_v62  ;;  %v8003_v34 = vsub.f32 %v4582_v12, %v7997_v47  ;;  %4615 = vmatpush.msra.mxu0 %v7997_v47  ;;  %4776 = vmatpush.msrb.mxu2 %v7995_v62 }
 0x784   : > { %4828 = vmatpush.msrb.mxu3 %v7997_v47 }
 0x785   : > { %v4696_v26 = vsub.f32 %v7995_v62, %v4695_v13  ;;  %v4701_v17 = vand.u32 4294901760, %v8003_v34  ;;  %4779 = vmatpush.msrb.mxu2 %v8003_v34 }
 0x787   : > { %v4697_v52 = vand.u32 4294901760, %v4696_v26  ;;  %v4702_v38 = vsub.f32 %v8003_v34, %v4701_v17  ;;  %v4721_v26 = vand.u32 4294901760, %v4720_v50  ;;  %v4984_v34 = vld [vmem:[#allocation7 + $0x70] sm:$0xff] }
 0x789   : > { %4698 = vmatpush.msra.mxu1 %v4697_v52  ;;  %v4703_v23 = vand.u32 4294901760, %v4702_v38 }
 0x78b   : > { %4704 = vmatpush.msra.mxu1 %v4703_v23 }
 0x7ed   : > { %v4522_v60 = vpop.xlane.xlu2 %4521 }
 0x7ee   : > { %v4525_v51 = vmul.f32 0.03125, %v4522_v60  ;;  %v4713_v60 = vand.u32 4294901760, %v8027_v35 }
 0x7f0   : > { %v4527_v6 = vsub.f32 %v7873_v22, %v4525_v51  ;;  %v4577_v51 = vld [vmem:[#allocation5 + $0x8] sm:$0xff]  ;;  %v4714_v39 = vsub.f32 %v8027_v35, %v4713_v60 }
 0x7f1   : > { %v8050_v44 = vand.u32 4294901760, %v4577_v51 }
 0x7f2   : > { %v7981_v1 = vmul.f32 %v7969_v0, %v4527_v6  ;;  %v4724_v6 = vsub.f32 %v4578_v11, %v8038_v45 }
 0x7f4   : > { %v4534_v49 = vmul.f32 %v7981_v1, %v7981_v1 }
 0x7f5   : > { %v4524_v61 = vpop.xlane.xlu0 %4523 }
 0x7f6   : > { %v4526_v53 = vmul.f32 0.03125, %v4524_v61  ;;  %4536 = vadd.xlane.f32.xlu1 %v4534_v49  ;;  %v4576_v49 = vld [vmem:[#allocation5] sm:$0xff]  ;;  %v4715_v61 = vand.u32 4294901760, %v4714_v39 }
 0x7f8   : > { %v4528_v16 = vsub.f32 %v7876_v55, %v4526_v53  ;;  %v4581_v55 = vld [vmem:[#allocation5 + $0x28] sm:$0xff]  ;;  %v4725_v53 = vand.u32 4294901760, %v4724_v6 }
 0x7f9   : > { %v8005_v10 = vand.u32 4294901760, %v4581_v55 }
 0x7fa   : > { %v7988_v22 = vmul.f32 %v7969_v0, %v4528_v16  ;;  %v4730_v16 = vsub.f32 %v4577_v51, %v8050_v44  ;;  %v4726_v12 = vsub.f32 %v4724_v6, %v4725_v53 }
 0x7fb   : > { %v8015_v24 = vsub.f32 %v4581_v55, %v8005_v10  ;;  %4617 = vmatpush.msra.mxu0 %v8005_v10  ;;  %4830 = vmatpush.msrb.mxu3 %v8005_v10 }
 0x7fc   : > { %v4535_v57 = vmul.f32 %v7988_v22, %v7988_v22  ;;  %v4731_v55 = vand.u32 4294901760, %v4730_v16  ;;  %v4727_v36 = vand.u32 4294901760, %v4726_v12  ;;  %v4979_v12 = vld [vmem:[#allocation7 + $0x48] sm:$0xff] }
 0x7fd   : > { %v4707_v3 = vand.u32 4294901760, %v8015_v24  ;;  %4619 = vmatpush.msra.mxu0 %v8017_v21  ;;  %4782 = vmatpush.msrb.mxu2 %v8015_v24 }
 0x7fe   : > { %4538 = vadd.xlane.f32.xlu2 %v4535_v57  ;;  %4832 = vmatpush.msrb.mxu3 %v8017_v21  ;;  %v8056_v57 = vand.u32 4294901760, %v4576_v49  ;;  %v4732_v52 = vsub.f32 %v4730_v16, %v4731_v55 }
 0x7ff   : > { %v4708_v29 = vsub.f32 %v8015_v24, %v4707_v3  ;;  %4785 = vmatpush.msrb.mxu2 %v8027_v35  ;;  %4621 = vmatpush.msra.mxu0 %v8031_v18  ;;  %v8123_v24 = vand.u32 4294901760, %v4984_v34  ;;  %v4981_v35 = vld [vmem:[#allocation7 + $0x58] sm:$0xff] }
 0x800   : > { %4834 = vmatpush.msrb.mxu3 %v8031_v18  ;;  %v4736_v4 = vsub.f32 %v4576_v49, %v8056_v57  ;;  %v4733_v11 = vand.u32 4294901760, %v4732_v52 }
 0x801   : > { %v4709_v5 = vand.u32 4294901760, %v4708_v29  ;;  %4623 = vmatpush.msra.mxu0 %v8038_v45  ;;  %4788 = vmatpush.msrb.mxu2 %v8042_v28  ;;  %v8129_v28 = vand.u32 4294901760, %v4981_v35 }
 0x802   : > { %4836 = vmatpush.msrb.mxu3 %v8038_v45  ;;  %v4737_v38 = vand.u32 4294901760, %v4736_v4 }
 0x803   : > { %4710 = vmatpush.msra.mxu1 %v4709_v5  ;;  %4625 = vmatpush.msra.mxu0 %v8050_v44  ;;  %v8135_v5 = vsub.f32 %v4984_v34, %v8123_v24 }
 0x804   : > { %4791 = vmatpush.msrb.mxu2 %v4724_v6  ;;  %4838 = vmatpush.msrb.mxu3 %v8050_v44  ;;  %v4738_v23 = vsub.f32 %v4736_v4, %v4737_v38 }
 0x805   : > { %4716 = vmatpush.msra.mxu1 %v4715_v61  ;;  %4627 = vmatpush.msra.mxu0 %v8056_v57  ;;  %v8150_v61 = vsub.f32 %v4981_v35, %v8129_v28  ;;  %v4974_v35 = vld [vmem:[#allocation7 + $0x20] sm:$0xff] }
 0x806   : > { %4794 = vmatpush.msrb.mxu2 %v4730_v16  ;;  %4840 = vmatpush.msrb.mxu3 %v8056_v57  ;;  %v4739_v29 = vand.u32 4294901760, %v4738_v23  ;;  %v5047_v16 = vand.u32 4294901760, %v8135_v5 }
 0x807   : > { %4857 = vmatpush.msrb.mxu0 %v4647_v54  ;;  %4722 = vmatpush.msra.mxu1 %v4721_v26 }
 0x808   : > { %4797 = vmatpush.msrb.mxu2 %v4736_v4  ;;  %v5048_v52 = vsub.f32 %v8135_v5, %v5047_v16 }
 0x809   : > { %4861 = vmatpush.msrb.mxu0 %v4653_v14  ;;  %4728 = vmatpush.msra.mxu1 %v4727_v36  ;;  %v5642_v14 = vld [vmem:[%s8388_s3] ss:$0 sm:$0xff] }
 0x80b   : > { %4865 = vmatpush.msrb.mxu0 %v4659_v8  ;;  %4734 = vmatpush.msra.mxu1 %v4733_v11  ;;  %v5065_v11 = vand.u32 4294901760, %v8150_v61 }
 0x80d   : > { %4869 = vmatpush.msrb.mxu0 %v4665_v2  ;;  %4740 = vmatpush.msra.mxu1 %v4739_v29  ;;  %v5643_v2 = vld [vmem:[%s8389_s4] ss:$0 sm:$0xff]  ;;  %v8175_v29 = vand.u32 4294901760, %v4979_v12 }
 0x80f   : > { %4928 = vmatpush.msrb.mxu1 %v7879_v20  ;;  %4873 = vmatpush.msrb.mxu0 %v4671_v56 }
 0x811   : > { %4930 = vmatpush.msrb.mxu1 %v7881_v59  ;;  %4877 = vmatpush.msrb.mxu0 %v4677_v43 }
 0x813   : > { %4932 = vmatpush.msrb.mxu1 %v7883_v30  ;;  %4881 = vmatpush.msrb.mxu0 %v4683_v32 }
 0x815   : > { %4934 = vmatpush.msrb.mxu1 %v7885_v37  ;;  %4885 = vmatpush.msrb.mxu0 %v4689_v48 }
 0x817   : > { %4936 = vmatpush.msrb.mxu1 %v7887_v46  ;;  %4889 = vmatpush.msrb.mxu0 %v4695_v13  ;;  %v4985_v13 = vld [vmem:[#allocation7 + $0x78] sm:$0xff] }
 0x819   : > { %4938 = vmatpush.msrb.mxu1 %v7889_v25  ;;  %4893 = vmatpush.msrb.mxu0 %v4701_v17  ;;  %v8121_v17 = vand.u32 4294901760, %v4985_v13 }
 0x81b   : > { %4940 = vmatpush.msrb.mxu1 %v7901_v19  ;;  %4897 = vmatpush.msrb.mxu0 %v4707_v3  ;;  %v4982_v3 = vld [vmem:[#allocation7 + $0x60] sm:$0xff]  ;;  %v8132_v51 = vsub.f32 %v4985_v13, %v8121_v17 }
 0x81c   : > { %4991 = vmatpush.msra.mxu2 %v8121_v17 }
 0x81d   : > { %4942 = vmatpush.msrb.mxu1 %v7917_v42  ;;  %4901 = vmatpush.msrb.mxu0 %v4713_v60 }
 0x81e   : > { %4993 = vmatpush.msra.mxu2 %v8123_v24 }
 0x81f   : > { %4944 = vmatpush.msrb.mxu1 %v7992_v27  ;;  %4905 = vmatpush.msrb.mxu0 %v4719_v41 }
 0x821   : > { %4946 = vmatpush.msrb.mxu1 %v7997_v47  ;;  %4909 = vmatpush.msrb.mxu0 %v4725_v53  ;;  %v5041_v53 = vand.u32 4294901760, %v8132_v51 }
 0x823   : > { %4948 = vmatpush.msrb.mxu1 %v8005_v10  ;;  %4913 = vmatpush.msrb.mxu0 %v4731_v55  ;;  %v4983_v10 = vld [vmem:[#allocation7 + $0x68] sm:$0xff]  ;;  %v5042_v36 = vsub.f32 %v8132_v51, %v5041_v53 }
 0x825   : > { %4950 = vmatpush.msrb.mxu1 %v8017_v21  ;;  %4917 = vmatpush.msrb.mxu0 %v4737_v38  ;;  %v8125_v21 = vand.u32 4294901760, %v4983_v10 }
 0x827   : > { %4952 = vmatpush.msrb.mxu1 %v8031_v18  ;;  %v4980_v18 = vld [vmem:[#allocation7 + $0x50] sm:$0xff]  ;;  %v8138_v39 = vsub.f32 %v4983_v10, %v8125_v21  ;;  %4995 = vmatpush.msra.mxu2 %v8125_v21 }
 0x828   : > { %v8141_v6 = vand.u32 4294901760, %v4980_v18 }
 0x829   : > { %4954 = vmatpush.msrb.mxu1 %v8038_v45  ;;  %v8127_v45 = vand.u32 4294901760, %v4982_v3 }
 0x82a   : > { %v8157_v50 = vsub.f32 %v4980_v18, %v8141_v6 }
 0x82b   : > { %4956 = vmatpush.msrb.mxu1 %v8050_v44  ;;  %v8147_v49 = vsub.f32 %v4982_v3, %v8127_v45  ;;  %4997 = vmatpush.msra.mxu2 %v8127_v45 }
 0x82d   : > { %4958 = vmatpush.msrb.mxu1 %v8056_v57  ;;  %v5053_v57 = vand.u32 4294901760, %v8138_v39  ;;  %v5059_v26 = vand.u32 4294901760, %v8147_v49  ;;  %4999 = vmatpush.msra.mxu2 %v8129_v28 }
 0x82f   : > { %v5054_v38 = vsub.f32 %v8138_v39, %v5053_v57  ;;  %5001 = vmatpush.msra.mxu2 %v8141_v6 }
 0x831   : > { %5003 = vmatpush.msra.mxu2 %v8175_v29 }
 0x869   : > { %v4537_v20 = vpop.xlane.xlu1 %4536 }
 0x86a   : > { %v4540_v59 = vmul.f32 0.03125, %v4537_v20  ;;  %v5043_v20 = vand.u32 4294901760, %v5042_v36 }
 0x86c   : > { %v4542_v30 = vadd.f32 1e-05, %v4540_v59  ;;  %v5049_v59 = vand.u32 4294901760, %v5048_v52  ;;  %5044 = vmatpush.msra.mxu3 %v5043_v20  ;;  %v4972_v20 = vld [vmem:[#allocation7 + $0x10] sm:$0xff] }
 0x86e   : > { %5712 = vrsqrt.f32 %v4542_v30  ;;  %vm4550_vm3 = vweird.f32 %v4542_v30  ;;  %5050 = vmatpush.msra.mxu3 %v5049_v59 }
 0x871   : > { %v4539_v37 = vpop.xlane.xlu2 %4538 }
 0x872   : > { %v4541_v46 = vmul.f32 0.03125, %v4539_v37  ;;  %v5071_v37 = vand.u32 4294901760, %v8157_v50 }
 0x874   : > { %v5713_v25 = vpop.eup %5712  ;;  %v4543_v33 = vadd.f32 1e-05, %v4541_v46 }
 0x875   : > { %v4545_v63 = vmul.f32 %v5713_v25, %v4542_v30  ;;  %vm4551_vm2 = vweird.f32 %v5713_v25  ;;  %v5060_v30 = vsub.f32 %v8147_v49, %v5059_v26 }
 0x876   : > { %5714 = vrsqrt.f32 %v4543_v33  ;;  %vm4552_vm4 = vmor %vm4550_vm3, %vm4551_vm2  ;;  %vm4560_vm6 = vweird.f32 %v4543_v33 }
 0x877   : > { %v4546_v15 = vmul.f32 %v5713_v25, %v4545_v63  ;;  %v5066_v63 = vsub.f32 %v8150_v61, %v5065_v11 }
 0x879   : > { %v4547_v19 = vmul.f32 0.5, %v4546_v15 }
 0x87b   : > { %v4548_v31 = vsub.f32 1.5, %v4547_v19 }
 0x87c   : > { %v5715_v40 = vpop.eup %5714 }
 0x87d   : > { %v4549_v58 = vmul.f32 %v5713_v25, %v4548_v31  ;;  %v4555_v54 = vmul.f32 %v5715_v40, %v4543_v33  ;;  %vm4561_vm5 = vweird.f32 %v5715_v40  ;;  %v5055_v33 = vand.u32 4294901760, %v5054_v38 }
 0x87e   : > { %vm4562_vm7 = vmor %vm4560_vm6, %vm4561_vm5  ;;  %v5061_v31 = vand.u32 4294901760, %v5060_v30 }
 0x87f   : > { %v4553_v8 = vsel %vm4552_vm4, %v5713_v25, %v4549_v58  ;;  %v4556_v42 = vmul.f32 %v5715_v40, %v4555_v54  ;;  %v8184_v25 = vsub.f32 %v4979_v12, %v8175_v29  ;;  %5056 = vmatpush.msra.mxu3 %v5055_v33  ;;  %v5067_v54 = vand.u32 4294901760, %v5066_v63 }
 0x880   : > { %v4564_v9 = vmul.f32 %v4553_v8, %v7981_v1  ;;  %v8250_v12 = vand.u32 4294901760, %v4974_v35  ;;  %v8271_v33 = vand.u32 4294901760, %v4972_v20 }
 0x881   : > { %v4557_v56 = vmul.f32 0.5, %v4556_v42  ;;  %v5077_v19 = vand.u32 4294901760, %v8184_v25  ;;  %5062 = vmatpush.msra.mxu3 %v5061_v31 }
 0x882   : > { %v4569_v43 = vmul.f32 %v5642_v14, %v4564_v9 }
 0x883   : > { %v4558_v7 = vsub.f32 1.5, %v4557_v56  ;;  %5068 = vmatpush.msra.mxu3 %v5067_v54  ;;  %v4977_v56 = vld [vmem:[#allocation7 + $0x38] sm:$0xff] }
 0x884   : > { %v8112_v32 = vadd.f32 %v5643_v2, %v4569_v43 }
 0x885   : > { %v4559_v48 = vmul.f32 %v5715_v40, %v4558_v7  ;;  %v8216_v7 = vand.u32 4294901760, %v4977_v56 }
 0x886   : > { %v8115_v27 = vand.u32 4294901760, %v8112_v32 }
 0x887   : > { %v4563_v62 = vsel %vm4562_vm7, %v5715_v40, %v4559_v48  ;;  %v5072_v40 = vsub.f32 %v8157_v50, %v5071_v37  ;;  %v4976_v48 = vld [vmem:[#allocation7 + $0x30] sm:$0xff] }
 0x888   : > { %v4565_v47 = vmul.f32 %v4563_v62, %v7988_v22  ;;  %4742 = vmatmul.f32.vlgmr.msra.gmra.mxu1 %v8115_v27  ;;  %v4629_v1 = vsub.f32 %v8112_v32, %v8115_v27 }
 0x889   : > { %5204 = vmatpush.msra.mxu1 %v8121_v17  ;;  %v5073_v8 = vand.u32 4294901760, %v5072_v40 }
 0x88a   : > { %v4570_v60 = vmul.f32 %v5642_v14, %v4565_v47  ;;  %4800 = vmatmul.f32.vlgmr.msrb.gmra.mxu2 %v4629_v1  ;;  %v4630_v22 = vand.u32 4294901760, %v4629_v1  ;;  %v5078_v14 = vsub.f32 %v8184_v25, %v5077_v19  ;;  %v8224_v47 = vand.u32 4294901760, %v4976_v48 }
 0x88b   : > { %5206 = vmatpush.msra.mxu1 %v8123_v24  ;;  %5074 = vmatpush.msra.mxu3 %v5073_v8  ;;  %v4970_v8 = vld [vmem:[#allocation7] sm:$0xff] }
 0x88c   : > { %4844 = vmatmul.f32.vlgmr.msrb.gmra.mxu3 %v4630_v22  ;;  %v4631_v44 = vsub.f32 %v4629_v1, %v4630_v22  ;;  %v8144_v41 = vadd.f32 %v5643_v2, %v4570_v60  ;;  %v5079_v42 = vand.u32 4294901760, %v5078_v14  ;;  %v4978_v2 = vld [vmem:[#allocation7 + $0x40] sm:$0xff]  ;;  %v4975_v1 = vld [vmem:[#allocation7 + $0x28] sm:$0xff]  ;;  %v8234_v10 = vsub.f32 %v4976_v48, %v8224_v47 }
 0x88d   : > { %5208 = vmatpush.msra.mxu1 %v8125_v21  ;;  %v8211_v9 = vand.u32 4294901760, %v4978_v2  ;;  %v8236_v3 = vand.u32 4294901760, %v4975_v1  ;;  %v8286_v48 = vand.u32 4294901760, %v4970_v8 }
 0x88e   : > { %v4632_v55 = vand.u32 4294901760, %v4631_v44  ;;  %v4636_v4 = vand.u32 4294901760, %v8144_v41  ;;  %5080 = vmatpush.msra.mxu3 %v5079_v42  ;;  %v5095_v22 = vand.u32 4294901760, %v8234_v10 }
 0x88f   : > { %5210 = vmatpush.msra.mxu1 %v8127_v45  ;;  %v8214_v43 = vsub.f32 %v4978_v2, %v8211_v9  ;;  %5005 = vmatpush.msra.mxu2 %v8211_v9  ;;  %v8246_v44 = vsub.f32 %v4975_v1, %v8236_v3 }
 0x890   : > { %4633 = vmatmul.f32.vlgmr.msra.gmra.mxu0 %v4632_v55  ;;  %4746 = vmatmul.f32.gmra.mxu1 %v4636_v4  ;;  %v4637_v23 = vsub.f32 %v8144_v41, %v4636_v4  ;;  %v4973_v55 = vld [vmem:[#allocation7 + $0x18] sm:$0xff]  ;;  %v5096_v36 = vsub.f32 %v8234_v10, %v5095_v22 }
 0x891   : > { %5146 = vmatpush.msra.mxu0 %v8132_v51  ;;  %5212 = vmatpush.msra.mxu1 %v8129_v28  ;;  %v5083_v62 = vand.u32 4294901760, %v8214_v43  ;;  %v5101_v52 = vand.u32 4294901760, %v8246_v44  ;;  %v8257_v38 = vand.u32 4294901760, %v4973_v55 }
 0x892   : > { %4805 = vmatmul.f32.gmra.mxu2 %v4637_v23  ;;  %v4638_v46 = vand.u32 4294901760, %v4637_v23  ;;  %v5097_v59 = vand.u32 4294901760, %v5096_v36 }
 0x893   : > { %5149 = vmatpush.msra.mxu0 %v8135_v5  ;;  %5214 = vmatpush.msra.mxu1 %v8141_v6  ;;  %v5084_v13 = vsub.f32 %v8214_v43, %v5083_v62  ;;  %v5102_v30 = vsub.f32 %v8246_v44, %v5101_v52 }
 0x894   : > { %4850 = vmatmul.f32.gmra.mxu3 %v4638_v46  ;;  %v4639_v15 = vsub.f32 %v4637_v23, %v4638_v46  ;;  %5007 = vmatpush.msra.mxu2 %v8216_v7  ;;  %v8261_v23 = vsub.f32 %v4974_v35, %v8250_v12  ;;  %v8269_v46 = vsub.f32 %v4973_v55, %v8257_v38 }
 0x895   : > { %5152 = vmatpush.msra.mxu0 %v8138_v39  ;;  %5216 = vmatpush.msra.mxu1 %v8175_v29  ;;  %v5085_v18 = vand.u32 4294901760, %v5084_v13  ;;  %v5103_v31 = vand.u32 4294901760, %v5102_v30 }
 0x896   : > { %v4640_v58 = vand.u32 4294901760, %v4639_v15  ;;  %5009 = vmatpush.msra.mxu2 %v8224_v47  ;;  %v5107_v63 = vand.u32 4294901760, %v8261_v23  ;;  %v4971_v15 = vld [vmem:[#allocation7 + $0x8] sm:$0xff]  ;;  %v5113_v40 = vand.u32 4294901760, %v8269_v46 }
 0x897   : > { %5155 = vmatpush.msra.mxu0 %v8147_v49  ;;  %5218 = vmatpush.msra.mxu1 %v8211_v9  ;;  %v8278_v54 = vand.u32 4294901760, %v4971_v15 }
 0x898   : > { %4641 = vmatmul.f32.gmra.mxu0 %v4640_v58  ;;  %4960 = vmatmul.f32.vlgmr.msrb.gmra.mxu1 %v8115_v27  ;;  %v5118_v58 = vsub.f32 %v4972_v20, %v8271_v33  ;;  %v5108_v14 = vsub.f32 %v8261_v23, %v5107_v63  ;;  %v5114_v42 = vsub.f32 %v8269_v46, %v5113_v40 }
 0x899   : > { %5158 = vmatpush.msra.mxu0 %v8150_v61  ;;  %5220 = vmatpush.msra.mxu1 %v8216_v7 }
 0x89a   : > { %5011 = vmatpush.msra.mxu2 %v8236_v3  ;;  %5086 = vmatpush.msra.mxu3 %v5085_v18  ;;  %v5119_v2 = vand.u32 4294901760, %v5118_v58  ;;  %v5109_v1 = vand.u32 4294901760, %v5108_v14  ;;  %v5115_v13 = vand.u32 4294901760, %v5114_v42 }
 0x89b   : > { %5161 = vmatpush.msra.mxu0 %v8157_v50  ;;  %5222 = vmatpush.msra.mxu1 %v8224_v47 }
 0x89c   : > { %5013 = vmatpush.msra.mxu2 %v8250_v12  ;;  %v5120_v35 = vsub.f32 %v5118_v58, %v5119_v2 }
 0x89d   : > { %5164 = vmatpush.msra.mxu0 %v8184_v25  ;;  %5224 = vmatpush.msra.mxu1 %v8236_v3 }
 0x89e   : > { %5015 = vmatpush.msra.mxu2 %v8257_v38  ;;  %v5121_v55 = vand.u32 4294901760, %v5120_v35 }
 0x89f   : > { %5167 = vmatpush.msra.mxu0 %v8214_v43  ;;  %5226 = vmatpush.msra.mxu1 %v8250_v12 }
 0x8a0   : > { %4919 = vmatmul.f32.vlgmr.msrb.gmra.mxu0 %v8115_v27  ;;  %4964 = vmatmul.f32.gmra.mxu1 %v4636_v4  ;;  %v8222_v27 = vsub.f32 %v4977_v56, %v8216_v7  ;;  %v5124_v56 = vsub.f32 %v4971_v15, %v8278_v54 }
 0x8a1   : > { %5228 = vmatpush.msra.mxu1 %v8257_v38  ;;  %5017 = vmatpush.msra.mxu2 %v8271_v33 }
 0x8a2   : > { %v5089_v34 = vand.u32 4294901760, %v8222_v27  ;;  %5170 = vmatpush.msra.mxu0 %v8222_v27  ;;  %v5125_v18 = vand.u32 4294901760, %v5124_v56 }
 0x8a3   : > { %5230 = vmatpush.msra.mxu1 %v8271_v33  ;;  %5019 = vmatpush.msra.mxu2 %v8278_v54 }
 0x8a4   : > { %v5090_v60 = vsub.f32 %v8222_v27, %v5089_v34  ;;  %5173 = vmatpush.msra.mxu0 %v8234_v10 }
 0x8a5   : > { %5232 = vmatpush.msra.mxu1 %v8278_v54  ;;  %5021 = vmatpush.msra.mxu2 %v8286_v48 }
 0x8a6   : > { %5176 = vmatpush.msra.mxu0 %v8246_v44 }
 0x8a7   : > { %5251 = vmatpush.msrb.mxu2 %v5041_v53  ;;  %5234 = vmatpush.msra.mxu1 %v8286_v48 }
 0x8a8   : > { %4923 = vmatmul.f32.gmra.mxu0 %v4636_v4  ;;  %v5091_v4 = vand.u32 4294901760, %v5090_v60  ;;  %v5130_v60 = vsub.f32 %v4970_v8, %v8286_v48 }
 0x8a9   : > { %5179 = vmatpush.msra.mxu0 %v8261_v23  ;;  %5255 = vmatpush.msrb.mxu2 %v5047_v16 }
 0x8aa   : > { %5092 = vmatpush.msra.mxu3 %v5091_v4  ;;  %v5126_v4 = vsub.f32 %v5124_v56, %v5125_v18  ;;  %v5131_v36 = vand.u32 4294901760, %v5130_v60 }
 0x8ab   : > { %5182 = vmatpush.msra.mxu0 %v8269_v46  ;;  %5259 = vmatpush.msrb.mxu2 %v5053_v57 }
 0x8ac   : > { %5098 = vmatpush.msra.mxu3 %v5097_v59  ;;  %v5127_v23 = vand.u32 4294901760, %v5126_v4  ;;  %v5132_v20 = vsub.f32 %v5130_v60, %v5131_v36 }
 0x8ad   : > { %5185 = vmatpush.msra.mxu0 %v5118_v58  ;;  %5263 = vmatpush.msrb.mxu2 %v5059_v26 }
 0x8ae   : > { %5104 = vmatpush.msra.mxu3 %v5103_v31  ;;  %v5133_v59 = vand.u32 4294901760, %v5132_v20 }
 0x8af   : > { %5188 = vmatpush.msra.mxu0 %v5124_v56  ;;  %5267 = vmatpush.msrb.mxu2 %v5065_v11 }
 0x8b0   : > { %5110 = vmatpush.msra.mxu3 %v5109_v1 }
 0x8b1   : > { %5191 = vmatpush.msra.mxu0 %v5130_v60  ;;  %5271 = vmatpush.msrb.mxu2 %v5071_v37 }
 0x8b2   : > { %5116 = vmatpush.msra.mxu3 %v5115_v13 }
 0x8b3   : > { %5275 = vmatpush.msrb.mxu2 %v5077_v19 }
 0x8b4   : > { %5122 = vmatpush.msra.mxu3 %v5121_v55 }
 0x8b5   : > { %5279 = vmatpush.msrb.mxu2 %v5083_v62 }
 0x8b6   : > { %5128 = vmatpush.msra.mxu3 %v5127_v23 }
 0x8b7   : > { %5283 = vmatpush.msrb.mxu2 %v5089_v34 }
 0x8b8   : > { %5134 = vmatpush.msra.mxu3 %v5133_v59 }
 0x8b9   : > { %5287 = vmatpush.msrb.mxu2 %v5095_v22 }
 0x8ba   : > { %5322 = vmatpush.msrb.mxu3 %v8121_v17 }
 0x8bb   : > { %5291 = vmatpush.msrb.mxu2 %v5101_v52 }
 0x8bc   : > { %5324 = vmatpush.msrb.mxu3 %v8123_v24  ;;  %v5644_v24 = vld [vmem:[%s8391_s6] ss:$0 sm:$0xff] }
 0x8bd   : > { %5295 = vmatpush.msrb.mxu2 %v5107_v63  ;;  %v5645_v63 = vld [vmem:[%s8393_s8] ss:$0 sm:$0xff] }
 0x8be   : > { %5326 = vmatpush.msrb.mxu3 %v8125_v21 }
 0x8bf   : > { %5299 = vmatpush.msrb.mxu2 %v5113_v40 }
 0x8c0   : > { %5328 = vmatpush.msrb.mxu3 %v8127_v45 }
 0x8c1   : > { %5303 = vmatpush.msrb.mxu2 %v5119_v2 }
 0x8c2   : > { %5330 = vmatpush.msrb.mxu3 %v8129_v28 }
 0x8c3   : > { %5307 = vmatpush.msrb.mxu2 %v5125_v18 }
 0x8c4   : > { %5332 = vmatpush.msrb.mxu3 %v8141_v6 }
 0x8c5   : > { %5311 = vmatpush.msrb.mxu2 %v5131_v36 }
 0x8c6   : > { %5334 = vmatpush.msrb.mxu3 %v8175_v29 }
 0x8c8   : > { %5336 = vmatpush.msrb.mxu3 %v8211_v9 }
 0x8ca   : > { %5338 = vmatpush.msrb.mxu3 %v8216_v7 }
 0x8cc   : > { %5340 = vmatpush.msrb.mxu3 %v8224_v47 }
 0x8ce   : > { %5342 = vmatpush.msrb.mxu3 %v8236_v3 }
 0x8d0   : > { %5344 = vmatpush.msrb.mxu3 %v8250_v12 }
 0x8d2   : > { %5346 = vmatpush.msrb.mxu3 %v8257_v38 }
 0x8d4   : > { %5348 = vmatpush.msrb.mxu3 %v8271_v33 }
 0x8d6   : > { %5350 = vmatpush.msrb.mxu3 %v8278_v54 }
 0x8d8   : > { %5352 = vmatpush.msrb.mxu3 %v8286_v48 }
 0x905   : > { %v4743_v17 = vpop.f32.mrf.mxu1 }
 0x90d   : > { %v4634_v21 = vpop.f32.mrf.mxu0  ;;  %v4747_v28 = vpop.f32.mrf.mxu1 }
 0x90e   : > { %v4635_v45 = vadd.f32 %v5644_v24, %v4634_v21  ;;  %v4801_v5 = vpop.f32.mrf.mxu2 }
 0x90f   : > { %v4845_v61 = vpop.f32.mrf.mxu3 }
 0x910   : > { %v4744_v51 = vadd.f32 %v4743_v17, %v4635_v45 }
 0x912   : > { %v4802_v6 = vadd.f32 %v4801_v5, %v4744_v51 }
 0x914   : > { %v4846_v53 = vadd.f32 %v4845_v61, %v4802_v6 }
 0x915   : > { %v4642_v39 = vpop.f32.mrf.mxu0  ;;  %v4961_v57 = vpop.f32.mrf.mxu1 }
 0x916   : > { %v4643_v49 = vadd.f32 %v5644_v24, %v4642_v39  ;;  %v4806_v11 = vpop.f32.mrf.mxu2 }
 0x917   : > { %v4851_v19 = vpop.f32.mrf.mxu3 }
 0x918   : > { %v4748_v16 = vadd.f32 %v4747_v28, %v4643_v49 }
 0x91a   : > { %v4807_v29 = vadd.f32 %v4806_v11, %v4748_v16 }
 0x91c   : > { %v4852_v9 = vadd.f32 %v4851_v19, %v4807_v29 }
 0x91d   : > { %v4920_v50 = vpop.f32.mrf.mxu0  ;;  %v4965_v47 = vpop.f32.mrf.mxu1 }
 0x91e   : > { %v4921_v26 = vadd.f32 %v4920_v50, %v4846_v53 }
 0x920   : > { %v4962_v37 = vadd.f32 %v4961_v57, %v4921_v26 }
 0x922   : > { %v4968_v25 = vmax.f32 %v4962_v37, 0.0 }
 0x924   : > { %v5022_v43 = vand.u32 4294901760, %v4968_v25 }
 0x925   : > { %v4924_v7 = vpop.f32.mrf.mxu0 }
 0x926   : > { %v5023_v62 = vsub.f32 %v4968_v25, %v5022_v43  ;;  %v4925_v27 = vadd.f32 %v4924_v7, %v4852_v9  ;;  %5136 = vmatmul.f32.vlgmr.msra.gmra.mxu3 %v5022_v43 }
 0x928   : > { %v5024_v34 = vand.u32 4294901760, %v5023_v62  ;;  %v4966_v10 = vadd.f32 %v4965_v47, %v4925_v27  ;;  %5194 = vmatmul.f32.vlgmr.msra.gmra.mxu0 %v5023_v62 }
 0x92a   : > { %v5025_v3 = vsub.f32 %v5023_v62, %v5024_v34  ;;  %v4969_v22 = vmax.f32 %v4966_v10, 0.0  ;;  %5238 = vmatmul.f32.vlgmr.msra.gmra.mxu1 %v5024_v34  ;;  %v5646_v62 = vld [vmem:[%s8394_s9] ss:$0 sm:$0xff] }
 0x92b   : > { %v5647_v34 = vld [vmem:[%s8462_s27] ss:$0 sm:$0xff] }
 0x92c   : > { %v5026_v44 = vand.u32 4294901760, %v5025_v3  ;;  %v5030_v12 = vand.u32 4294901760, %v4969_v22 }
 0x92e   : > { %5027 = vmatmul.f32.vlgmr.msra.gmra.mxu2 %v5026_v44  ;;  %5140 = vmatmul.f32.gmra.mxu3 %v5030_v12  ;;  %v5031_v52 = vsub.f32 %v4969_v22, %v5030_v12 }
 0x930   : > { %5199 = vmatmul.f32.gmra.mxu0 %v5031_v52  ;;  %v5032_v38 = vand.u32 4294901760, %v5031_v52 }
 0x932   : > { %5244 = vmatmul.f32.gmra.mxu1 %v5032_v38  ;;  %v5033_v30 = vsub.f32 %v5031_v52, %v5032_v38 }
 0x934   : > { %v5034_v46 = vand.u32 4294901760, %v5033_v30 }
 0x936   : > { %5035 = vmatmul.f32.gmra.mxu2 %v5034_v46  ;;  %5354 = vmatmul.f32.vlgmr.msrb.gmra.mxu3 %v5022_v43 }
 0x93e   : > { %5313 = vmatmul.f32.vlgmr.msrb.gmra.mxu2 %v5022_v43  ;;  %5358 = vmatmul.f32.gmra.mxu3 %v5030_v12 }
 0x946   : > { %5317 = vmatmul.f32.gmra.mxu2 %v5030_v12 }
 0x9a5   : > { %v5195_v54 = vpop.f32.mrf.mxu0 }
 0x9a7   : > { %v5239_v2 = vpop.f32.mrf.mxu1 }
 0x9a9   : > { %v5137_v33 = vpop.f32.mrf.mxu3 }
 0x9ad   : > { %v5200_v18 = vpop.f32.mrf.mxu0 }
 0x9af   : > { %v5245_v36 = vpop.f32.mrf.mxu1 }
 0x9b1   : > { %v5028_v15 = vpop.f32.mrf.mxu2  ;;  %v5141_v40 = vpop.f32.mrf.mxu3 }
 0x9b2   : > { %v5029_v31 = vadd.f32 %v5645_v63, %v5028_v15 }
 0x9b4   : > { %v5138_v58 = vadd.f32 %v5137_v33, %v5029_v31 }
 0x9b6   : > { %v5196_v42 = vadd.f32 %v5195_v54, %v5138_v58 }
 0x9b8   : > { %v5240_v48 = vadd.f32 %v5239_v2, %v5196_v42 }
 0x9b9   : > { %v5036_v14 = vpop.f32.mrf.mxu2  ;;  %v5355_v1 = vpop.f32.mrf.mxu3 }
 0x9ba   : > { %v5037_v8 = vadd.f32 %v5645_v63, %v5036_v14 }
 0x9bc   : > { %v5142_v56 = vadd.f32 %v5141_v40, %v5037_v8 }
 0x9be   : > { %v5201_v55 = vadd.f32 %v5200_v18, %v5142_v56 }
 0x9c0   : > { %v5246_v23 = vadd.f32 %v5245_v36, %v5201_v55 }
 0x9c1   : > { %v5314_v13 = vpop.f32.mrf.mxu2  ;;  %v5359_v17 = vpop.f32.mrf.mxu3 }
 0x9c2   : > { %v5315_v35 = vadd.f32 %v5314_v13, %v5240_v48 }
 0x9c4   : > { %v5356_v60 = vadd.f32 %v5355_v1, %v5315_v35 }
 0x9c6   : > { %v5362_v4 = vadd.f32 %v5356_v60, %v8112_v32 }
 0x9c8   : > { %5366 = vadd.xlane.f32.xlu0 %v5362_v4 }
 0x9c9   : > { %v5318_v20 = vpop.f32.mrf.mxu2 }
 0x9ca   : > { %v5319_v59 = vadd.f32 %v5318_v20, %v5246_v23 }
 0x9cc   : > { %v5360_v24 = vadd.f32 %v5359_v17, %v5319_v59 }
 0x9ce   : > { %v5363_v21 = vadd.f32 %v5360_v24, %v8144_v41 }
 0x9d0   : > { %5368 = vadd.xlane.f32.xlu1 %v5363_v21 }
 0xa3b   : > { %v5367_v45 = vpop.xlane.xlu0 %5366 }
 0xa3c   : > { %v5370_v28 = vmul.f32 0.03125, %v5367_v45 }
 0xa3e   : > { %v5372_v51 = vsub.f32 %v5362_v4, %v5370_v28 }
 0xa40   : > { %v5374_v5 = vmul.f32 %v7969_v0, %v5372_v51 }
 0xa42   : > { %v5376_v39 = vmul.f32 %v5374_v5, %v5374_v5 }
 0xa43   : > { %v5369_v6 = vpop.xlane.xlu1 %5368 }
 0xa44   : > { %v5371_v49 = vmul.f32 0.03125, %v5369_v6  ;;  %5378 = vadd.xlane.f32.xlu2 %v5376_v39 }
 0xa46   : > { %v5373_v32 = vsub.f32 %v5363_v21, %v5371_v49 }
 0xa48   : > { %v5375_v61 = vmul.f32 %v7969_v0, %v5373_v32 }
 0xa4a   : > { %v5377_v53 = vmul.f32 %v5375_v61, %v5375_v61 }
 0xa4c   : > { %5380 = vadd.xlane.f32.xlu0 %v5377_v53 }
 0xab7   : > { %v5379_v16 = vpop.xlane.xlu2 %5378 }
 0xab8   : > { %v5382_v57 = vmul.f32 0.03125, %v5379_v16 }
 0xaba   : > { %v5384_v50 = vadd.f32 1e-05, %v5382_v57 }
 0xabc   : > { %5716 = vrsqrt.f32 %v5384_v50  ;;  %vm5392_vm9 = vweird.f32 %v5384_v50 }
 0xabf   : > { %v5381_v41 = vpop.xlane.xlu0 %5380 }
 0xac0   : > { %v5383_v26 = vmul.f32 0.03125, %v5381_v41 }
 0xac2   : > { %v5717_v11 = vpop.eup %5716  ;;  %v5385_v29 = vadd.f32 1e-05, %v5383_v26 }
 0xac3   : > { %v5387_v37 = vmul.f32 %v5717_v11, %v5384_v50  ;;  %vm5393_vm8 = vweird.f32 %v5717_v11 }
 0xac4   : > { %5718 = vrsqrt.f32 %v5385_v29  ;;  %vm5394_vm10 = vmor %vm5392_vm9, %vm5393_vm8  ;;  %vm5402_vm12 = vweird.f32 %v5385_v29 }
 0xac5   : > { %v5388_v25 = vmul.f32 %v5717_v11, %v5387_v37 }
 0xac7   : > { %v5389_v19 = vmul.f32 0.5, %v5388_v25 }
 0xac9   : > { %v5390_v9 = vsub.f32 1.5, %v5389_v19 }
 0xaca   : > { %v5719_v43 = vpop.eup %5718 }
 0xacb   : > { %v5391_v7 = vmul.f32 %v5717_v11, %v5390_v9  ;;  %v5397_v0 = vmul.f32 %v5719_v43, %v5385_v29  ;;  %vm5403_vm11 = vweird.f32 %v5719_v43 }
 0xacc   : > { %vm5404_vm13 = vmor %vm5402_vm12, %vm5403_vm11 }
 0xacd   : > { %v5395_v27 = vsel %vm5394_vm10, %v5717_v11, %v5391_v7  ;;  %v5398_v47 = vmul.f32 %v5719_v43, %v5397_v0 }
 0xace   : > { %v5406_v10 = vmul.f32 %v5395_v27, %v5374_v5 }
 0xacf   : > { %v5399_v3 = vmul.f32 0.5, %v5398_v47 }
 0xad0   : > { %v5411_v22 = vmul.f32 %v5646_v62, %v5406_v10 }
 0xad1   : > { %v5400_v44 = vsub.f32 1.5, %v5399_v3 }
 0xad2   : > { %v5416_v12 = vadd.f32 %v5647_v34, %v5411_v22 }
 0xad3   : > { %v5401_v52 = vmul.f32 %v5719_v43, %v5400_v44 }
 0xad4   : > { %5418 = vst.msk [vmem:[%s591_s30] sm:$0xff] %vm612_vm0, %v5416_v12 }
 0xad5   : > { %v5405_v38 = vsel %vm5404_vm13, %v5719_v43, %v5401_v52 }
 0xad6   : > { %v5407_v30 = vmul.f32 %v5405_v38, %v5375_v61 }
 0xad8   : > { %v5412_v46 = vmul.f32 %v5646_v62, %v5407_v30 }
 0xada   : > { %v5417_v33 = vadd.f32 %v5647_v34, %v5412_v46 }
 0xadc   : > { %5419 = vst.msk [vmem:[%s591_s30 + $0x8] sm:$0xff] %vm612_vm0, %v5417_v33 }
 0xadd   : > { %5883 = shalt.err (!%p5880_p10)
}
 0xade   : > { %s5937_s10 = smov 128   ;;  %s5938_s28 = smov 8  }
 0xadf   : > { %5574 = dma.vmem_to_hbm [thread:$0]  (%p6115_p3), %s5434_s16, 256, %s5436_s25, %s5421_s23, %s5937_s10, %s5937_s10, %s5938_s28  }
 0xae0 PF: > { %s8464_s20 = sld [smem:[#allocation15_spill]]  ;;  %p8466_p12 = scmp.ge.s32.totalorder %s5930_s24, 2 }
 0xae2   : > { %p5591_p13 = pnand %p8466_p12, %p6059_p6 }
 0xae4   : > { %p5592_p0 = pneg %p5591_p13 }
 0xae6   : > { %s5450_s30 = sand.u32 1, %s8464_s20  }
 0xae7   : > { %s5451_s7 = scalar_lea.sflag [#allocation4], %s5450_s30 }
 0xae8   : > { %5913 = dma.done.wait (%p5592_p0), %s5451_s7, 256  }
 0xae9   : > { %5915 = vsyncadd (%p5592_p0), %s5451_s7, 4294967040  ;;  %s8467_s24 = sld [smem:[#allocation18_spill]]  ;;  %s8470_s21 = smov %s5922_s22 }
 0xaea   : > { %s8468_s12 = sld [smem:[#allocation16_spill]] }
 0xaeb   : > { %s8469_s23 = sld [smem:[#allocation19_spill]] }
 0xaef   : > { %p31_p5 = scmp.ge.s32.totalorder %s8467_s24, 4  }
 0xaf0   : > { %s8471_s22 = smov %s8468_s12 }
 0xaf1   :  { %33 = sbr.rel (!%p31_p5) target bundleno = 14 (0xe), region = 141 }
 0xaf6   :  { %5457 = vsyncpa [#allocation3], 1 }
 0xaf7   :  { %5459 = vsyncpa [#allocation3 + $0x1], 1 }
 0xaf8   :  { %5460 = vsyncpa [#allocation6], 1 }
 0xaf9   :  { %5461 = vsyncpa [#allocation9], 1 }
 0xafa   :  { %5462 = vsyncpa [#allocation4], 1 }
 0xafb   :  { %5464 = vsyncpa [#allocation4 + $0x1], 1 }

</bundles_post_ra>
